<compile_context>
chip_gen: v6e
topology: v6e:2x2x1
jax: 0.10.0
libtpu: 0.0.40
codegen_flags: <defaults>
</compile_context>

<pallas_src>
import functools

import jax
import jax.numpy as jnp
from jax.experimental import pallas as pl
from jax.experimental.pallas import tpu as pltpu


# ----------------------------- in-kernel helpers -------------------------------

def _layer_norm(x, gamma, beta, eps=1e-5):
    mean = jnp.mean(x, axis=-1, keepdims=True)
    var = jnp.mean((x - mean) ** 2, axis=-1, keepdims=True)
    return (x - mean) * jax.lax.rsqrt(var + eps) * gamma + beta


def _mm(a, w):
    """bf16 x bf16 MXU matmul with f32 accumulation."""
    return jnp.dot(a.astype(jnp.bfloat16), w.astype(jnp.bfloat16),
                   preferred_element_type=jnp.float32)


def _nt_mm(a, b):
    """a @ b.T (contract last dims) on the MXU, f32 accumulation."""
    return jax.lax.dot_general(
        a.astype(jnp.bfloat16), b.astype(jnp.bfloat16),
        (((1,), (1,)), ((), ())), preferred_element_type=jnp.float32)


# ----------------------------- fused kernel ------------------------------------

def fused_forward_kernel(x_ref, conv_w_ref, conv_b_ref, in_w_ref, in_b_ref,
                         qkv_w_ref, qkv_b_ref, wo_ref, bo_ref,
                         ln1_g_ref, ln1_b_ref, w1_ref, b1_ref, w2_ref, b2_ref,
                         ln2_g_ref, ln2_b_ref, out_w_ref, out_b_ref,
                         out_ref, *, n_layers, n_head, d_k, d_v, b_blk, seq_len):
    M = seq_len                              # n_multiv (encoder sequence length)
    hq = n_head * d_k
    hv = n_head * d_v

    # All position-wise math runs on the merged (b_blk * M, .) row block.
    x = x_ref[...]                                                   # (R, W) f32
    # Conv2d(1, K, (window, 1)) + ReLU  ==  (R, W) @ (W, K) matmul + ReLU.
    feat = jnp.maximum(_mm(x, conv_w_ref[...]) + conv_b_ref[...], 0.0)
    # TODO(synk): dropout layers are identity (inference / eval mode).
    h = _mm(feat, in_w_ref[...]) + in_b_ref[...]                     # in_linear -> (R, D) f32

    def layer_body(l, h):
        # ---------------- multi-head self-attention (fused QKV projection) -------
        qkv = _mm(h, qkv_w_ref[l]) + qkv_b_ref[l]                    # (R, 2*hq + hv) f32
        # Slice Q/K/V once as three contiguous hq/hv-lane blocks (aligned, wide).
        q = qkv[:, :hq]
        k = qkv[:, hq:2 * hq]
        v = qkv[:, 2 * hq:2 * hq + hv]

        ctx_rows = []
        for b in range(b_blk):                                       # short static batch loop
            r0 = b * M
            qb = q[r0:r0 + M]
            kb = k[r0:r0 + M]
            vb = v[r0:r0 + M]
            head_ctx = []
            for hd in range(n_head):                                 # short static head loop
                c0 = hd * d_k
                s = _nt_mm(qb[:, c0:c0 + d_k], kb[:, c0:c0 + d_k])   # (M, M); 1/sqrt(d_k) in Wq
                s = s - jnp.max(s, axis=-1, keepdims=True)
                e = jnp.exp(s)
                p = e * pl.reciprocal(jnp.sum(e, axis=-1, keepdims=True), approx=True)
                head_ctx.append(_mm(p, vb[:, hd * d_v:(hd + 1) * d_v]))   # (M, d_v)
            ctx_b = head_ctx[0] if n_head == 1 else jnp.concatenate(head_ctx, axis=-1)
            ctx_rows.append(ctx_b)                                   # (M, hv)
        ctx = ctx_rows[0] if b_blk == 1 else jnp.concatenate(ctx_rows, axis=0)   # (R, hv)

        # Single (R, hv) @ (hv, D) output-projection matmul (no per-head accumulation).
        attn = _mm(ctx, wo_ref[l]) + bo_ref[l]                       # (R, D)
        h = _layer_norm(attn + h, ln1_g_ref[l], ln1_b_ref[l])

        # ---------------- position-wise FFN (two 1x1 convs == linears) -----------
        h1 = jnp.maximum(_mm(h, w1_ref[l]) + b1_ref[l], 0.0)
        o = _mm(h1, w2_ref[l]) + b2_ref[l]
        h = _layer_norm(o + h, ln2_g_ref[l], ln2_b_ref[l])
        return h

    h = jax.lax.fori_loop(0, n_layers, layer_body, h, unroll=True)

    # out_linear; one wide slab store per grid step.
    out_ref[...] = _mm(h, out_w_ref[...]) + out_b_ref[...]           # (R, K)


# ----------------------------- pallas wrapper -----------------------------------

def _choose_batch_block(batch, seq_len, target_rows=128):
    """Pick batches-per-grid-step: fill ~target_rows rows per step, prefer even grid on v7x."""
    b_blk = max(1, min(batch, max(1, target_rows // max(seq_len, 1))))
    while batch % b_blk:
        b_blk -= 1
    n_blocks = batch // b_blk
    if n_blocks > 1 and n_blocks % 2 == 1 and b_blk % 2 == 0:
        b_blk //= 2                       # make grid extent even (v7x has 2 TensorCores)
        n_blocks = batch // b_blk
    return b_blk, n_blocks


def single_global_selfattn_forward(params, x, *, n_head, d_k, d_v, n_layers):
    B, W, M = x.shape
    d_model = params['in_w'].shape[1]
    n_kernels = params['out_w'].shape[1]
    d_inner = params['w1'].shape[2]
    hq, hv = n_head * d_k, n_head * d_v

    b_blk, n_blocks = _choose_batch_block(B, M)
    rows_blk = b_blk * M

    # Layout plumbing once, outside the kernel: (B, W, M) -> (B, M, W) -> (B*M, W) so every
    # position-wise contraction runs as a plain row-major MXU matmul over merged batch rows.
    x_rows = jnp.transpose(x, (0, 2, 1)).reshape(B * M, W)

    inputs = (x_rows,
              params['conv_w'], params['conv_b'], params['in_w'], params['in_b'],
              params['qkv_w'], params['qkv_b'], params['wo'], params['bo'],
              params['ln1_g'], params['ln1_b'], params['w1'], params['b1'],
              params['w2'], params['b2'], params['ln2_g'], params['ln2_b'],
              params['out_w'], params['out_b'])

    def _weight_spec(a):
        nd = a.ndim
        # Constant block index across the grid -> single-buffer (no wasted VMEM on
        # double-buffering weights that never change).
        return pl.BlockSpec(a.shape, lambda i, _nd=nd: (0,) * _nd,
                            pipeline_mode=pl.Buffered(1))

    in_specs = [pl.BlockSpec((rows_blk, W), lambda i: (i, 0))]
    in_specs += [_weight_spec(a) for a in inputs[1:]]
    out_spec = pl.BlockSpec((rows_blk, n_kernels), lambda i: (i, 0))

    # Explicit scoped-VMEM limit: weights (single-buffered) + activation working set, clamped.
    weight_bytes = sum(int(a.size) * a.dtype.itemsize for a in inputs[1:])
    act_bytes = 4 * rows_blk * (W + 2 * n_kernels + 6 * d_model + d_inner
                                + 2 * (2 * hq + hv)) + 4 * n_head * M * M
    vmem_limit = int(min(64 << 20, max(16 << 20, 4 * (weight_bytes + act_bytes))))

    # Advisory cost estimate so XLA schedules the fused custom call sensibly.
    flops_per_b = (2 * M * W * n_kernels + 2 * M * n_kernels * d_model
                   + n_layers * (2 * M * d_model * (2 * hq + hv)
                                 + n_head * (2 * M * M * d_k + 2 * M * M * d_v)
                                 + 2 * M * hv * d_model
                                 + 4 * M * d_model * d_inner)
                   + 2 * M * d_model * n_kernels)
    bytes_accessed = int(sum(int(a.size) * a.dtype.itemsize for a in inputs)
                         + B * M * n_kernels * 4)
    cost = pl.CostEstimate(flops=int(B * flops_per_b),
                           transcendentals=int(B * n_layers * n_head * M * M),
                           bytes_accessed=bytes_accessed)

    kernel = functools.partial(fused_forward_kernel, n_layers=n_layers, n_head=n_head,
                               d_k=d_k, d_v=d_v, b_blk=b_blk, seq_len=M)
    out = pl.pallas_call(
        kernel,
        out_shape=jax.ShapeDtypeStruct((B * M, n_kernels), jnp.float32),
        grid=(n_blocks,),
        in_specs=in_specs,
        out_specs=out_spec,
        compiler_params=pltpu.CompilerParams(
            dimension_semantics=("parallel",),
            vmem_limit_bytes=vmem_limit),
        cost_estimate=cost,
    )(*inputs)
    return (out.reshape(B, M, n_kernels),)


# ----------------------------- parameter init -----------------------------------

def init_params(key, *, window, n_multiv, n_kernels, w_kernel, d_k, d_v,
                d_model, d_inner, n_layers, n_head):
    assert w_kernel == 1
    del n_multiv

    def dense(k, shape, scale=0.05):
        return (scale * jax.random.normal(k, shape)).astype(jnp.float32)

    hq, hv = n_head * d_k, n_head * d_v
    inv_temp = 1.0 / (float(d_k) ** 0.5)
    keys = jax.random.split(key, 6 + n_layers)

    # Matmul weights are stored pre-transposed to (in, out) and cast to bf16;
    # biases / LayerNorm parameters stay float32.
    params = {
        # Conv2d(1, K, (window, 1)) weight -> (window, n_kernels) matmul operand.
        'conv_w': dense(keys[0], (window, n_kernels)).astype(jnp.bfloat16),
        'conv_b': dense(keys[1], (1, n_kernels)),
        'in_w':  dense(keys[2], (n_kernels, d_model)).astype(jnp.bfloat16),
        'in_b':  dense(keys[3], (1, d_model)),
        'out_w': dense(keys[4], (d_model, n_kernels)).astype(jnp.bfloat16),
        'out_b': dense(keys[5], (1, n_kernels)),
    }

    qkv_w, qkv_b, wo, bo = [], [], [], []
    ln1_g, ln1_b, w1, b1, w2, b2, ln2_g, ln2_b = ([] for _ in range(8))
    for i in range(n_layers):
        lk = jax.random.split(keys[6 + i], 10)
        wq = dense(lk[0], (d_model, hq)) * inv_temp      # fold 1/sqrt(d_k) into Wq ...
        bq = dense(lk[1], (1, hq)) * inv_temp            # ... and into its bias
        wk = dense(lk[2], (d_model, hq))
        bk = dense(lk[3], (1, hq))
        wv = dense(lk[4], (d_model, hv))
        bv = dense(lk[5], (1, hv))
        qkv_w.append(jnp.concatenate([wq, wk, wv], axis=1))   # (D, 2*hq + hv)
        qkv_b.append(jnp.concatenate([bq, bk, bv], axis=1))   # (1, 2*hq + hv)
        wo.append(dense(lk[6], (hv, d_model)))
        bo.append(dense(lk[7], (1, d_model)))
        ln1_g.append(jnp.ones((1, d_model), jnp.float32))
        ln1_b.append(jnp.zeros((1, d_model), jnp.float32))
        w1.append(dense(lk[8], (d_model, d_inner)))
        b1.append(jnp.zeros((1, d_inner), jnp.float32))
        w2.append(dense(lk[9], (d_inner, d_model)))
        b2.append(jnp.zeros((1, d_model), jnp.float32))
        ln2_g.append(jnp.ones((1, d_model), jnp.float32))
        ln2_b.append(jnp.zeros((1, d_model), jnp.float32))

    params.update(
        qkv_w=jnp.stack(qkv_w).astype(jnp.bfloat16),    # (L, D, 2*hq+hv)
        qkv_b=jnp.stack(qkv_b),                         # (L, 1, 2*hq+hv)
        wo=jnp.stack(wo).astype(jnp.bfloat16),          # (L, hv, D)
        bo=jnp.stack(bo),                               # (L, 1, D)
        ln1_g=jnp.stack(ln1_g), ln1_b=jnp.stack(ln1_b),
        w1=jnp.stack(w1).astype(jnp.bfloat16), b1=jnp.stack(b1),
        w2=jnp.stack(w2).astype(jnp.bfloat16), b2=jnp.stack(b2),
        ln2_g=jnp.stack(ln2_g), ln2_b=jnp.stack(ln2_b),
    )
    return params


# ----------------------------- main ----------------------------------------------

if __name__ == "__main__":
    # Small, shape-consistent config.
    window, n_multiv, n_kernels, w_kernel = 8, 16, 32, 1
    n_head, d_k, d_v = 4, 8, 8
    d_model, d_inner, n_layers = 32, 64, 2
    batch = 2

    key = jax.random.PRNGKey(0)
    pkey, xkey = jax.random.split(key)
    params = init_params(pkey, window=window, n_multiv=n_multiv, n_kernels=n_kernels,
                         w_kernel=w_kernel, d_k=d_k, d_v=d_v, d_model=d_model,
                         d_inner=d_inner, n_layers=n_layers, n_head=n_head)

    # Input: (B, window, n_multiv)  (== PyTorch (B, 1, window, n_multiv) with channel squeezed)
    x = jax.random.normal(xkey, (batch, window, n_multiv), dtype=jnp.float32)

    fwd = jax.jit(functools.partial(single_global_selfattn_forward,
                                    n_head=n_head, d_k=d_k, d_v=d_v, n_layers=n_layers))
    (out,) = fwd(params, x)
    out = jax.block_until_ready(out)

    assert out.shape == (batch, n_multiv, n_kernels), out.shape
    assert bool(jnp.all(jnp.isfinite(out)))
    print("KERNEL_OK")
</pallas_src>

<mosaic_0001>
module attributes {stable_mosaic.version = 11 : i64} {
  func.func @fused_forward_kernel(%arg0: i32, %arg1: memref<32x8xf32, #tpu.memory_space<vmem>>, %arg2: memref<8x32xbf16, #tpu.memory_space<vmem>>, %arg3: memref<1x32xf32, #tpu.memory_space<vmem>>, %arg4: memref<32x32xbf16, #tpu.memory_space<vmem>>, %arg5: memref<1x32xf32, #tpu.memory_space<vmem>>, %arg6: memref<2x32x96xbf16, #tpu.memory_space<vmem>>, %arg7: memref<2x1x96xf32, #tpu.memory_space<vmem>>, %arg8: memref<2x32x32xbf16, #tpu.memory_space<vmem>>, %arg9: memref<2x1x32xf32, #tpu.memory_space<vmem>>, %arg10: memref<2x1x32xf32, #tpu.memory_space<vmem>>, %arg11: memref<2x1x32xf32, #tpu.memory_space<vmem>>, %arg12: memref<2x32x64xbf16, #tpu.memory_space<vmem>>, %arg13: memref<2x1x64xf32, #tpu.memory_space<vmem>>, %arg14: memref<2x64x32xbf16, #tpu.memory_space<vmem>>, %arg15: memref<2x1x32xf32, #tpu.memory_space<vmem>>, %arg16: memref<2x1x32xf32, #tpu.memory_space<vmem>>, %arg17: memref<2x1x32xf32, #tpu.memory_space<vmem>>, %arg18: memref<32x32xbf16, #tpu.memory_space<vmem>>, %arg19: memref<1x32xf32, #tpu.memory_space<vmem>>, %arg20: memref<32x32xf32, #tpu.memory_space<vmem>>) attributes {dimension_semantics = [#tpu.dimension_semantics<parallel>], iteration_bounds = array<i64: 1>, scalar_prefetch = 0 : i64, scratch_operands = 0 : i64, tpu.core_type = #tpu.core_type<tc>, window_params = [{transform_indices = @transform_0, window_bounds = array<i64: 32, 8>}, {pipeline_mode = #tpu.pipeline_mode<synchronous>, transform_indices = @transform_1, window_bounds = array<i64: 8, 32>}, {pipeline_mode = #tpu.pipeline_mode<synchronous>, transform_indices = @transform_2, window_bounds = array<i64: 1, 32>}, {pipeline_mode = #tpu.pipeline_mode<synchronous>, transform_indices = @transform_3, window_bounds = array<i64: 32, 32>}, {pipeline_mode = #tpu.pipeline_mode<synchronous>, transform_indices = @transform_4, window_bounds = array<i64: 1, 32>}, {pipeline_mode = #tpu.pipeline_mode<synchronous>, transform_indices = @transform_5, window_bounds = array<i64: 2, 32, 96>}, {pipeline_mode = #tpu.pipeline_mode<synchronous>, transform_indices = @transform_6, window_bounds = array<i64: 2, 1, 96>}, {pipeline_mode = #tpu.pipeline_mode<synchronous>, transform_indices = @transform_7, window_bounds = array<i64: 2, 32, 32>}, {pipeline_mode = #tpu.pipeline_mode<synchronous>, transform_indices = @transform_8, window_bounds = array<i64: 2, 1, 32>}, {pipeline_mode = #tpu.pipeline_mode<synchronous>, transform_indices = @transform_9, window_bounds = array<i64: 2, 1, 32>}, {pipeline_mode = #tpu.pipeline_mode<synchronous>, transform_indices = @transform_10, window_bounds = array<i64: 2, 1, 32>}, {pipeline_mode = #tpu.pipeline_mode<synchronous>, transform_indices = @transform_11, window_bounds = array<i64: 2, 32, 64>}, {pipeline_mode = #tpu.pipeline_mode<synchronous>, transform_indices = @transform_12, window_bounds = array<i64: 2, 1, 64>}, {pipeline_mode = #tpu.pipeline_mode<synchronous>, transform_indices = @transform_13, window_bounds = array<i64: 2, 64, 32>}, {pipeline_mode = #tpu.pipeline_mode<synchronous>, transform_indices = @transform_14, window_bounds = array<i64: 2, 1, 32>}, {pipeline_mode = #tpu.pipeline_mode<synchronous>, transform_indices = @transform_15, window_bounds = array<i64: 2, 1, 32>}, {pipeline_mode = #tpu.pipeline_mode<synchronous>, transform_indices = @transform_16, window_bounds = array<i64: 2, 1, 32>}, {pipeline_mode = #tpu.pipeline_mode<synchronous>, transform_indices = @transform_17, window_bounds = array<i64: 32, 32>}, {pipeline_mode = #tpu.pipeline_mode<synchronous>, transform_indices = @transform_18, window_bounds = array<i64: 1, 32>}, {transform_indices = @transform_19, window_bounds = array<i64: 32, 32>}]} {
    %c0 = arith.constant 0 : index
    %c0_0 = arith.constant 0 : index
    %0 = vector.load %arg1[%c0, %c0_0] : memref<32x8xf32, #tpu.memory_space<vmem>>, vector<32x8xf32>
    %c0_1 = arith.constant 0 : index
    %c0_2 = arith.constant 0 : index
    %1 = vector.load %arg2[%c0_1, %c0_2] : memref<8x32xbf16, #tpu.memory_space<vmem>>, vector<8x32xbf16>
    %2 = arith.truncf %0 : vector<32x8xf32> to vector<32x8xbf16>
    %cst = arith.constant dense<0.000000e+00> : vector<32x32xf32>
    %3 = tpu.matmul %2, %1, %cst {dimension_numbers = #tpu.dot_dimension_numbers<[1], [0], [0], [1], [0, 0, 1, 1], [], []>} : vector<32x8xbf16>, vector<8x32xbf16>, vector<32x32xf32> -> vector<32x32xf32>
    %c0_3 = arith.constant 0 : index
    %c0_4 = arith.constant 0 : index
    %4 = vector.load %arg3[%c0_3, %c0_4] : memref<1x32xf32, #tpu.memory_space<vmem>>, vector<1x32xf32>
    %5 = vector.broadcast %4 : vector<1x32xf32> to vector<32x32xf32>
    %6 = arith.addf %3, %5 : vector<32x32xf32>
    %cst_5 = arith.constant 0.000000e+00 : f32
    %7 = vector.broadcast %cst_5 : f32 to vector<32x32xf32>
    %8 = arith.maximumf %6, %7 : vector<32x32xf32>
    %c0_6 = arith.constant 0 : index
    %c0_7 = arith.constant 0 : index
    %9 = vector.load %arg4[%c0_6, %c0_7] : memref<32x32xbf16, #tpu.memory_space<vmem>>, vector<32x32xbf16>
    %10 = arith.truncf %8 : vector<32x32xf32> to vector<32x32xbf16>
    %cst_8 = arith.constant dense<0.000000e+00> : vector<32x32xf32>
    %11 = tpu.matmul %10, %9, %cst_8 {dimension_numbers = #tpu.dot_dimension_numbers<[1], [0], [0], [1], [0, 0, 1, 1], [], []>} : vector<32x32xbf16>, vector<32x32xbf16>, vector<32x32xf32> -> vector<32x32xf32>
    %c0_9 = arith.constant 0 : index
    %c0_10 = arith.constant 0 : index
    %12 = vector.load %arg5[%c0_9, %c0_10] : memref<1x32xf32, #tpu.memory_space<vmem>>, vector<1x32xf32>
    %13 = vector.broadcast %12 : vector<1x32xf32> to vector<32x32xf32>
    %14 = arith.addf %11, %13 : vector<32x32xf32>
    %c0_i32 = arith.constant 0 : i32
    %15 = arith.index_cast %c0_i32 : i32 to index
    %c0_11 = arith.constant 0 : index
    %c0_12 = arith.constant 0 : index
    %16 = vector.load %arg6[%15, %c0_11, %c0_12] : memref<2x32x96xbf16, #tpu.memory_space<vmem>>, vector<1x32x96xbf16>
    %17 = vector.shape_cast %16 : vector<1x32x96xbf16> to vector<32x96xbf16>
    %18 = arith.truncf %14 : vector<32x32xf32> to vector<32x32xbf16>
    %cst_13 = arith.constant dense<0.000000e+00> : vector<32x96xf32>
    %19 = tpu.matmul %18, %17, %cst_13 {dimension_numbers = #tpu.dot_dimension_numbers<[1], [0], [0], [1], [0, 0, 1, 1], [], []>} : vector<32x32xbf16>, vector<32x96xbf16>, vector<32x96xf32> -> vector<32x96xf32>
    %20 = arith.index_cast %c0_i32 : i32 to index
    %c0_14 = arith.constant 0 : index
    %c0_15 = arith.constant 0 : index
    %21 = vector.load %arg7[%20, %c0_14, %c0_15] : memref<2x1x96xf32, #tpu.memory_space<vmem>>, vector<1x1x96xf32>
    %22 = vector.shape_cast %21 : vector<1x1x96xf32> to vector<1x96xf32>
    %23 = vector.broadcast %22 : vector<1x96xf32> to vector<32x96xf32>
    %24 = arith.addf %19, %23 : vector<32x96xf32>
    %25 = vector.extract_strided_slice %24 {offsets = [0, 0], sizes = [32, 32], strides = [1, 1]} : vector<32x96xf32> to vector<32x32xf32>
    %26 = vector.extract_strided_slice %24 {offsets = [0, 32], sizes = [32, 32], strides = [1, 1]} : vector<32x96xf32> to vector<32x32xf32>
    %27 = vector.extract_strided_slice %24 {offsets = [0, 64], sizes = [32, 32], strides = [1, 1]} : vector<32x96xf32> to vector<32x32xf32>
    %28 = vector.extract_strided_slice %25 {offsets = [0, 0], sizes = [16, 32], strides = [1, 1]} : vector<32x32xf32> to vector<16x32xf32>
    %29 = vector.extract_strided_slice %26 {offsets = [0, 0], sizes = [16, 32], strides = [1, 1]} : vector<32x32xf32> to vector<16x32xf32>
    %30 = vector.extract_strided_slice %27 {offsets = [0, 0], sizes = [16, 32], strides = [1, 1]} : vector<32x32xf32> to vector<16x32xf32>
    %31 = vector.extract_strided_slice %28 {offsets = [0, 0], sizes = [16, 8], strides = [1, 1]} : vector<16x32xf32> to vector<16x8xf32>
    %32 = vector.extract_strided_slice %29 {offsets = [0, 0], sizes = [16, 8], strides = [1, 1]} : vector<16x32xf32> to vector<16x8xf32>
    %33 = arith.truncf %31 : vector<16x8xf32> to vector<16x8xbf16>
    %34 = arith.truncf %32 : vector<16x8xf32> to vector<16x8xbf16>
    %cst_16 = arith.constant dense<0.000000e+00> : vector<16x16xf32>
    %35 = tpu.matmul %33, %34, %cst_16 {dimension_numbers = #tpu.dot_dimension_numbers<[1], [1], [0], [0], [0, 0, 1, 0], [], []>} : vector<16x8xbf16>, vector<16x8xbf16>, vector<16x16xf32> -> vector<16x16xf32>
    %cst_17 = arith.constant dense<0xFF800000> : vector<16xf32>
    %36 = vector.multi_reduction <maximumf>, %35, %cst_17 [1] : vector<16x16xf32> to vector<16xf32>
    %37 = vector.shape_cast %36 : vector<16xf32> to vector<16x1xf32>
    %38 = vector.broadcast %37 : vector<16x1xf32> to vector<16x16xf32>
    %39 = arith.subf %35, %38 : vector<16x16xf32>
    %40 = math.exp %39 : vector<16x16xf32>
    %cst_18 = arith.constant dense<0.000000e+00> : vector<16xf32>
    %41 = vector.multi_reduction <add>, %40, %cst_18 [1] : vector<16x16xf32> to vector<16xf32>
    %42 = vector.shape_cast %41 : vector<16xf32> to vector<16x1xf32>
    %43 = tpu.reciprocal %42 {approx = true} : vector<16x1xf32> -> vector<16x1xf32>
    %44 = vector.broadcast %43 : vector<16x1xf32> to vector<16x16xf32>
    %45 = arith.mulf %40, %44 : vector<16x16xf32>
    %46 = vector.extract_strided_slice %30 {offsets = [0, 0], sizes = [16, 8], strides = [1, 1]} : vector<16x32xf32> to vector<16x8xf32>
    %47 = arith.truncf %45 : vector<16x16xf32> to vector<16x16xbf16>
    %48 = arith.truncf %46 : vector<16x8xf32> to vector<16x8xbf16>
    %cst_19 = arith.constant dense<0.000000e+00> : vector<16x8xf32>
    %49 = tpu.matmul %47, %48, %cst_19 {dimension_numbers = #tpu.dot_dimension_numbers<[1], [0], [0], [1], [0, 0, 1, 1], [], []>} : vector<16x16xbf16>, vector<16x8xbf16>, vector<16x8xf32> -> vector<16x8xf32>
    %50 = vector.extract_strided_slice %28 {offsets = [0, 8], sizes = [16, 8], strides = [1, 1]} : vector<16x32xf32> to vector<16x8xf32>
    %51 = vector.extract_strided_slice %29 {offsets = [0, 8], sizes = [16, 8], strides = [1, 1]} : vector<16x32xf32> to vector<16x8xf32>
    %52 = arith.truncf %50 : vector<16x8xf32> to vector<16x8xbf16>
    %53 = arith.truncf %51 : vector<16x8xf32> to vector<16x8xbf16>
    %cst_20 = arith.constant dense<0.000000e+00> : vector<16x16xf32>
    %54 = tpu.matmul %52, %53, %cst_20 {dimension_numbers = #tpu.dot_dimension_numbers<[1], [1], [0], [0], [0, 0, 1, 0], [], []>} : vector<16x8xbf16>, vector<16x8xbf16>, vector<16x16xf32> -> vector<16x16xf32>
    %cst_21 = arith.constant dense<0xFF800000> : vector<16xf32>
    %55 = vector.multi_reduction <maximumf>, %54, %cst_21 [1] : vector<16x16xf32> to vector<16xf32>
    %56 = vector.shape_cast %55 : vector<16xf32> to vector<16x1xf32>
    %57 = vector.broadcast %56 : vector<16x1xf32> to vector<16x16xf32>
    %58 = arith.subf %54, %57 : vector<16x16xf32>
    %59 = math.exp %58 : vector<16x16xf32>
    %cst_22 = arith.constant dense<0.000000e+00> : vector<16xf32>
    %60 = vector.multi_reduction <add>, %59, %cst_22 [1] : vector<16x16xf32> to vector<16xf32>
    %61 = vector.shape_cast %60 : vector<16xf32> to vector<16x1xf32>
    %62 = tpu.reciprocal %61 {approx = true} : vector<16x1xf32> -> vector<16x1xf32>
    %63 = vector.broadcast %62 : vector<16x1xf32> to vector<16x16xf32>
    %64 = arith.mulf %59, %63 : vector<16x16xf32>
    %65 = vector.extract_strided_slice %30 {offsets = [0, 8], sizes = [16, 8], strides = [1, 1]} : vector<16x32xf32> to vector<16x8xf32>
    %66 = arith.truncf %64 : vector<16x16xf32> to vector<16x16xbf16>
    %67 = arith.truncf %65 : vector<16x8xf32> to vector<16x8xbf16>
    %cst_23 = arith.constant dense<0.000000e+00> : vector<16x8xf32>
    %68 = tpu.matmul %66, %67, %cst_23 {dimension_numbers = #tpu.dot_dimension_numbers<[1], [0], [0], [1], [0, 0, 1, 1], [], []>} : vector<16x16xbf16>, vector<16x8xbf16>, vector<16x8xf32> -> vector<16x8xf32>
    %69 = vector.extract_strided_slice %28 {offsets = [0, 16], sizes = [16, 8], strides = [1, 1]} : vector<16x32xf32> to vector<16x8xf32>
    %70 = vector.extract_strided_slice %29 {offsets = [0, 16], sizes = [16, 8], strides = [1, 1]} : vector<16x32xf32> to vector<16x8xf32>
    %71 = arith.truncf %69 : vector<16x8xf32> to vector<16x8xbf16>
    %72 = arith.truncf %70 : vector<16x8xf32> to vector<16x8xbf16>
    %cst_24 = arith.constant dense<0.000000e+00> : vector<16x16xf32>
    %73 = tpu.matmul %71, %72, %cst_24 {dimension_numbers = #tpu.dot_dimension_numbers<[1], [1], [0], [0], [0, 0, 1, 0], [], []>} : vector<16x8xbf16>, vector<16x8xbf16>, vector<16x16xf32> -> vector<16x16xf32>
    %cst_25 = arith.constant dense<0xFF800000> : vector<16xf32>
    %74 = vector.multi_reduction <maximumf>, %73, %cst_25 [1] : vector<16x16xf32> to vector<16xf32>
    %75 = vector.shape_cast %74 : vector<16xf32> to vector<16x1xf32>
    %76 = vector.broadcast %75 : vector<16x1xf32> to vector<16x16xf32>
    %77 = arith.subf %73, %76 : vector<16x16xf32>
    %78 = math.exp %77 : vector<16x16xf32>
    %cst_26 = arith.constant dense<0.000000e+00> : vector<16xf32>
    %79 = vector.multi_reduction <add>, %78, %cst_26 [1] : vector<16x16xf32> to vector<16xf32>
    %80 = vector.shape_cast %79 : vector<16xf32> to vector<16x1xf32>
    %81 = tpu.reciprocal %80 {approx = true} : vector<16x1xf32> -> vector<16x1xf32>
    %82 = vector.broadcast %81 : vector<16x1xf32> to vector<16x16xf32>
    %83 = arith.mulf %78, %82 : vector<16x16xf32>
    %84 = vector.extract_strided_slice %30 {offsets = [0, 16], sizes = [16, 8], strides = [1, 1]} : vector<16x32xf32> to vector<16x8xf32>
    %85 = arith.truncf %83 : vector<16x16xf32> to vector<16x16xbf16>
    %86 = arith.truncf %84 : vector<16x8xf32> to vector<16x8xbf16>
    %cst_27 = arith.constant dense<0.000000e+00> : vector<16x8xf32>
    %87 = tpu.matmul %85, %86, %cst_27 {dimension_numbers = #tpu.dot_dimension_numbers<[1], [0], [0], [1], [0, 0, 1, 1], [], []>} : vector<16x16xbf16>, vector<16x8xbf16>, vector<16x8xf32> -> vector<16x8xf32>
    %88 = vector.extract_strided_slice %28 {offsets = [0, 24], sizes = [16, 8], strides = [1, 1]} : vector<16x32xf32> to vector<16x8xf32>
    %89 = vector.extract_strided_slice %29 {offsets = [0, 24], sizes = [16, 8], strides = [1, 1]} : vector<16x32xf32> to vector<16x8xf32>
    %90 = arith.truncf %88 : vector<16x8xf32> to vector<16x8xbf16>
    %91 = arith.truncf %89 : vector<16x8xf32> to vector<16x8xbf16>
    %cst_28 = arith.constant dense<0.000000e+00> : vector<16x16xf32>
    %92 = tpu.matmul %90, %91, %cst_28 {dimension_numbers = #tpu.dot_dimension_numbers<[1], [1], [0], [0], [0, 0, 1, 0], [], []>} : vector<16x8xbf16>, vector<16x8xbf16>, vector<16x16xf32> -> vector<16x16xf32>
    %cst_29 = arith.constant dense<0xFF800000> : vector<16xf32>
    %93 = vector.multi_reduction <maximumf>, %92, %cst_29 [1] : vector<16x16xf32> to vector<16xf32>
    %94 = vector.shape_cast %93 : vector<16xf32> to vector<16x1xf32>
    %95 = vector.broadcast %94 : vector<16x1xf32> to vector<16x16xf32>
    %96 = arith.subf %92, %95 : vector<16x16xf32>
    %97 = math.exp %96 : vector<16x16xf32>
    %cst_30 = arith.constant dense<0.000000e+00> : vector<16xf32>
    %98 = vector.multi_reduction <add>, %97, %cst_30 [1] : vector<16x16xf32> to vector<16xf32>
    %99 = vector.shape_cast %98 : vector<16xf32> to vector<16x1xf32>
    %100 = tpu.reciprocal %99 {approx = true} : vector<16x1xf32> -> vector<16x1xf32>
    %101 = vector.broadcast %100 : vector<16x1xf32> to vector<16x16xf32>
    %102 = arith.mulf %97, %101 : vector<16x16xf32>
    %103 = vector.extract_strided_slice %30 {offsets = [0, 24], sizes = [16, 8], strides = [1, 1]} : vector<16x32xf32> to vector<16x8xf32>
    %104 = arith.truncf %102 : vector<16x16xf32> to vector<16x16xbf16>
    %105 = arith.truncf %103 : vector<16x8xf32> to vector<16x8xbf16>
    %cst_31 = arith.constant dense<0.000000e+00> : vector<16x8xf32>
    %106 = tpu.matmul %104, %105, %cst_31 {dimension_numbers = #tpu.dot_dimension_numbers<[1], [0], [0], [1], [0, 0, 1, 1], [], []>} : vector<16x16xbf16>, vector<16x8xbf16>, vector<16x8xf32> -> vector<16x8xf32>
    %107 = tpu.concatenate %49, %68, %87, %106 in 1 : vector<16x8xf32>, vector<16x8xf32>, vector<16x8xf32>, vector<16x8xf32> -> vector<16x32xf32>
    %108 = vector.extract_strided_slice %25 {offsets = [16, 0], sizes = [16, 32], strides = [1, 1]} : vector<32x32xf32> to vector<16x32xf32>
    %109 = vector.extract_strided_slice %26 {offsets = [16, 0], sizes = [16, 32], strides = [1, 1]} : vector<32x32xf32> to vector<16x32xf32>
    %110 = vector.extract_strided_slice %27 {offsets = [16, 0], sizes = [16, 32], strides = [1, 1]} : vector<32x32xf32> to vector<16x32xf32>
    %111 = vector.extract_strided_slice %108 {offsets = [0, 0], sizes = [16, 8], strides = [1, 1]} : vector<16x32xf32> to vector<16x8xf32>
    %112 = vector.extract_strided_slice %109 {offsets = [0, 0], sizes = [16, 8], strides = [1, 1]} : vector<16x32xf32> to vector<16x8xf32>
    %113 = arith.truncf %111 : vector<16x8xf32> to vector<16x8xbf16>
    %114 = arith.truncf %112 : vector<16x8xf32> to vector<16x8xbf16>
    %cst_32 = arith.constant dense<0.000000e+00> : vector<16x16xf32>
    %115 = tpu.matmul %113, %114, %cst_32 {dimension_numbers = #tpu.dot_dimension_numbers<[1], [1], [0], [0], [0, 0, 1, 0], [], []>} : vector<16x8xbf16>, vector<16x8xbf16>, vector<16x16xf32> -> vector<16x16xf32>
    %cst_33 = arith.constant dense<0xFF800000> : vector<16xf32>
    %116 = vector.multi_reduction <maximumf>, %115, %cst_33 [1] : vector<16x16xf32> to vector<16xf32>
    %117 = vector.shape_cast %116 : vector<16xf32> to vector<16x1xf32>
    %118 = vector.broadcast %117 : vector<16x1xf32> to vector<16x16xf32>
    %119 = arith.subf %115, %118 : vector<16x16xf32>
    %120 = math.exp %119 : vector<16x16xf32>
    %cst_34 = arith.constant dense<0.000000e+00> : vector<16xf32>
    %121 = vector.multi_reduction <add>, %120, %cst_34 [1] : vector<16x16xf32> to vector<16xf32>
    %122 = vector.shape_cast %121 : vector<16xf32> to vector<16x1xf32>
    %123 = tpu.reciprocal %122 {approx = true} : vector<16x1xf32> -> vector<16x1xf32>
    %124 = vector.broadcast %123 : vector<16x1xf32> to vector<16x16xf32>
    %125 = arith.mulf %120, %124 : vector<16x16xf32>
    %126 = vector.extract_strided_slice %110 {offsets = [0, 0], sizes = [16, 8], strides = [1, 1]} : vector<16x32xf32> to vector<16x8xf32>
    %127 = arith.truncf %125 : vector<16x16xf32> to vector<16x16xbf16>
    %128 = arith.truncf %126 : vector<16x8xf32> to vector<16x8xbf16>
    %cst_35 = arith.constant dense<0.000000e+00> : vector<16x8xf32>
    %129 = tpu.matmul %127, %128, %cst_35 {dimension_numbers = #tpu.dot_dimension_numbers<[1], [0], [0], [1], [0, 0, 1, 1], [], []>} : vector<16x16xbf16>, vector<16x8xbf16>, vector<16x8xf32> -> vector<16x8xf32>
    %130 = vector.extract_strided_slice %108 {offsets = [0, 8], sizes = [16, 8], strides = [1, 1]} : vector<16x32xf32> to vector<16x8xf32>
    %131 = vector.extract_strided_slice %109 {offsets = [0, 8], sizes = [16, 8], strides = [1, 1]} : vector<16x32xf32> to vector<16x8xf32>
    %132 = arith.truncf %130 : vector<16x8xf32> to vector<16x8xbf16>
    %133 = arith.truncf %131 : vector<16x8xf32> to vector<16x8xbf16>
    %cst_36 = arith.constant dense<0.000000e+00> : vector<16x16xf32>
    %134 = tpu.matmul %132, %133, %cst_36 {dimension_numbers = #tpu.dot_dimension_numbers<[1], [1], [0], [0], [0, 0, 1, 0], [], []>} : vector<16x8xbf16>, vector<16x8xbf16>, vector<16x16xf32> -> vector<16x16xf32>
    %cst_37 = arith.constant dense<0xFF800000> : vector<16xf32>
    %135 = vector.multi_reduction <maximumf>, %134, %cst_37 [1] : vector<16x16xf32> to vector<16xf32>
    %136 = vector.shape_cast %135 : vector<16xf32> to vector<16x1xf32>
    %137 = vector.broadcast %136 : vector<16x1xf32> to vector<16x16xf32>
    %138 = arith.subf %134, %137 : vector<16x16xf32>
    %139 = math.exp %138 : vector<16x16xf32>
    %cst_38 = arith.constant dense<0.000000e+00> : vector<16xf32>
    %140 = vector.multi_reduction <add>, %139, %cst_38 [1] : vector<16x16xf32> to vector<16xf32>
    %141 = vector.shape_cast %140 : vector<16xf32> to vector<16x1xf32>
    %142 = tpu.reciprocal %141 {approx = true} : vector<16x1xf32> -> vector<16x1xf32>
    %143 = vector.broadcast %142 : vector<16x1xf32> to vector<16x16xf32>
    %144 = arith.mulf %139, %143 : vector<16x16xf32>
    %145 = vector.extract_strided_slice %110 {offsets = [0, 8], sizes = [16, 8], strides = [1, 1]} : vector<16x32xf32> to vector<16x8xf32>
    %146 = arith.truncf %144 : vector<16x16xf32> to vector<16x16xbf16>
    %147 = arith.truncf %145 : vector<16x8xf32> to vector<16x8xbf16>
    %cst_39 = arith.constant dense<0.000000e+00> : vector<16x8xf32>
    %148 = tpu.matmul %146, %147, %cst_39 {dimension_numbers = #tpu.dot_dimension_numbers<[1], [0], [0], [1], [0, 0, 1, 1], [], []>} : vector<16x16xbf16>, vector<16x8xbf16>, vector<16x8xf32> -> vector<16x8xf32>
    %149 = vector.extract_strided_slice %108 {offsets = [0, 16], sizes = [16, 8], strides = [1, 1]} : vector<16x32xf32> to vector<16x8xf32>
    %150 = vector.extract_strided_slice %109 {offsets = [0, 16], sizes = [16, 8], strides = [1, 1]} : vector<16x32xf32> to vector<16x8xf32>
    %151 = arith.truncf %149 : vector<16x8xf32> to vector<16x8xbf16>
    %152 = arith.truncf %150 : vector<16x8xf32> to vector<16x8xbf16>
    %cst_40 = arith.constant dense<0.000000e+00> : vector<16x16xf32>
    %153 = tpu.matmul %151, %152, %cst_40 {dimension_numbers = #tpu.dot_dimension_numbers<[1], [1], [0], [0], [0, 0, 1, 0], [], []>} : vector<16x8xbf16>, vector<16x8xbf16>, vector<16x16xf32> -> vector<16x16xf32>
    %cst_41 = arith.constant dense<0xFF800000> : vector<16xf32>
    %154 = vector.multi_reduction <maximumf>, %153, %cst_41 [1] : vector<16x16xf32> to vector<16xf32>
    %155 = vector.shape_cast %154 : vector<16xf32> to vector<16x1xf32>
    %156 = vector.broadcast %155 : vector<16x1xf32> to vector<16x16xf32>
    %157 = arith.subf %153, %156 : vector<16x16xf32>
    %158 = math.exp %157 : vector<16x16xf32>
    %cst_42 = arith.constant dense<0.000000e+00> : vector<16xf32>
    %159 = vector.multi_reduction <add>, %158, %cst_42 [1] : vector<16x16xf32> to vector<16xf32>
    %160 = vector.shape_cast %159 : vector<16xf32> to vector<16x1xf32>
    %161 = tpu.reciprocal %160 {approx = true} : vector<16x1xf32> -> vector<16x1xf32>
    %162 = vector.broadcast %161 : vector<16x1xf32> to vector<16x16xf32>
    %163 = arith.mulf %158, %162 : vector<16x16xf32>
    %164 = vector.extract_strided_slice %110 {offsets = [0, 16], sizes = [16, 8], strides = [1, 1]} : vector<16x32xf32> to vector<16x8xf32>
    %165 = arith.truncf %163 : vector<16x16xf32> to vector<16x16xbf16>
    %166 = arith.truncf %164 : vector<16x8xf32> to vector<16x8xbf16>
    %cst_43 = arith.constant dense<0.000000e+00> : vector<16x8xf32>
    %167 = tpu.matmul %165, %166, %cst_43 {dimension_numbers = #tpu.dot_dimension_numbers<[1], [0], [0], [1], [0, 0, 1, 1], [], []>} : vector<16x16xbf16>, vector<16x8xbf16>, vector<16x8xf32> -> vector<16x8xf32>
    %168 = vector.extract_strided_slice %108 {offsets = [0, 24], sizes = [16, 8], strides = [1, 1]} : vector<16x32xf32> to vector<16x8xf32>
    %169 = vector.extract_strided_slice %109 {offsets = [0, 24], sizes = [16, 8], strides = [1, 1]} : vector<16x32xf32> to vector<16x8xf32>
    %170 = arith.truncf %168 : vector<16x8xf32> to vector<16x8xbf16>
    %171 = arith.truncf %169 : vector<16x8xf32> to vector<16x8xbf16>
    %cst_44 = arith.constant dense<0.000000e+00> : vector<16x16xf32>
    %172 = tpu.matmul %170, %171, %cst_44 {dimension_numbers = #tpu.dot_dimension_numbers<[1], [1], [0], [0], [0, 0, 1, 0], [], []>} : vector<16x8xbf16>, vector<16x8xbf16>, vector<16x16xf32> -> vector<16x16xf32>
    %cst_45 = arith.constant dense<0xFF800000> : vector<16xf32>
    %173 = vector.multi_reduction <maximumf>, %172, %cst_45 [1] : vector<16x16xf32> to vector<16xf32>
    %174 = vector.shape_cast %173 : vector<16xf32> to vector<16x1xf32>
    %175 = vector.broadcast %174 : vector<16x1xf32> to vector<16x16xf32>
    %176 = arith.subf %172, %175 : vector<16x16xf32>
    %177 = math.exp %176 : vector<16x16xf32>
    %cst_46 = arith.constant dense<0.000000e+00> : vector<16xf32>
    %178 = vector.multi_reduction <add>, %177, %cst_46 [1] : vector<16x16xf32> to vector<16xf32>
    %179 = vector.shape_cast %178 : vector<16xf32> to vector<16x1xf32>
    %180 = tpu.reciprocal %179 {approx = true} : vector<16x1xf32> -> vector<16x1xf32>
    %181 = vector.broadcast %180 : vector<16x1xf32> to vector<16x16xf32>
    %182 = arith.mulf %177, %181 : vector<16x16xf32>
    %183 = vector.extract_strided_slice %110 {offsets = [0, 24], sizes = [16, 8], strides = [1, 1]} : vector<16x32xf32> to vector<16x8xf32>
    %184 = arith.truncf %182 : vector<16x16xf32> to vector<16x16xbf16>
    %185 = arith.truncf %183 : vector<16x8xf32> to vector<16x8xbf16>
    %cst_47 = arith.constant dense<0.000000e+00> : vector<16x8xf32>
    %186 = tpu.matmul %184, %185, %cst_47 {dimension_numbers = #tpu.dot_dimension_numbers<[1], [0], [0], [1], [0, 0, 1, 1], [], []>} : vector<16x16xbf16>, vector<16x8xbf16>, vector<16x8xf32> -> vector<16x8xf32>
    %187 = tpu.concatenate %129, %148, %167, %186 in 1 : vector<16x8xf32>, vector<16x8xf32>, vector<16x8xf32>, vector<16x8xf32> -> vector<16x32xf32>
    %188 = tpu.concatenate %107, %187 in 0 : vector<16x32xf32>, vector<16x32xf32> -> vector<32x32xf32>
    %189 = arith.index_cast %c0_i32 : i32 to index
    %c0_48 = arith.constant 0 : index
    %c0_49 = arith.constant 0 : index
    %190 = vector.load %arg8[%189, %c0_48, %c0_49] : memref<2x32x32xbf16, #tpu.memory_space<vmem>>, vector<1x32x32xbf16>
    %191 = vector.shape_cast %190 : vector<1x32x32xbf16> to vector<32x32xbf16>
    %192 = arith.truncf %188 : vector<32x32xf32> to vector<32x32xbf16>
    %cst_50 = arith.constant dense<0.000000e+00> : vector<32x32xf32>
    %193 = tpu.matmul %192, %191, %cst_50 {dimension_numbers = #tpu.dot_dimension_numbers<[1], [0], [0], [1], [0, 0, 1, 1], [], []>} : vector<32x32xbf16>, vector<32x32xbf16>, vector<32x32xf32> -> vector<32x32xf32>
    %194 = arith.index_cast %c0_i32 : i32 to index
    %c0_51 = arith.constant 0 : index
    %c0_52 = arith.constant 0 : index
    %195 = vector.load %arg9[%194, %c0_51, %c0_52] : memref<2x1x32xf32, #tpu.memory_space<vmem>>, vector<1x1x32xf32>
    %196 = vector.shape_cast %195 : vector<1x1x32xf32> to vector<1x32xf32>
    %197 = vector.broadcast %196 : vector<1x32xf32> to vector<32x32xf32>
    %198 = arith.addf %193, %197 : vector<32x32xf32>
    %199 = arith.addf %198, %14 : vector<32x32xf32>
    %200 = arith.index_cast %c0_i32 : i32 to index
    %c0_53 = arith.constant 0 : index
    %c0_54 = arith.constant 0 : index
    %201 = vector.load %arg10[%200, %c0_53, %c0_54] : memref<2x1x32xf32, #tpu.memory_space<vmem>>, vector<1x1x32xf32>
    %202 = vector.shape_cast %201 : vector<1x1x32xf32> to vector<1x32xf32>
    %203 = arith.index_cast %c0_i32 : i32 to index
    %c0_55 = arith.constant 0 : index
    %c0_56 = arith.constant 0 : index
    %204 = vector.load %arg11[%203, %c0_55, %c0_56] : memref<2x1x32xf32, #tpu.memory_space<vmem>>, vector<1x1x32xf32>
    %205 = vector.shape_cast %204 : vector<1x1x32xf32> to vector<1x32xf32>
    %cst_57 = arith.constant dense<0.000000e+00> : vector<32xf32>
    %206 = vector.multi_reduction <add>, %199, %cst_57 [1] : vector<32x32xf32> to vector<32xf32>
    %207 = vector.shape_cast %206 : vector<32xf32> to vector<32x1xf32>
    %cst_58 = arith.constant 3.200000e+01 : f32
    %208 = vector.broadcast %cst_58 : f32 to vector<32x1xf32>
    %209 = arith.divf %207, %208 : vector<32x1xf32>
    %210 = vector.broadcast %209 : vector<32x1xf32> to vector<32x32xf32>
    %211 = arith.subf %199, %210 : vector<32x32xf32>
    %212 = arith.mulf %211, %211 : vector<32x32xf32>
    %cst_59 = arith.constant dense<0.000000e+00> : vector<32xf32>
    %213 = vector.multi_reduction <add>, %212, %cst_59 [1] : vector<32x32xf32> to vector<32xf32>
    %214 = vector.shape_cast %213 : vector<32xf32> to vector<32x1xf32>
    %cst_60 = arith.constant 3.200000e+01 : f32
    %215 = vector.broadcast %cst_60 : f32 to vector<32x1xf32>
    %216 = arith.divf %214, %215 : vector<32x1xf32>
    %217 = vector.broadcast %209 : vector<32x1xf32> to vector<32x32xf32>
    %218 = arith.subf %199, %217 : vector<32x32xf32>
    %cst_61 = arith.constant 9.99999974E-6 : f32
    %219 = vector.broadcast %cst_61 : f32 to vector<32x1xf32>
    %220 = arith.addf %216, %219 : vector<32x1xf32>
    %221 = math.rsqrt %220 : vector<32x1xf32>
    %222 = vector.broadcast %221 : vector<32x1xf32> to vector<32x32xf32>
    %223 = arith.mulf %218, %222 : vector<32x32xf32>
    %224 = vector.broadcast %202 : vector<1x32xf32> to vector<32x32xf32>
    %225 = arith.mulf %223, %224 : vector<32x32xf32>
    %226 = vector.broadcast %205 : vector<1x32xf32> to vector<32x32xf32>
    %227 = arith.addf %225, %226 : vector<32x32xf32>
    %228 = arith.index_cast %c0_i32 : i32 to index
    %c0_62 = arith.constant 0 : index
    %c0_63 = arith.constant 0 : index
    %229 = vector.load %arg12[%228, %c0_62, %c0_63] : memref<2x32x64xbf16, #tpu.memory_space<vmem>>, vector<1x32x64xbf16>
    %230 = vector.shape_cast %229 : vector<1x32x64xbf16> to vector<32x64xbf16>
    %231 = arith.truncf %227 : vector<32x32xf32> to vector<32x32xbf16>
    %cst_64 = arith.constant dense<0.000000e+00> : vector<32x64xf32>
    %232 = tpu.matmul %231, %230, %cst_64 {dimension_numbers = #tpu.dot_dimension_numbers<[1], [0], [0], [1], [0, 0, 1, 1], [], []>} : vector<32x32xbf16>, vector<32x64xbf16>, vector<32x64xf32> -> vector<32x64xf32>
    %233 = arith.index_cast %c0_i32 : i32 to index
    %c0_65 = arith.constant 0 : index
    %c0_66 = arith.constant 0 : index
    %234 = vector.load %arg13[%233, %c0_65, %c0_66] : memref<2x1x64xf32, #tpu.memory_space<vmem>>, vector<1x1x64xf32>
    %235 = vector.shape_cast %234 : vector<1x1x64xf32> to vector<1x64xf32>
    %236 = vector.broadcast %235 : vector<1x64xf32> to vector<32x64xf32>
    %237 = arith.addf %232, %236 : vector<32x64xf32>
    %cst_67 = arith.constant 0.000000e+00 : f32
    %238 = vector.broadcast %cst_67 : f32 to vector<32x64xf32>
    %239 = arith.maximumf %237, %238 : vector<32x64xf32>
    %240 = arith.index_cast %c0_i32 : i32 to index
    %c0_68 = arith.constant 0 : index
    %c0_69 = arith.constant 0 : index
    %241 = vector.load %arg14[%240, %c0_68, %c0_69] : memref<2x64x32xbf16, #tpu.memory_space<vmem>>, vector<1x64x32xbf16>
    %242 = vector.shape_cast %241 : vector<1x64x32xbf16> to vector<64x32xbf16>
    %243 = arith.truncf %239 : vector<32x64xf32> to vector<32x64xbf16>
    %cst_70 = arith.constant dense<0.000000e+00> : vector<32x32xf32>
    %244 = tpu.matmul %243, %242, %cst_70 {dimension_numbers = #tpu.dot_dimension_numbers<[1], [0], [0], [1], [0, 0, 1, 1], [], []>} : vector<32x64xbf16>, vector<64x32xbf16>, vector<32x32xf32> -> vector<32x32xf32>
    %245 = arith.index_cast %c0_i32 : i32 to index
    %c0_71 = arith.constant 0 : index
    %c0_72 = arith.constant 0 : index
    %246 = vector.load %arg15[%245, %c0_71, %c0_72] : memref<2x1x32xf32, #tpu.memory_space<vmem>>, vector<1x1x32xf32>
    %247 = vector.shape_cast %246 : vector<1x1x32xf32> to vector<1x32xf32>
    %248 = vector.broadcast %247 : vector<1x32xf32> to vector<32x32xf32>
    %249 = arith.addf %244, %248 : vector<32x32xf32>
    %250 = arith.addf %249, %227 : vector<32x32xf32>
    %251 = arith.index_cast %c0_i32 : i32 to index
    %c0_73 = arith.constant 0 : index
    %c0_74 = arith.constant 0 : index
    %252 = vector.load %arg16[%251, %c0_73, %c0_74] : memref<2x1x32xf32, #tpu.memory_space<vmem>>, vector<1x1x32xf32>
    %253 = vector.shape_cast %252 : vector<1x1x32xf32> to vector<1x32xf32>
    %254 = arith.index_cast %c0_i32 : i32 to index
    %c0_75 = arith.constant 0 : index
    %c0_76 = arith.constant 0 : index
    %255 = vector.load %arg17[%254, %c0_75, %c0_76] : memref<2x1x32xf32, #tpu.memory_space<vmem>>, vector<1x1x32xf32>
    %256 = vector.shape_cast %255 : vector<1x1x32xf32> to vector<1x32xf32>
    %cst_77 = arith.constant dense<0.000000e+00> : vector<32xf32>
    %257 = vector.multi_reduction <add>, %250, %cst_77 [1] : vector<32x32xf32> to vector<32xf32>
    %258 = vector.shape_cast %257 : vector<32xf32> to vector<32x1xf32>
    %cst_78 = arith.constant 3.200000e+01 : f32
    %259 = vector.broadcast %cst_78 : f32 to vector<32x1xf32>
    %260 = arith.divf %258, %259 : vector<32x1xf32>
    %261 = vector.broadcast %260 : vector<32x1xf32> to vector<32x32xf32>
    %262 = arith.subf %250, %261 : vector<32x32xf32>
    %263 = arith.mulf %262, %262 : vector<32x32xf32>
    %cst_79 = arith.constant dense<0.000000e+00> : vector<32xf32>
    %264 = vector.multi_reduction <add>, %263, %cst_79 [1] : vector<32x32xf32> to vector<32xf32>
    %265 = vector.shape_cast %264 : vector<32xf32> to vector<32x1xf32>
    %cst_80 = arith.constant 3.200000e+01 : f32
    %266 = vector.broadcast %cst_80 : f32 to vector<32x1xf32>
    %267 = arith.divf %265, %266 : vector<32x1xf32>
    %268 = vector.broadcast %260 : vector<32x1xf32> to vector<32x32xf32>
    %269 = arith.subf %250, %268 : vector<32x32xf32>
    %cst_81 = arith.constant 9.99999974E-6 : f32
    %270 = vector.broadcast %cst_81 : f32 to vector<32x1xf32>
    %271 = arith.addf %267, %270 : vector<32x1xf32>
    %272 = math.rsqrt %271 : vector<32x1xf32>
    %273 = vector.broadcast %272 : vector<32x1xf32> to vector<32x32xf32>
    %274 = arith.mulf %269, %273 : vector<32x32xf32>
    %275 = vector.broadcast %253 : vector<1x32xf32> to vector<32x32xf32>
    %276 = arith.mulf %274, %275 : vector<32x32xf32>
    %277 = vector.broadcast %256 : vector<1x32xf32> to vector<32x32xf32>
    %278 = arith.addf %276, %277 : vector<32x32xf32>
    %c1_i32 = arith.constant 1 : i32
    %279 = arith.index_cast %c1_i32 : i32 to index
    %c0_82 = arith.constant 0 : index
    %c0_83 = arith.constant 0 : index
    %280 = vector.load %arg6[%279, %c0_82, %c0_83] : memref<2x32x96xbf16, #tpu.memory_space<vmem>>, vector<1x32x96xbf16>
    %281 = vector.shape_cast %280 : vector<1x32x96xbf16> to vector<32x96xbf16>
    %282 = arith.truncf %278 : vector<32x32xf32> to vector<32x32xbf16>
    %cst_84 = arith.constant dense<0.000000e+00> : vector<32x96xf32>
    %283 = tpu.matmul %282, %281, %cst_84 {dimension_numbers = #tpu.dot_dimension_numbers<[1], [0], [0], [1], [0, 0, 1, 1], [], []>} : vector<32x32xbf16>, vector<32x96xbf16>, vector<32x96xf32> -> vector<32x96xf32>
    %284 = arith.index_cast %c1_i32 : i32 to index
    %c0_85 = arith.constant 0 : index
    %c0_86 = arith.constant 0 : index
    %285 = vector.load %arg7[%284, %c0_85, %c0_86] : memref<2x1x96xf32, #tpu.memory_space<vmem>>, vector<1x1x96xf32>
    %286 = vector.shape_cast %285 : vector<1x1x96xf32> to vector<1x96xf32>
    %287 = vector.broadcast %286 : vector<1x96xf32> to vector<32x96xf32>
    %288 = arith.addf %283, %287 : vector<32x96xf32>
    %289 = vector.extract_strided_slice %288 {offsets = [0, 0], sizes = [32, 32], strides = [1, 1]} : vector<32x96xf32> to vector<32x32xf32>
    %290 = vector.extract_strided_slice %288 {offsets = [0, 32], sizes = [32, 32], strides = [1, 1]} : vector<32x96xf32> to vector<32x32xf32>
    %291 = vector.extract_strided_slice %288 {offsets = [0, 64], sizes = [32, 32], strides = [1, 1]} : vector<32x96xf32> to vector<32x32xf32>
    %292 = vector.extract_strided_slice %289 {offsets = [0, 0], sizes = [16, 32], strides = [1, 1]} : vector<32x32xf32> to vector<16x32xf32>
    %293 = vector.extract_strided_slice %290 {offsets = [0, 0], sizes = [16, 32], strides = [1, 1]} : vector<32x32xf32> to vector<16x32xf32>
    %294 = vector.extract_strided_slice %291 {offsets = [0, 0], sizes = [16, 32], strides = [1, 1]} : vector<32x32xf32> to vector<16x32xf32>
    %295 = vector.extract_strided_slice %292 {offsets = [0, 0], sizes = [16, 8], strides = [1, 1]} : vector<16x32xf32> to vector<16x8xf32>
    %296 = vector.extract_strided_slice %293 {offsets = [0, 0], sizes = [16, 8], strides = [1, 1]} : vector<16x32xf32> to vector<16x8xf32>
    %297 = arith.truncf %295 : vector<16x8xf32> to vector<16x8xbf16>
    %298 = arith.truncf %296 : vector<16x8xf32> to vector<16x8xbf16>
    %cst_87 = arith.constant dense<0.000000e+00> : vector<16x16xf32>
    %299 = tpu.matmul %297, %298, %cst_87 {dimension_numbers = #tpu.dot_dimension_numbers<[1], [1], [0], [0], [0, 0, 1, 0], [], []>} : vector<16x8xbf16>, vector<16x8xbf16>, vector<16x16xf32> -> vector<16x16xf32>
    %cst_88 = arith.constant dense<0xFF800000> : vector<16xf32>
    %300 = vector.multi_reduction <maximumf>, %299, %cst_88 [1] : vector<16x16xf32> to vector<16xf32>
    %301 = vector.shape_cast %300 : vector<16xf32> to vector<16x1xf32>
    %302 = vector.broadcast %301 : vector<16x1xf32> to vector<16x16xf32>
    %303 = arith.subf %299, %302 : vector<16x16xf32>
    %304 = math.exp %303 : vector<16x16xf32>
    %cst_89 = arith.constant dense<0.000000e+00> : vector<16xf32>
    %305 = vector.multi_reduction <add>, %304, %cst_89 [1] : vector<16x16xf32> to vector<16xf32>
    %306 = vector.shape_cast %305 : vector<16xf32> to vector<16x1xf32>
    %307 = tpu.reciprocal %306 {approx = true} : vector<16x1xf32> -> vector<16x1xf32>
    %308 = vector.broadcast %307 : vector<16x1xf32> to vector<16x16xf32>
    %309 = arith.mulf %304, %308 : vector<16x16xf32>
    %310 = vector.extract_strided_slice %294 {offsets = [0, 0], sizes = [16, 8], strides = [1, 1]} : vector<16x32xf32> to vector<16x8xf32>
    %311 = arith.truncf %309 : vector<16x16xf32> to vector<16x16xbf16>
    %312 = arith.truncf %310 : vector<16x8xf32> to vector<16x8xbf16>
    %cst_90 = arith.constant dense<0.000000e+00> : vector<16x8xf32>
    %313 = tpu.matmul %311, %312, %cst_90 {dimension_numbers = #tpu.dot_dimension_numbers<[1], [0], [0], [1], [0, 0, 1, 1], [], []>} : vector<16x16xbf16>, vector<16x8xbf16>, vector<16x8xf32> -> vector<16x8xf32>
    %314 = vector.extract_strided_slice %292 {offsets = [0, 8], sizes = [16, 8], strides = [1, 1]} : vector<16x32xf32> to vector<16x8xf32>
    %315 = vector.extract_strided_slice %293 {offsets = [0, 8], sizes = [16, 8], strides = [1, 1]} : vector<16x32xf32> to vector<16x8xf32>
    %316 = arith.truncf %314 : vector<16x8xf32> to vector<16x8xbf16>
    %317 = arith.truncf %315 : vector<16x8xf32> to vector<16x8xbf16>
    %cst_91 = arith.constant dense<0.000000e+00> : vector<16x16xf32>
    %318 = tpu.matmul %316, %317, %cst_91 {dimension_numbers = #tpu.dot_dimension_numbers<[1], [1], [0], [0], [0, 0, 1, 0], [], []>} : vector<16x8xbf16>, vector<16x8xbf16>, vector<16x16xf32> -> vector<16x16xf32>
    %cst_92 = arith.constant dense<0xFF800000> : vector<16xf32>
    %319 = vector.multi_reduction <maximumf>, %318, %cst_92 [1] : vector<16x16xf32> to vector<16xf32>
    %320 = vector.shape_cast %319 : vector<16xf32> to vector<16x1xf32>
    %321 = vector.broadcast %320 : vector<16x1xf32> to vector<16x16xf32>
    %322 = arith.subf %318, %321 : vector<16x16xf32>
    %323 = math.exp %322 : vector<16x16xf32>
    %cst_93 = arith.constant dense<0.000000e+00> : vector<16xf32>
    %324 = vector.multi_reduction <add>, %323, %cst_93 [1] : vector<16x16xf32> to vector<16xf32>
    %325 = vector.shape_cast %324 : vector<16xf32> to vector<16x1xf32>
    %326 = tpu.reciprocal %325 {approx = true} : vector<16x1xf32> -> vector<16x1xf32>
    %327 = vector.broadcast %326 : vector<16x1xf32> to vector<16x16xf32>
    %328 = arith.mulf %323, %327 : vector<16x16xf32>
    %329 = vector.extract_strided_slice %294 {offsets = [0, 8], sizes = [16, 8], strides = [1, 1]} : vector<16x32xf32> to vector<16x8xf32>
    %330 = arith.truncf %328 : vector<16x16xf32> to vector<16x16xbf16>
    %331 = arith.truncf %329 : vector<16x8xf32> to vector<16x8xbf16>
    %cst_94 = arith.constant dense<0.000000e+00> : vector<16x8xf32>
    %332 = tpu.matmul %330, %331, %cst_94 {dimension_numbers = #tpu.dot_dimension_numbers<[1], [0], [0], [1], [0, 0, 1, 1], [], []>} : vector<16x16xbf16>, vector<16x8xbf16>, vector<16x8xf32> -> vector<16x8xf32>
    %333 = vector.extract_strided_slice %292 {offsets = [0, 16], sizes = [16, 8], strides = [1, 1]} : vector<16x32xf32> to vector<16x8xf32>
    %334 = vector.extract_strided_slice %293 {offsets = [0, 16], sizes = [16, 8], strides = [1, 1]} : vector<16x32xf32> to vector<16x8xf32>
    %335 = arith.truncf %333 : vector<16x8xf32> to vector<16x8xbf16>
    %336 = arith.truncf %334 : vector<16x8xf32> to vector<16x8xbf16>
    %cst_95 = arith.constant dense<0.000000e+00> : vector<16x16xf32>
    %337 = tpu.matmul %335, %336, %cst_95 {dimension_numbers = #tpu.dot_dimension_numbers<[1], [1], [0], [0], [0, 0, 1, 0], [], []>} : vector<16x8xbf16>, vector<16x8xbf16>, vector<16x16xf32> -> vector<16x16xf32>
    %cst_96 = arith.constant dense<0xFF800000> : vector<16xf32>
    %338 = vector.multi_reduction <maximumf>, %337, %cst_96 [1] : vector<16x16xf32> to vector<16xf32>
    %339 = vector.shape_cast %338 : vector<16xf32> to vector<16x1xf32>
    %340 = vector.broadcast %339 : vector<16x1xf32> to vector<16x16xf32>
    %341 = arith.subf %337, %340 : vector<16x16xf32>
    %342 = math.exp %341 : vector<16x16xf32>
    %cst_97 = arith.constant dense<0.000000e+00> : vector<16xf32>
    %343 = vector.multi_reduction <add>, %342, %cst_97 [1] : vector<16x16xf32> to vector<16xf32>
    %344 = vector.shape_cast %343 : vector<16xf32> to vector<16x1xf32>
    %345 = tpu.reciprocal %344 {approx = true} : vector<16x1xf32> -> vector<16x1xf32>
    %346 = vector.broadcast %345 : vector<16x1xf32> to vector<16x16xf32>
    %347 = arith.mulf %342, %346 : vector<16x16xf32>
    %348 = vector.extract_strided_slice %294 {offsets = [0, 16], sizes = [16, 8], strides = [1, 1]} : vector<16x32xf32> to vector<16x8xf32>
    %349 = arith.truncf %347 : vector<16x16xf32> to vector<16x16xbf16>
    %350 = arith.truncf %348 : vector<16x8xf32> to vector<16x8xbf16>
    %cst_98 = arith.constant dense<0.000000e+00> : vector<16x8xf32>
    %351 = tpu.matmul %349, %350, %cst_98 {dimension_numbers = #tpu.dot_dimension_numbers<[1], [0], [0], [1], [0, 0, 1, 1], [], []>} : vector<16x16xbf16>, vector<16x8xbf16>, vector<16x8xf32> -> vector<16x8xf32>
    %352 = vector.extract_strided_slice %292 {offsets = [0, 24], sizes = [16, 8], strides = [1, 1]} : vector<16x32xf32> to vector<16x8xf32>
    %353 = vector.extract_strided_slice %293 {offsets = [0, 24], sizes = [16, 8], strides = [1, 1]} : vector<16x32xf32> to vector<16x8xf32>
    %354 = arith.truncf %352 : vector<16x8xf32> to vector<16x8xbf16>
    %355 = arith.truncf %353 : vector<16x8xf32> to vector<16x8xbf16>
    %cst_99 = arith.constant dense<0.000000e+00> : vector<16x16xf32>
    %356 = tpu.matmul %354, %355, %cst_99 {dimension_numbers = #tpu.dot_dimension_numbers<[1], [1], [0], [0], [0, 0, 1, 0], [], []>} : vector<16x8xbf16>, vector<16x8xbf16>, vector<16x16xf32> -> vector<16x16xf32>
    %cst_100 = arith.constant dense<0xFF800000> : vector<16xf32>
    %357 = vector.multi_reduction <maximumf>, %356, %cst_100 [1] : vector<16x16xf32> to vector<16xf32>
    %358 = vector.shape_cast %357 : vector<16xf32> to vector<16x1xf32>
    %359 = vector.broadcast %358 : vector<16x1xf32> to vector<16x16xf32>
    %360 = arith.subf %356, %359 : vector<16x16xf32>
    %361 = math.exp %360 : vector<16x16xf32>
    %cst_101 = arith.constant dense<0.000000e+00> : vector<16xf32>
    %362 = vector.multi_reduction <add>, %361, %cst_101 [1] : vector<16x16xf32> to vector<16xf32>
    %363 = vector.shape_cast %362 : vector<16xf32> to vector<16x1xf32>
    %364 = tpu.reciprocal %363 {approx = true} : vector<16x1xf32> -> vector<16x1xf32>
    %365 = vector.broadcast %364 : vector<16x1xf32> to vector<16x16xf32>
    %366 = arith.mulf %361, %365 : vector<16x16xf32>
    %367 = vector.extract_strided_slice %294 {offsets = [0, 24], sizes = [16, 8], strides = [1, 1]} : vector<16x32xf32> to vector<16x8xf32>
    %368 = arith.truncf %366 : vector<16x16xf32> to vector<16x16xbf16>
    %369 = arith.truncf %367 : vector<16x8xf32> to vector<16x8xbf16>
    %cst_102 = arith.constant dense<0.000000e+00> : vector<16x8xf32>
    %370 = tpu.matmul %368, %369, %cst_102 {dimension_numbers = #tpu.dot_dimension_numbers<[1], [0], [0], [1], [0, 0, 1, 1], [], []>} : vector<16x16xbf16>, vector<16x8xbf16>, vector<16x8xf32> -> vector<16x8xf32>
    %371 = tpu.concatenate %313, %332, %351, %370 in 1 : vector<16x8xf32>, vector<16x8xf32>, vector<16x8xf32>, vector<16x8xf32> -> vector<16x32xf32>
    %372 = vector.extract_strided_slice %289 {offsets = [16, 0], sizes = [16, 32], strides = [1, 1]} : vector<32x32xf32> to vector<16x32xf32>
    %373 = vector.extract_strided_slice %290 {offsets = [16, 0], sizes = [16, 32], strides = [1, 1]} : vector<32x32xf32> to vector<16x32xf32>
    %374 = vector.extract_strided_slice %291 {offsets = [16, 0], sizes = [16, 32], strides = [1, 1]} : vector<32x32xf32> to vector<16x32xf32>
    %375 = vector.extract_strided_slice %372 {offsets = [0, 0], sizes = [16, 8], strides = [1, 1]} : vector<16x32xf32> to vector<16x8xf32>
    %376 = vector.extract_strided_slice %373 {offsets = [0, 0], sizes = [16, 8], strides = [1, 1]} : vector<16x32xf32> to vector<16x8xf32>
    %377 = arith.truncf %375 : vector<16x8xf32> to vector<16x8xbf16>
    %378 = arith.truncf %376 : vector<16x8xf32> to vector<16x8xbf16>
    %cst_103 = arith.constant dense<0.000000e+00> : vector<16x16xf32>
    %379 = tpu.matmul %377, %378, %cst_103 {dimension_numbers = #tpu.dot_dimension_numbers<[1], [1], [0], [0], [0, 0, 1, 0], [], []>} : vector<16x8xbf16>, vector<16x8xbf16>, vector<16x16xf32> -> vector<16x16xf32>
    %cst_104 = arith.constant dense<0xFF800000> : vector<16xf32>
    %380 = vector.multi_reduction <maximumf>, %379, %cst_104 [1] : vector<16x16xf32> to vector<16xf32>
    %381 = vector.shape_cast %380 : vector<16xf32> to vector<16x1xf32>
    %382 = vector.broadcast %381 : vector<16x1xf32> to vector<16x16xf32>
    %383 = arith.subf %379, %382 : vector<16x16xf32>
    %384 = math.exp %383 : vector<16x16xf32>
    %cst_105 = arith.constant dense<0.000000e+00> : vector<16xf32>
    %385 = vector.multi_reduction <add>, %384, %cst_105 [1] : vector<16x16xf32> to vector<16xf32>
    %386 = vector.shape_cast %385 : vector<16xf32> to vector<16x1xf32>
    %387 = tpu.reciprocal %386 {approx = true} : vector<16x1xf32> -> vector<16x1xf32>
    %388 = vector.broadcast %387 : vector<16x1xf32> to vector<16x16xf32>
    %389 = arith.mulf %384, %388 : vector<16x16xf32>
    %390 = vector.extract_strided_slice %374 {offsets = [0, 0], sizes = [16, 8], strides = [1, 1]} : vector<16x32xf32> to vector<16x8xf32>
    %391 = arith.truncf %389 : vector<16x16xf32> to vector<16x16xbf16>
    %392 = arith.truncf %390 : vector<16x8xf32> to vector<16x8xbf16>
    %cst_106 = arith.constant dense<0.000000e+00> : vector<16x8xf32>
    %393 = tpu.matmul %391, %392, %cst_106 {dimension_numbers = #tpu.dot_dimension_numbers<[1], [0], [0], [1], [0, 0, 1, 1], [], []>} : vector<16x16xbf16>, vector<16x8xbf16>, vector<16x8xf32> -> vector<16x8xf32>
    %394 = vector.extract_strided_slice %372 {offsets = [0, 8], sizes = [16, 8], strides = [1, 1]} : vector<16x32xf32> to vector<16x8xf32>
    %395 = vector.extract_strided_slice %373 {offsets = [0, 8], sizes = [16, 8], strides = [1, 1]} : vector<16x32xf32> to vector<16x8xf32>
    %396 = arith.truncf %394 : vector<16x8xf32> to vector<16x8xbf16>
    %397 = arith.truncf %395 : vector<16x8xf32> to vector<16x8xbf16>
    %cst_107 = arith.constant dense<0.000000e+00> : vector<16x16xf32>
    %398 = tpu.matmul %396, %397, %cst_107 {dimension_numbers = #tpu.dot_dimension_numbers<[1], [1], [0], [0], [0, 0, 1, 0], [], []>} : vector<16x8xbf16>, vector<16x8xbf16>, vector<16x16xf32> -> vector<16x16xf32>
    %cst_108 = arith.constant dense<0xFF800000> : vector<16xf32>
    %399 = vector.multi_reduction <maximumf>, %398, %cst_108 [1] : vector<16x16xf32> to vector<16xf32>
    %400 = vector.shape_cast %399 : vector<16xf32> to vector<16x1xf32>
    %401 = vector.broadcast %400 : vector<16x1xf32> to vector<16x16xf32>
    %402 = arith.subf %398, %401 : vector<16x16xf32>
    %403 = math.exp %402 : vector<16x16xf32>
    %cst_109 = arith.constant dense<0.000000e+00> : vector<16xf32>
    %404 = vector.multi_reduction <add>, %403, %cst_109 [1] : vector<16x16xf32> to vector<16xf32>
    %405 = vector.shape_cast %404 : vector<16xf32> to vector<16x1xf32>
    %406 = tpu.reciprocal %405 {approx = true} : vector<16x1xf32> -> vector<16x1xf32>
    %407 = vector.broadcast %406 : vector<16x1xf32> to vector<16x16xf32>
    %408 = arith.mulf %403, %407 : vector<16x16xf32>
    %409 = vector.extract_strided_slice %374 {offsets = [0, 8], sizes = [16, 8], strides = [1, 1]} : vector<16x32xf32> to vector<16x8xf32>
    %410 = arith.truncf %408 : vector<16x16xf32> to vector<16x16xbf16>
    %411 = arith.truncf %409 : vector<16x8xf32> to vector<16x8xbf16>
    %cst_110 = arith.constant dense<0.000000e+00> : vector<16x8xf32>
    %412 = tpu.matmul %410, %411, %cst_110 {dimension_numbers = #tpu.dot_dimension_numbers<[1], [0], [0], [1], [0, 0, 1, 1], [], []>} : vector<16x16xbf16>, vector<16x8xbf16>, vector<16x8xf32> -> vector<16x8xf32>
    %413 = vector.extract_strided_slice %372 {offsets = [0, 16], sizes = [16, 8], strides = [1, 1]} : vector<16x32xf32> to vector<16x8xf32>
    %414 = vector.extract_strided_slice %373 {offsets = [0, 16], sizes = [16, 8], strides = [1, 1]} : vector<16x32xf32> to vector<16x8xf32>
    %415 = arith.truncf %413 : vector<16x8xf32> to vector<16x8xbf16>
    %416 = arith.truncf %414 : vector<16x8xf32> to vector<16x8xbf16>
    %cst_111 = arith.constant dense<0.000000e+00> : vector<16x16xf32>
    %417 = tpu.matmul %415, %416, %cst_111 {dimension_numbers = #tpu.dot_dimension_numbers<[1], [1], [0], [0], [0, 0, 1, 0], [], []>} : vector<16x8xbf16>, vector<16x8xbf16>, vector<16x16xf32> -> vector<16x16xf32>
    %cst_112 = arith.constant dense<0xFF800000> : vector<16xf32>
    %418 = vector.multi_reduction <maximumf>, %417, %cst_112 [1] : vector<16x16xf32> to vector<16xf32>
    %419 = vector.shape_cast %418 : vector<16xf32> to vector<16x1xf32>
    %420 = vector.broadcast %419 : vector<16x1xf32> to vector<16x16xf32>
    %421 = arith.subf %417, %420 : vector<16x16xf32>
    %422 = math.exp %421 : vector<16x16xf32>
    %cst_113 = arith.constant dense<0.000000e+00> : vector<16xf32>
    %423 = vector.multi_reduction <add>, %422, %cst_113 [1] : vector<16x16xf32> to vector<16xf32>
    %424 = vector.shape_cast %423 : vector<16xf32> to vector<16x1xf32>
    %425 = tpu.reciprocal %424 {approx = true} : vector<16x1xf32> -> vector<16x1xf32>
    %426 = vector.broadcast %425 : vector<16x1xf32> to vector<16x16xf32>
    %427 = arith.mulf %422, %426 : vector<16x16xf32>
    %428 = vector.extract_strided_slice %374 {offsets = [0, 16], sizes = [16, 8], strides = [1, 1]} : vector<16x32xf32> to vector<16x8xf32>
    %429 = arith.truncf %427 : vector<16x16xf32> to vector<16x16xbf16>
    %430 = arith.truncf %428 : vector<16x8xf32> to vector<16x8xbf16>
    %cst_114 = arith.constant dense<0.000000e+00> : vector<16x8xf32>
    %431 = tpu.matmul %429, %430, %cst_114 {dimension_numbers = #tpu.dot_dimension_numbers<[1], [0], [0], [1], [0, 0, 1, 1], [], []>} : vector<16x16xbf16>, vector<16x8xbf16>, vector<16x8xf32> -> vector<16x8xf32>
    %432 = vector.extract_strided_slice %372 {offsets = [0, 24], sizes = [16, 8], strides = [1, 1]} : vector<16x32xf32> to vector<16x8xf32>
    %433 = vector.extract_strided_slice %373 {offsets = [0, 24], sizes = [16, 8], strides = [1, 1]} : vector<16x32xf32> to vector<16x8xf32>
    %434 = arith.truncf %432 : vector<16x8xf32> to vector<16x8xbf16>
    %435 = arith.truncf %433 : vector<16x8xf32> to vector<16x8xbf16>
    %cst_115 = arith.constant dense<0.000000e+00> : vector<16x16xf32>
    %436 = tpu.matmul %434, %435, %cst_115 {dimension_numbers = #tpu.dot_dimension_numbers<[1], [1], [0], [0], [0, 0, 1, 0], [], []>} : vector<16x8xbf16>, vector<16x8xbf16>, vector<16x16xf32> -> vector<16x16xf32>
    %cst_116 = arith.constant dense<0xFF800000> : vector<16xf32>
    %437 = vector.multi_reduction <maximumf>, %436, %cst_116 [1] : vector<16x16xf32> to vector<16xf32>
    %438 = vector.shape_cast %437 : vector<16xf32> to vector<16x1xf32>
    %439 = vector.broadcast %438 : vector<16x1xf32> to vector<16x16xf32>
    %440 = arith.subf %436, %439 : vector<16x16xf32>
    %441 = math.exp %440 : vector<16x16xf32>
    %cst_117 = arith.constant dense<0.000000e+00> : vector<16xf32>
    %442 = vector.multi_reduction <add>, %441, %cst_117 [1] : vector<16x16xf32> to vector<16xf32>
    %443 = vector.shape_cast %442 : vector<16xf32> to vector<16x1xf32>
    %444 = tpu.reciprocal %443 {approx = true} : vector<16x1xf32> -> vector<16x1xf32>
    %445 = vector.broadcast %444 : vector<16x1xf32> to vector<16x16xf32>
    %446 = arith.mulf %441, %445 : vector<16x16xf32>
    %447 = vector.extract_strided_slice %374 {offsets = [0, 24], sizes = [16, 8], strides = [1, 1]} : vector<16x32xf32> to vector<16x8xf32>
    %448 = arith.truncf %446 : vector<16x16xf32> to vector<16x16xbf16>
    %449 = arith.truncf %447 : vector<16x8xf32> to vector<16x8xbf16>
    %cst_118 = arith.constant dense<0.000000e+00> : vector<16x8xf32>
    %450 = tpu.matmul %448, %449, %cst_118 {dimension_numbers = #tpu.dot_dimension_numbers<[1], [0], [0], [1], [0, 0, 1, 1], [], []>} : vector<16x16xbf16>, vector<16x8xbf16>, vector<16x8xf32> -> vector<16x8xf32>
    %451 = tpu.concatenate %393, %412, %431, %450 in 1 : vector<16x8xf32>, vector<16x8xf32>, vector<16x8xf32>, vector<16x8xf32> -> vector<16x32xf32>
    %452 = tpu.concatenate %371, %451 in 0 : vector<16x32xf32>, vector<16x32xf32> -> vector<32x32xf32>
    %453 = arith.index_cast %c1_i32 : i32 to index
    %c0_119 = arith.constant 0 : index
    %c0_120 = arith.constant 0 : index
    %454 = vector.load %arg8[%453, %c0_119, %c0_120] : memref<2x32x32xbf16, #tpu.memory_space<vmem>>, vector<1x32x32xbf16>
    %455 = vector.shape_cast %454 : vector<1x32x32xbf16> to vector<32x32xbf16>
    %456 = arith.truncf %452 : vector<32x32xf32> to vector<32x32xbf16>
    %cst_121 = arith.constant dense<0.000000e+00> : vector<32x32xf32>
    %457 = tpu.matmul %456, %455, %cst_121 {dimension_numbers = #tpu.dot_dimension_numbers<[1], [0], [0], [1], [0, 0, 1, 1], [], []>} : vector<32x32xbf16>, vector<32x32xbf16>, vector<32x32xf32> -> vector<32x32xf32>
    %458 = arith.index_cast %c1_i32 : i32 to index
    %c0_122 = arith.constant 0 : index
    %c0_123 = arith.constant 0 : index
    %459 = vector.load %arg9[%458, %c0_122, %c0_123] : memref<2x1x32xf32, #tpu.memory_space<vmem>>, vector<1x1x32xf32>
    %460 = vector.shape_cast %459 : vector<1x1x32xf32> to vector<1x32xf32>
    %461 = vector.broadcast %460 : vector<1x32xf32> to vector<32x32xf32>
    %462 = arith.addf %457, %461 : vector<32x32xf32>
    %463 = arith.addf %462, %278 : vector<32x32xf32>
    %464 = arith.index_cast %c1_i32 : i32 to index
    %c0_124 = arith.constant 0 : index
    %c0_125 = arith.constant 0 : index
    %465 = vector.load %arg10[%464, %c0_124, %c0_125] : memref<2x1x32xf32, #tpu.memory_space<vmem>>, vector<1x1x32xf32>
    %466 = vector.shape_cast %465 : vector<1x1x32xf32> to vector<1x32xf32>
    %467 = arith.index_cast %c1_i32 : i32 to index
    %c0_126 = arith.constant 0 : index
    %c0_127 = arith.constant 0 : index
    %468 = vector.load %arg11[%467, %c0_126, %c0_127] : memref<2x1x32xf32, #tpu.memory_space<vmem>>, vector<1x1x32xf32>
    %469 = vector.shape_cast %468 : vector<1x1x32xf32> to vector<1x32xf32>
    %cst_128 = arith.constant dense<0.000000e+00> : vector<32xf32>
    %470 = vector.multi_reduction <add>, %463, %cst_128 [1] : vector<32x32xf32> to vector<32xf32>
    %471 = vector.shape_cast %470 : vector<32xf32> to vector<32x1xf32>
    %cst_129 = arith.constant 3.200000e+01 : f32
    %472 = vector.broadcast %cst_129 : f32 to vector<32x1xf32>
    %473 = arith.divf %471, %472 : vector<32x1xf32>
    %474 = vector.broadcast %473 : vector<32x1xf32> to vector<32x32xf32>
    %475 = arith.subf %463, %474 : vector<32x32xf32>
    %476 = arith.mulf %475, %475 : vector<32x32xf32>
    %cst_130 = arith.constant dense<0.000000e+00> : vector<32xf32>
    %477 = vector.multi_reduction <add>, %476, %cst_130 [1] : vector<32x32xf32> to vector<32xf32>
    %478 = vector.shape_cast %477 : vector<32xf32> to vector<32x1xf32>
    %cst_131 = arith.constant 3.200000e+01 : f32
    %479 = vector.broadcast %cst_131 : f32 to vector<32x1xf32>
    %480 = arith.divf %478, %479 : vector<32x1xf32>
    %481 = vector.broadcast %473 : vector<32x1xf32> to vector<32x32xf32>
    %482 = arith.subf %463, %481 : vector<32x32xf32>
    %cst_132 = arith.constant 9.99999974E-6 : f32
    %483 = vector.broadcast %cst_132 : f32 to vector<32x1xf32>
    %484 = arith.addf %480, %483 : vector<32x1xf32>
    %485 = math.rsqrt %484 : vector<32x1xf32>
    %486 = vector.broadcast %485 : vector<32x1xf32> to vector<32x32xf32>
    %487 = arith.mulf %482, %486 : vector<32x32xf32>
    %488 = vector.broadcast %466 : vector<1x32xf32> to vector<32x32xf32>
    %489 = arith.mulf %487, %488 : vector<32x32xf32>
    %490 = vector.broadcast %469 : vector<1x32xf32> to vector<32x32xf32>
    %491 = arith.addf %489, %490 : vector<32x32xf32>
    %492 = arith.index_cast %c1_i32 : i32 to index
    %c0_133 = arith.constant 0 : index
    %c0_134 = arith.constant 0 : index
    %493 = vector.load %arg12[%492, %c0_133, %c0_134] : memref<2x32x64xbf16, #tpu.memory_space<vmem>>, vector<1x32x64xbf16>
    %494 = vector.shape_cast %493 : vector<1x32x64xbf16> to vector<32x64xbf16>
    %495 = arith.truncf %491 : vector<32x32xf32> to vector<32x32xbf16>
    %cst_135 = arith.constant dense<0.000000e+00> : vector<32x64xf32>
    %496 = tpu.matmul %495, %494, %cst_135 {dimension_numbers = #tpu.dot_dimension_numbers<[1], [0], [0], [1], [0, 0, 1, 1], [], []>} : vector<32x32xbf16>, vector<32x64xbf16>, vector<32x64xf32> -> vector<32x64xf32>
    %497 = arith.index_cast %c1_i32 : i32 to index
    %c0_136 = arith.constant 0 : index
    %c0_137 = arith.constant 0 : index
    %498 = vector.load %arg13[%497, %c0_136, %c0_137] : memref<2x1x64xf32, #tpu.memory_space<vmem>>, vector<1x1x64xf32>
    %499 = vector.shape_cast %498 : vector<1x1x64xf32> to vector<1x64xf32>
    %500 = vector.broadcast %499 : vector<1x64xf32> to vector<32x64xf32>
    %501 = arith.addf %496, %500 : vector<32x64xf32>
    %cst_138 = arith.constant 0.000000e+00 : f32
    %502 = vector.broadcast %cst_138 : f32 to vector<32x64xf32>
    %503 = arith.maximumf %501, %502 : vector<32x64xf32>
    %504 = arith.index_cast %c1_i32 : i32 to index
    %c0_139 = arith.constant 0 : index
    %c0_140 = arith.constant 0 : index
    %505 = vector.load %arg14[%504, %c0_139, %c0_140] : memref<2x64x32xbf16, #tpu.memory_space<vmem>>, vector<1x64x32xbf16>
    %506 = vector.shape_cast %505 : vector<1x64x32xbf16> to vector<64x32xbf16>
    %507 = arith.truncf %503 : vector<32x64xf32> to vector<32x64xbf16>
    %cst_141 = arith.constant dense<0.000000e+00> : vector<32x32xf32>
    %508 = tpu.matmul %507, %506, %cst_141 {dimension_numbers = #tpu.dot_dimension_numbers<[1], [0], [0], [1], [0, 0, 1, 1], [], []>} : vector<32x64xbf16>, vector<64x32xbf16>, vector<32x32xf32> -> vector<32x32xf32>
    %509 = arith.index_cast %c1_i32 : i32 to index
    %c0_142 = arith.constant 0 : index
    %c0_143 = arith.constant 0 : index
    %510 = vector.load %arg15[%509, %c0_142, %c0_143] : memref<2x1x32xf32, #tpu.memory_space<vmem>>, vector<1x1x32xf32>
    %511 = vector.shape_cast %510 : vector<1x1x32xf32> to vector<1x32xf32>
    %512 = vector.broadcast %511 : vector<1x32xf32> to vector<32x32xf32>
    %513 = arith.addf %508, %512 : vector<32x32xf32>
    %514 = arith.addf %513, %491 : vector<32x32xf32>
    %515 = arith.index_cast %c1_i32 : i32 to index
    %c0_144 = arith.constant 0 : index
    %c0_145 = arith.constant 0 : index
    %516 = vector.load %arg16[%515, %c0_144, %c0_145] : memref<2x1x32xf32, #tpu.memory_space<vmem>>, vector<1x1x32xf32>
    %517 = vector.shape_cast %516 : vector<1x1x32xf32> to vector<1x32xf32>
    %518 = arith.index_cast %c1_i32 : i32 to index
    %c0_146 = arith.constant 0 : index
    %c0_147 = arith.constant 0 : index
    %519 = vector.load %arg17[%518, %c0_146, %c0_147] : memref<2x1x32xf32, #tpu.memory_space<vmem>>, vector<1x1x32xf32>
    %520 = vector.shape_cast %519 : vector<1x1x32xf32> to vector<1x32xf32>
    %cst_148 = arith.constant dense<0.000000e+00> : vector<32xf32>
    %521 = vector.multi_reduction <add>, %514, %cst_148 [1] : vector<32x32xf32> to vector<32xf32>
    %522 = vector.shape_cast %521 : vector<32xf32> to vector<32x1xf32>
    %cst_149 = arith.constant 3.200000e+01 : f32
    %523 = vector.broadcast %cst_149 : f32 to vector<32x1xf32>
    %524 = arith.divf %522, %523 : vector<32x1xf32>
    %525 = vector.broadcast %524 : vector<32x1xf32> to vector<32x32xf32>
    %526 = arith.subf %514, %525 : vector<32x32xf32>
    %527 = arith.mulf %526, %526 : vector<32x32xf32>
    %cst_150 = arith.constant dense<0.000000e+00> : vector<32xf32>
    %528 = vector.multi_reduction <add>, %527, %cst_150 [1] : vector<32x32xf32> to vector<32xf32>
    %529 = vector.shape_cast %528 : vector<32xf32> to vector<32x1xf32>
    %cst_151 = arith.constant 3.200000e+01 : f32
    %530 = vector.broadcast %cst_151 : f32 to vector<32x1xf32>
    %531 = arith.divf %529, %530 : vector<32x1xf32>
    %532 = vector.broadcast %524 : vector<32x1xf32> to vector<32x32xf32>
    %533 = arith.subf %514, %532 : vector<32x32xf32>
    %cst_152 = arith.constant 9.99999974E-6 : f32
    %534 = vector.broadcast %cst_152 : f32 to vector<32x1xf32>
    %535 = arith.addf %531, %534 : vector<32x1xf32>
    %536 = math.rsqrt %535 : vector<32x1xf32>
    %537 = vector.broadcast %536 : vector<32x1xf32> to vector<32x32xf32>
    %538 = arith.mulf %533, %537 : vector<32x32xf32>
    %539 = vector.broadcast %517 : vector<1x32xf32> to vector<32x32xf32>
    %540 = arith.mulf %538, %539 : vector<32x32xf32>
    %541 = vector.broadcast %520 : vector<1x32xf32> to vector<32x32xf32>
    %542 = arith.addf %540, %541 : vector<32x32xf32>
    %c2_i32 = arith.constant 2 : i32
    %c0_153 = arith.constant 0 : index
    %c0_154 = arith.constant 0 : index
    %543 = vector.load %arg18[%c0_153, %c0_154] : memref<32x32xbf16, #tpu.memory_space<vmem>>, vector<32x32xbf16>
    %544 = arith.truncf %542 : vector<32x32xf32> to vector<32x32xbf16>
    %cst_155 = arith.constant dense<0.000000e+00> : vector<32x32xf32>
    %545 = tpu.matmul %544, %543, %cst_155 {dimension_numbers = #tpu.dot_dimension_numbers<[1], [0], [0], [1], [0, 0, 1, 1], [], []>} : vector<32x32xbf16>, vector<32x32xbf16>, vector<32x32xf32> -> vector<32x32xf32>
    %c0_156 = arith.constant 0 : index
    %c0_157 = arith.constant 0 : index
    %546 = vector.load %arg19[%c0_156, %c0_157] : memref<1x32xf32, #tpu.memory_space<vmem>>, vector<1x32xf32>
    %547 = vector.broadcast %546 : vector<1x32xf32> to vector<32x32xf32>
    %548 = arith.addf %545, %547 : vector<32x32xf32>
    %c0_158 = arith.constant 0 : index
    %c0_159 = arith.constant 0 : index
    %549 = vector.load %arg20[%c0_158, %c0_159] : memref<32x32xf32, #tpu.memory_space<vmem>>, vector<32x32xf32>
    tpu.vector_store %arg20[%c0_158, %c0_159], %548 {strides = array<i32>} : memref<32x32xf32, #tpu.memory_space<vmem>>, vector<32x32xf32>,
    return
  }
  func.func @transform_0(%arg0: i32) -> (i32, i32) {
    %c0_i32 = arith.constant 0 : i32
    %c0_i32_0 = arith.constant 0 : i32
    return %arg0, %c0_i32 : i32, i32
  }
  func.func @transform_1(%arg0: i32) -> (i32, i32) {
    %c0_i32 = arith.constant 0 : i32
    %c0_i32_0 = arith.constant 0 : i32
    %c0_i32_1 = arith.constant 0 : i32
    return %c0_i32, %c0_i32_0 : i32, i32
  }
  func.func @transform_2(%arg0: i32) -> (i32, i32) {
    %c0_i32 = arith.constant 0 : i32
    %c0_i32_0 = arith.constant 0 : i32
    %c0_i32_1 = arith.constant 0 : i32
    return %c0_i32, %c0_i32_0 : i32, i32
  }
  func.func @transform_3(%arg0: i32) -> (i32, i32) {
    %c0_i32 = arith.constant 0 : i32
    %c0_i32_0 = arith.constant 0 : i32
    %c0_i32_1 = arith.constant 0 : i32
    return %c0_i32, %c0_i32_0 : i32, i32
  }
  func.func @transform_4(%arg0: i32) -> (i32, i32) {
    %c0_i32 = arith.constant 0 : i32
    %c0_i32_0 = arith.constant 0 : i32
    %c0_i32_1 = arith.constant 0 : i32
    return %c0_i32, %c0_i32_0 : i32, i32
  }
  func.func @transform_5(%arg0: i32) -> (i32, i32, i32) {
    %c0_i32 = arith.constant 0 : i32
    %c0_i32_0 = arith.constant 0 : i32
    %c0_i32_1 = arith.constant 0 : i32
    %c0_i32_2 = arith.constant 0 : i32
    return %c0_i32, %c0_i32_0, %c0_i32_1 : i32, i32, i32
  }
  func.func @transform_6(%arg0: i32) -> (i32, i32, i32) {
    %c0_i32 = arith.constant 0 : i32
    %c0_i32_0 = arith.constant 0 : i32
    %c0_i32_1 = arith.constant 0 : i32
    %c0_i32_2 = arith.constant 0 : i32
    return %c0_i32, %c0_i32_0, %c0_i32_1 : i32, i32, i32
  }
  func.func @transform_7(%arg0: i32) -> (i32, i32, i32) {
    %c0_i32 = arith.constant 0 : i32
    %c0_i32_0 = arith.constant 0 : i32
    %c0_i32_1 = arith.constant 0 : i32
    %c0_i32_2 = arith.constant 0 : i32
    return %c0_i32, %c0_i32_0, %c0_i32_1 : i32, i32, i32
  }
  func.func @transform_8(%arg0: i32) -> (i32, i32, i32) {
    %c0_i32 = arith.constant 0 : i32
    %c0_i32_0 = arith.constant 0 : i32
    %c0_i32_1 = arith.constant 0 : i32
    %c0_i32_2 = arith.constant 0 : i32
    return %c0_i32, %c0_i32_0, %c0_i32_1 : i32, i32, i32
  }
  func.func @transform_9(%arg0: i32) -> (i32, i32, i32) {
    %c0_i32 = arith.constant 0 : i32
    %c0_i32_0 = arith.constant 0 : i32
    %c0_i32_1 = arith.constant 0 : i32
    %c0_i32_2 = arith.constant 0 : i32
    return %c0_i32, %c0_i32_0, %c0_i32_1 : i32, i32, i32
  }
  func.func @transform_10(%arg0: i32) -> (i32, i32, i32) {
    %c0_i32 = arith.constant 0 : i32
    %c0_i32_0 = arith.constant 0 : i32
    %c0_i32_1 = arith.constant 0 : i32
    %c0_i32_2 = arith.constant 0 : i32
    return %c0_i32, %c0_i32_0, %c0_i32_1 : i32, i32, i32
  }
  func.func @transform_11(%arg0: i32) -> (i32, i32, i32) {
    %c0_i32 = arith.constant 0 : i32
    %c0_i32_0 = arith.constant 0 : i32
    %c0_i32_1 = arith.constant 0 : i32
    %c0_i32_2 = arith.constant 0 : i32
    return %c0_i32, %c0_i32_0, %c0_i32_1 : i32, i32, i32
  }
  func.func @transform_12(%arg0: i32) -> (i32, i32, i32) {
    %c0_i32 = arith.constant 0 : i32
    %c0_i32_0 = arith.constant 0 : i32
    %c0_i32_1 = arith.constant 0 : i32
    %c0_i32_2 = arith.constant 0 : i32
    return %c0_i32, %c0_i32_0, %c0_i32_1 : i32, i32, i32
  }
  func.func @transform_13(%arg0: i32) -> (i32, i32, i32) {
    %c0_i32 = arith.constant 0 : i32
    %c0_i32_0 = arith.constant 0 : i32
    %c0_i32_1 = arith.constant 0 : i32
    %c0_i32_2 = arith.constant 0 : i32
    return %c0_i32, %c0_i32_0, %c0_i32_1 : i32, i32, i32
  }
  func.func @transform_14(%arg0: i32) -> (i32, i32, i32) {
    %c0_i32 = arith.constant 0 : i32
    %c0_i32_0 = arith.constant 0 : i32
    %c0_i32_1 = arith.constant 0 : i32
    %c0_i32_2 = arith.constant 0 : i32
    return %c0_i32, %c0_i32_0, %c0_i32_1 : i32, i32, i32
  }
  func.func @transform_15(%arg0: i32) -> (i32, i32, i32) {
    %c0_i32 = arith.constant 0 : i32
    %c0_i32_0 = arith.constant 0 : i32
    %c0_i32_1 = arith.constant 0 : i32
    %c0_i32_2 = arith.constant 0 : i32
    return %c0_i32, %c0_i32_0, %c0_i32_1 : i32, i32, i32
  }
  func.func @transform_16(%arg0: i32) -> (i32, i32, i32) {
    %c0_i32 = arith.constant 0 : i32
    %c0_i32_0 = arith.constant 0 : i32
    %c0_i32_1 = arith.constant 0 : i32
    %c0_i32_2 = arith.constant 0 : i32
    return %c0_i32, %c0_i32_0, %c0_i32_1 : i32, i32, i32
  }
  func.func @transform_17(%arg0: i32) -> (i32, i32) {
    %c0_i32 = arith.constant 0 : i32
    %c0_i32_0 = arith.constant 0 : i32
    %c0_i32_1 = arith.constant 0 : i32
    return %c0_i32, %c0_i32_0 : i32, i32
  }
  func.func @transform_18(%arg0: i32) -> (i32, i32) {
    %c0_i32 = arith.constant 0 : i32
    %c0_i32_0 = arith.constant 0 : i32
    %c0_i32_1 = arith.constant 0 : i32
    return %c0_i32, %c0_i32_0 : i32, i32
  }
  func.func @transform_19(%arg0: i32) -> (i32, i32) {
    %c0_i32 = arith.constant 0 : i32
    %c0_i32_0 = arith.constant 0 : i32
    return %arg0, %c0_i32 : i32, i32
  }
}

</mosaic_0001>

<bundles_post_ra>
// kernel: single_global_selfattn_forward.1
= control target key start
LH: loop header
LB: loop body
LE: loop exit
PB: predicated region body
PF: predicated region fallthrough
CT: control target
= control target key end

     0   :  { %s5549_s0 = inlined_call_operand.vmem [shape: f32[32,8], index: 0, kind: input, shape index: {}]   ;;  %s5550_s1 = inlined_call_operand.hbm [shape: bf16[8,32], index: 1, kind: input, shape index: {}]   ;;  %s5551_s2 = inlined_call_operand.hbm [shape: f32[1,32], index: 2, kind: input, shape index: {}]   ;;  %s5552_s3 = inlined_call_operand.vmem [shape: bf16[32,32], index: 3, kind: input, shape index: {}]   ;;  %s5553_s4 = inlined_call_operand.hbm [shape: f32[1,32], index: 4, kind: input, shape index: {}]   ;;  %s5554_s5 = inlined_call_operand.vmem [shape: bf16[2,32,96], index: 5, kind: input, shape index: {}]   ;;  %s5555_s6 = inlined_call_operand.vmem [shape: f32[2,1,96], index: 6, kind: input, shape index: {}]   ;;  %s5556_s7 = inlined_call_operand.vmem [shape: bf16[2,32,32], index: 7, kind: input, shape index: {}]   ;;  %s5557_s8 = inlined_call_operand.hbm [shape: f32[2,1,32], index: 8, kind: input, shape index: {}]   ;;  %s5558_s9 = inlined_call_operand.hbm [shape: f32[2,1,32], index: 9, kind: input, shape index: {}]   ;;  %s5559_s10 = inlined_call_operand.hbm [shape: f32[2,1,32], index: 10, kind: input, shape index: {}]   ;;  %s5560_s11 = inlined_call_operand.vmem [shape: bf16[2,32,64], index: 11, kind: input, shape index: {}]   ;;  %s5561_s12 = inlined_call_operand.hbm [shape: f32[2,1,64], index: 12, kind: input, shape index: {}]   ;;  %s5562_s13 = inlined_call_operand.vmem [shape: bf16[2,64,32], index: 13, kind: input, shape index: {}]   ;;  %s5563_s14 = inlined_call_operand.hbm [shape: f32[2,1,32], index: 14, kind: input, shape index: {}]   ;;  %s5564_s15 = inlined_call_operand.hbm [shape: f32[2,1,32], index: 15, kind: input, shape index: {}]   ;;  %s5565_s16 = inlined_call_operand.hbm [shape: f32[2,1,32], index: 16, kind: input, shape index: {}]   ;;  %s5566_s17 = inlined_call_operand.vmem [shape: bf16[32,32], index: 17, kind: input, shape index: {}]   ;;  %s5567_s18 = inlined_call_operand.hbm [shape: f32[1,32], index: 18, kind: input, shape index: {}]   ;;  %s5568_s19 = inlined_call_operand.hbm [shape: f32[32,32], index: 19, kind: output, shape index: {}]  }
   0x1   :  { %5571 = sst [smem:[#allocation28_spill]] %s5549_s0 }
   0x2   :  { %5572 = sst [smem:[#allocation29_spill]] %s5550_s1 }
   0x3   :  { %5573 = sst [smem:[#allocation30_spill]] %s5551_s2 }
   0x4   :  { %5574 = sst [smem:[#allocation31_spill]] %s5552_s3 }
   0x5   :  { %24 = vsyncpa [#allocation3], 0 }
   0x6   :  { %25 = vsyncpa [#allocation6], 0 }
   0x7   :  { %26 = vsyncpa [#allocation9], 0 }
   0x8   :  { %27 = vsyncpa [#allocation12], 0 }
   0x9   :  { %28 = vsyncpa [#allocation15], 0 }
   0xa   :  { %29 = vsyncpa [#allocation18], 0 }
   0xb   :  { %30 = vsyncpa [#allocation4], 0  ;;  %s4578_s0 = smov [#allocation5]   ;;  %s4579_s20 = smov [#allocation8]  }
   0xc   :  { %s49_s30 = sshll.u32 %s4578_s0, 4  ;;  %s76_s21 = sshll.u32 %s4579_s20, 4  ;;  %s50_s30 = int_to_ptr.vmem [resolvable:$true] %s49_s30  ;;  %s77_s21 = int_to_ptr.vmem [resolvable:$true] %s76_s21 }
   0xd   :  { %s4332_s1 = scalar_lea.vmem %s50_s30, 16  ;;  %s4336_s22 = scalar_lea.vmem %s50_s30, 32 }
   0xe   :  { %p4333_p0 = scmp.ne.s32.totalorder %s50_s30, %s4332_s1  ;;  %p4337_p1 = scmp.lt.s32.totalorder %s50_s30, %s50_s30 }
   0xf   :  { %p4338_p2 = scmp.lt.s32.totalorder %s4336_s22, %s4332_s1 }
  0x11   :  { %p4339_p3 = por %p4338_p2, %p4337_p1 }
  0x13   :  { %p4340_p4 = pnand %p4339_p3, %p4333_p0 }
  0x15   :  { %4343 = shalt.err (!%p4340_p4)
}
  0x16   :  { %s5575_s24 = sld [smem:[#allocation30_spill]]  ;;  %s4352_s25 = scalar_lea.vmem %s77_s21, 32 }
  0x17   :  { %p4353_p5 = scmp.ne.s32.totalorder %s77_s21, %s4352_s25  ;;  %p4357_p6 = scmp.lt.s32.totalorder %s77_s21, %s77_s21 }
  0x18   :  { %p4358_p7 = scmp.lt.s32.totalorder %s4352_s25, %s4352_s25 }
  0x1a   :  { %p4359_p8 = por %p4358_p7, %p4357_p6 }
  0x1c   :  { %52 = dma.hbm_to_vmem [thread:$0]  %s5575_s24, 16, %s50_s30, [#allocation6]  }
  0x1d   :  { %p4360_p9 = pnand %p4359_p8, %p4353_p5 }
  0x1f   :  { %4363 = shalt.err (!%p4360_p9)
}
  0x20   :  { %s4580_s3 = smov 16   ;;  %s4581_s26 = smov 1  }
  0x21   :  { %82 = dma.hbm_to_vmem [thread:$0]  %s5557_s8, 32, %s77_s21, [#allocation9], %s4580_s3, %s4580_s3, %s4581_s26  }
  0x22   :  { %s4582_s29 = smov [#allocation11]   ;;  %s4583_s20 = smov [#allocation14]  }
  0x23   :  { %s100_s0 = sshll.u32 %s4582_s29, 4  ;;  %s128_s30 = sshll.u32 %s4583_s20, 4  ;;  %s101_s0 = int_to_ptr.vmem [resolvable:$true] %s100_s0  ;;  %s129_s30 = int_to_ptr.vmem [resolvable:$true] %s128_s30 }
  0x24   :  { %s4372_s1 = scalar_lea.vmem %s101_s0, 32  ;;  %p4377_p11 = scmp.lt.s32.totalorder %s101_s0, %s101_s0 }
  0x25   :  { %p4373_p10 = scmp.ne.s32.totalorder %s101_s0, %s4372_s1  ;;  %p4378_p12 = scmp.lt.s32.totalorder %s4372_s1, %s4372_s1 }
  0x27   :  { %p4379_p13 = por %p4378_p12, %p4377_p11 }
  0x29   :  { %p4380_p0 = pnand %p4379_p13, %p4373_p10 }
  0x2b   :  { %4383 = shalt.err (!%p4380_p0)
}
  0x2c   :  { %106 = dma.hbm_to_vmem [thread:$0]  %s5559_s10, 32, %s101_s0, [#allocation12], %s4580_s3, %s4580_s3, %s4581_s26  }
  0x2d   :  { %s4392_s8 = scalar_lea.vmem %s129_s30, 32  ;;  %p4397_p2 = scmp.lt.s32.totalorder %s129_s30, %s129_s30 }
  0x2e   :  { %p4393_p1 = scmp.ne.s32.totalorder %s129_s30, %s4392_s8  ;;  %p4398_p3 = scmp.lt.s32.totalorder %s4392_s8, %s4392_s8 }
  0x30   :  { %p4399_p4 = por %p4398_p3, %p4397_p2 }
  0x32   :  { %p4400_p5 = pnand %p4399_p4, %p4393_p1 }
  0x34   :  { %4403 = shalt.err (!%p4400_p5)
}
  0x35   :  { %134 = dma.hbm_to_vmem [thread:$0]  %s5563_s14, 32, %s129_s30, [#allocation15], %s4580_s3, %s4580_s3, %s4581_s26  }
  0x36   :  { %s4584_s24 = smov [#allocation17]   ;;  %s4585_s27 = smov [#allocation2]  }
  0x37   :  { %s152_s25 = sshll.u32 %s4584_s24, 4  ;;  %s39_s28 = sshll.u32 %s4585_s27, 4  ;;  %s153_s25 = int_to_ptr.vmem [resolvable:$true] %s152_s25  ;;  %s40_s28 = int_to_ptr.vmem [resolvable:$true] %s39_s28 }
  0x38   :  { %s4412_s10 = scalar_lea.vmem %s153_s25, 32  ;;  %p4417_p7 = scmp.lt.s32.totalorder %s153_s25, %s153_s25 }
  0x39   :  { %p4413_p6 = scmp.ne.s32.totalorder %s153_s25, %s4412_s10  ;;  %p4418_p8 = scmp.lt.s32.totalorder %s4412_s10, %s4412_s10 }
  0x3b   :  { %p4419_p9 = por %p4418_p8, %p4417_p7 }
  0x3d   :  { %p4420_p10 = pnand %p4419_p9, %p4413_p6 }
  0x3f   :  { %4423 = shalt.err (!%p4420_p10)
}
  0x40   :  { %158 = dma.hbm_to_vmem [thread:$0]  %s5565_s16, 32, %s153_s25, [#allocation18], %s4580_s3, %s4580_s3, %s4581_s26  }
  0x41   :  { %s4432_s14 = scalar_lea.vmem %s40_s28, 64  ;;  %p4437_p12 = scmp.lt.s32.totalorder %s40_s28, %s40_s28 }
  0x42   :  { %p4433_p11 = scmp.ne.s32.totalorder %s40_s28, %s4432_s14  ;;  %p4438_p13 = scmp.lt.s32.totalorder %s4432_s14, %s4432_s14 }
  0x44   :  { %p4439_p0 = por %p4438_p13, %p4437_p12 }
  0x46   :  { %p4440_p1 = pnand %p4439_p0, %p4433_p11 }
  0x48   :  { %4443 = shalt.err (!%p4440_p1)
}
  0x49   :  { %s5576_s1 = sld [smem:[#allocation29_spill]]  ;;  %s4586_s22 = smov [#allocation7]  }
  0x4a   :  { %s61_s2 = sshll.u32 %s4586_s22, 4  ;;  %s4587_s8 = smov [#allocation10]   ;;  %s62_s2 = int_to_ptr.vmem [resolvable:$true] %s61_s2 }
  0x4b   :  { %s88_s21 = sshll.u32 %s4587_s8, 4  ;;  %s4452_s23 = scalar_lea.vmem %s62_s2, 16  ;;  %s89_s21 = int_to_ptr.vmem [resolvable:$true] %s88_s21 }
  0x4c   :  { %p4453_p2 = scmp.ne.s32.totalorder %s62_s2, %s4452_s23  ;;  %s4456_s16 = scalar_lea.vmem %s62_s2, 32 }
  0x4d   :  { %p4457_p3 = scmp.lt.s32.totalorder %s62_s2, %s62_s2  ;;  %p4458_p4 = scmp.lt.s32.totalorder %s4456_s16, %s4452_s23 }
  0x4f   :  { %42 = dma.hbm_to_vmem [thread:$0]  %s5576_s1, 64, %s40_s28, [#allocation3]  }
  0x50   :  { %p4459_p5 = por %p4458_p4, %p4457_p3 }
  0x52   :  { %p4460_p6 = pnand %p4459_p5, %p4453_p2 }
  0x54   :  { %4463 = shalt.err (!%p4460_p6)
}
  0x55   :  { %64 = dma.hbm_to_vmem [thread:$0]  %s5553_s4, 16, %s62_s2, [#allocation6]  }
  0x56   :  { %s4472_s27 = scalar_lea.vmem %s89_s21, 32  ;;  %p4477_p8 = scmp.lt.s32.totalorder %s89_s21, %s89_s21 }
  0x57   :  { %p4473_p7 = scmp.ne.s32.totalorder %s89_s21, %s4472_s27  ;;  %p4478_p9 = scmp.lt.s32.totalorder %s4472_s27, %s4472_s27 }
  0x59   :  { %p4479_p10 = por %p4478_p9, %p4477_p8 }
  0x5b   :  { %p4480_p11 = pnand %p4479_p10, %p4473_p7 }
  0x5d   :  { %4483 = shalt.err (!%p4480_p11)
}
  0x5e   :  { %94 = dma.hbm_to_vmem [thread:$0]  %s5558_s9, 32, %s89_s21, [#allocation9], %s4580_s3, %s4580_s3, %s4581_s26  }
  0x5f   :  { %s4588_s29 = smov [#allocation13]   ;;  %s4589_s14 = smov [#allocation16]  }
  0x60   :  { %s114_s0 = sshll.u32 %s4588_s29, 4  ;;  %s140_s20 = sshll.u32 %s4589_s14, 4  ;;  %s115_s0 = int_to_ptr.vmem [resolvable:$true] %s114_s0  ;;  %s141_s20 = int_to_ptr.vmem [resolvable:$true] %s140_s20 }
  0x61   :  { %s4492_s4 = scalar_lea.vmem %s115_s0, 32  ;;  %p4497_p13 = scmp.lt.s32.totalorder %s115_s0, %s115_s0 }
  0x62   :  { %p4493_p12 = scmp.ne.s32.totalorder %s115_s0, %s4492_s4  ;;  %p4498_p0 = scmp.lt.s32.totalorder %s4492_s4, %s4492_s4 }
  0x64   :  { %p4499_p1 = por %p4498_p0, %p4497_p13 }
  0x66   :  { %p4500_p2 = pnand %p4499_p1, %p4493_p12 }
  0x68   :  { %4503 = shalt.err (!%p4500_p2)
}
  0x69   :  { %120 = dma.hbm_to_vmem [thread:$0]  %s5561_s12, 32, %s115_s0, [#allocation12], %s4580_s3, %s4580_s3, %s4581_s26  }
  0x6a   :  { %s4512_s9 = scalar_lea.vmem %s141_s20, 32  ;;  %p4517_p4 = scmp.lt.s32.totalorder %s141_s20, %s141_s20 }
  0x6b   :  { %p4513_p3 = scmp.ne.s32.totalorder %s141_s20, %s4512_s9  ;;  %p4518_p5 = scmp.lt.s32.totalorder %s4512_s9, %s4512_s9 }
  0x6d   :  { %p4519_p6 = por %p4518_p5, %p4517_p4 }
  0x6f   :  { %p4520_p7 = pnand %p4519_p6, %p4513_p3 }
  0x71   :  { %4523 = shalt.err (!%p4520_p7)
}
  0x72   :  { %146 = dma.hbm_to_vmem [thread:$0]  %s5564_s15, 32, %s141_s20, [#allocation15], %s4580_s3, %s4580_s3, %s4581_s26  }
  0x73   :  { %s4590_s8 = smov [#allocation19]  }
  0x74   :  { %s167_s21 = sshll.u32 %s4590_s8, 4  ;;  %s168_s21 = int_to_ptr.vmem [resolvable:$true] %s167_s21 }
  0x75   :  { %s4532_s23 = scalar_lea.vmem %s168_s21, 16  ;;  %s4536_s12 = scalar_lea.vmem %s168_s21, 32 }
  0x76   :  { %p4533_p8 = scmp.ne.s32.totalorder %s168_s21, %s4532_s23  ;;  %p4537_p9 = scmp.lt.s32.totalorder %s168_s21, %s168_s21 }
  0x77   :  { %p4538_p10 = scmp.lt.s32.totalorder %s4536_s12, %s4532_s23 }
  0x79   :  { %p4539_p11 = por %p4538_p10, %p4537_p9 }
  0x7b   :  { %p4540_p12 = pnand %p4539_p11, %p4533_p8 }
  0x7d   :  { %4543 = shalt.err (!%p4540_p12)
}
  0x7e   :  { %170 = dma.hbm_to_vmem [thread:$0]  %s5567_s18, 16, %s168_s21, [#allocation18]  }
  0x7f   :  { %4564 = dma.done.wait [#allocation3], 64  }
  0x80   :  { %4565 = vsyncadd [#allocation3], 4294967232 }
  0x81   :  { %4566 = dma.done.wait [#allocation6], 32  }
  0x82   :  { %4567 = vsyncadd [#allocation6], 4294967264 }
  0x83   :  { %4568 = dma.done.wait [#allocation9], 64  }
  0x84   :  { %4569 = vsyncadd [#allocation9], 4294967232 }
  0x85   :  { %4570 = dma.done.wait [#allocation12], 64  }
  0x86   :  { %4571 = vsyncadd [#allocation12], 4294967232 }
  0x87   :  { %4572 = dma.done.wait [#allocation15], 64  }
  0x88   :  { %4573 = vsyncadd [#allocation15], 4294967232 }
  0x89   :  { %4574 = dma.done.wait [#allocation18], 48  }
  0x8a   :  { %4575 = vsyncadd [#allocation18], 4294967248  ;;  %vm226_vm0 = vcmask 1043456   ;;  %v209_v0 = vld [vmem:[#allocation2] sm:$0xf]  ;;  %s5577_s25 = sld [smem:[#allocation28_spill]] }
  0x8b   :  { %vm219_vm1 = vcmask 64512   ;;  %4049 = vmatprep.subr.msk.bf16.mxu0 %vm226_vm0, %v209_v0  ;;  %v228_v3 = vsel %vm226_vm0, %v209_v0, 0  ;;  %s5578_s4 = sld [smem:[#allocation31_spill]]  ;;  %v3534_v12 = vld [vmem:[#allocation5] ss:$0 sm:$0xff]  ;;  %vm308_vm2 = vcmask 261120  }
  0x8c   :  { %3764 = vmatpush3.bf16.msra.mxu0 %v228_v3  ;;  %v4142_v25 = vld [vmem:[%s5554_s5 + $0x8] sm:$0xff]   ;;  %v4143_v26 = vld [vmem:[%s5554_s5] sm:$0xff]   ;;  %v4591_v38 = vmov 0.0   ;;  %vm4592_vm3 = vmmov 0   ;;  %s4593_s12 = smov 120   ;;  %s4594_s16 = smov 96  }
  0x8d   :  { %3777 = vmatprep.subr.bf16.mxu0 %v4142_v25  ;;  %v3537_v30 = vld [vmem:[#allocation7] ss:$0 sm:$0xff]  ;;  %v3542_v42 = vld [vmem:[%s5555_s6] ss:$0 sm:$0xff]  ;;  %s4595_s24 = smov 80   ;;  %s4596_s15 = smov 88  }
  0x8e   :  { %s4597_s26 = smov 72   ;;  %s4599_s27 = smov 104   ;;  %vm495_vm4 = vcmask 130048   ;;  %vm957_vm5 = vcmask 195584   ;;  %vm1758_vm6 = vcmask 523264  }
  0x8f   :  { %s4600_s18 = smov 64   ;;  %s4601_s28 = smov 48  }
  0x90   :  { %v205_v1 = vld [vmem:[%s5577_s25] sm:$0xff]  ;;  %v206_v2 = vld [vmem:[%s5577_s25 + $0x8] sm:$0xff]  ;;  %v207_v5 = vld [vmem:[%s5577_s25 + $0x10] sm:$0xff]  ;;  %s4602_s10 = smov 56   ;;  %s4603_s29 = smov 40  }
  0x91   :  { %v210_v4 = vpack.c.bf16 %v206_v2, %v205_v1  ;;  %v208_v6 = vld [vmem:[%s5577_s25 + $0x18] sm:$0xff]  ;;  %v4140_v8 = vld [vmem:[%s5578_s4 + $0x8] sm:$0xff]   ;;  %v4141_v9 = vld [vmem:[%s5578_s4] sm:$0xff]   ;;  %s4598_s25 = smov 112   ;;  %s4604_s0 = smov 8  }
  0x92   :  { %v211_v7 = vpack.c.bf16 %v208_v6, %v207_v5  ;;  %3769 = vmatprep.subr.bf16.mxu1 %v4140_v8  ;;  %s4605_s14 = smov 24  }
  0x93   :  { %3765 = vmatprep.mubr.msk.bf16.mxu0 %vm219_vm1, %v210_v4  ;;  %3770 = vmatpush3.bf16.msra.mxu1 %v4140_v8 }
  0x94   :  { %3766 = vmatmul.mubr.msk.bf16.vlgmr.msra.gmra.mxu0 %vm219_vm1, %v211_v7  ;;  %3771 = vmatprep.subr.bf16.mxu1 %v4141_v9 }
  0x95   :  { %3778 = vmatpush3.bf16.msra.mxu0 %v4142_v25 }
  0x96   :  { %3779 = vmatprep.subr.bf16.mxu0 %v4143_v26 }
  0x97   :  { %3772 = vmatpush3.bf16.msra.mxu1 %v4141_v9 }
  0x98   :  { %3785 = vmatprep.subr.bf16.mxu1 %v4591_v38 }
  0x99   :  { %3780 = vmatpush3.bf16.msra.mxu0 %v4143_v26 }
  0x9a   :  { %3791 = vmatprep.subr.bf16.mxu0 %v4591_v38 }
 0x154   :  { %v3767_v10 = vpop.f32.mrf.mxu0 }
 0x155   :  { %v273_v16 = vadd.f32 %v3767_v10, %v3534_v12 }
 0x156   :  { %v264_v11 = vpop.f32.mrf.mxu0 }
 0x157   :  { %v265_v14 = vadd.f32 %v3534_v12, %v264_v11  ;;  %v281_v22 = vmax.f32 %v273_v16, 0.0 }
 0x158   :  { %v3768_v13 = vpop.f32.mrf.mxu0 }
 0x159   :  { %v276_v15 = vadd.f32 %v3768_v13, %v3534_v12  ;;  %v279_v20 = vmax.f32 %v265_v14, 0.0 }
 0x15a   :  { %v267_v17 = vpop.f32.mrf.mxu0 }
 0x15b   :  { %v268_v18 = vadd.f32 %v3534_v12, %v267_v17  ;;  %v282_v19 = vmax.f32 %v276_v15, 0.0 }
 0x15d   :  { %v280_v21 = vmax.f32 %v268_v18, 0.0  ;;  %v288_v24 = vpack.c.bf16 %v282_v19, %v281_v22 }
 0x15f   :  { %v287_v23 = vpack.c.bf16 %v280_v21, %v279_v20 }
 0x161   :  { %3773 = vmatprep.mubr.msk.bf16.mxu1 %vm308_vm2, %v287_v23 }
 0x162   :  { %3774 = vmatmul.mubr.msk.bf16.vlgmr.msra.gmra.mxu1 %vm308_vm2, %v288_v24 }
 0x163   :  { %3787 = vmatprep.mubr.msk.bf16.mxu1 %vm4592_vm3, %v4591_v38 }
 0x222   :  { %v3775_v27 = vpop.f32.mrf.mxu1 }
 0x223   :  { %v4796_v35 = vadd.f32 %v3775_v27, %v3537_v30 }
 0x224   :  { %v349_v28 = vpop.f32.mrf.mxu1 }
 0x225   :  { %v4792_v33 = vadd.f32 %v3537_v30, %v349_v28 }
 0x226   :  { %v3776_v29 = vpop.f32.mrf.mxu1 }
 0x227   :  { %v4790_v31 = vadd.f32 %v3776_v29, %v3537_v30 }
 0x228   :  { %v352_v32 = vpop.f32.mrf.mxu1 }
 0x229   :  { %v4794_v34 = vadd.f32 %v3537_v30, %v352_v32  ;;  %v369_v37 = vpack.c.bf16 %v4790_v31, %v4796_v35 }
 0x22b   :  { %v368_v36 = vpack.c.bf16 %v4794_v34, %v4792_v33 }
 0x22d   :  { %3781 = vmatprep.mubr.msk.bf16.mxu0 %vm308_vm2, %v368_v36 }
 0x22e   :  { %3782 = vmatmul.mubr.msk.bf16.vlgmr.msra.gmra.mxu0 %vm308_vm2, %v369_v37 }
 0x22f   :  { %3793 = vmatprep.mubr.msk.bf16.mxu0 %vm4592_vm3, %v4591_v38 }
 0x2ee   :  { %v3783_v39 = vpop.f32.mrf.mxu0 }
 0x2ef   :  { %v438_v48 = vadd.f32 %v3783_v39, %v3542_v42 }
 0x2f0   :  { %v429_v40 = vpop.f32.mrf.mxu0 }
 0x2f1   :  { %v430_v44 = vadd.f32 %v3542_v42, %v429_v40 }
 0x2f2   :  { %v3784_v41 = vpop.f32.mrf.mxu0 }
 0x2f3   :  { %v441_v47 = vadd.f32 %v3784_v41, %v3542_v42 }
 0x2f4   :  { %v432_v43 = vpop.f32.mrf.mxu0 }
 0x2f5   :  { %v433_v45 = vadd.f32 %v3542_v42, %v432_v43  ;;  %v4827_v49 = vpack.c.bf16 %v441_v47, %v438_v48 }
 0x2f7   :  { %v4813_v46 = vpack.c.bf16 %v433_v45, %v430_v44 }
 0x2f9   :  { %566 = vrot.lane.b32.xlu1 %v4813_v46, %s4593_s12  ;;  %446 = vrot.lane.b32.xlu0 %v4813_v46, %s4594_s16 }
 0x2fd   :  { %689 = vrot.lane.b32.xlu1 %v4813_v46, %s4595_s24  ;;  %568 = vrot.lane.b32.xlu0 %v4813_v46, %s4596_s15 }
 0x301   :  { %810 = vrot.lane.b32.xlu1 %v4813_v46, %s4597_s26  ;;  %687 = vrot.lane.b32.xlu0 %v4813_v46, %s4598_s25 }
 0x305   :  { %962 = vrot.lane.b32.xlu1 %v4827_v49, %s4594_s16  ;;  %808 = vrot.lane.b32.xlu0 %v4813_v46, %s4599_s27 }
 0x309   :  { %1081 = vrot.lane.b32.xlu1 %v4827_v49, %s4593_s12  ;;  %1083 = vrot.lane.b32.xlu0 %v4827_v49, %s4596_s15 }
 0x30d   :  { %1202 = vrot.lane.b32.xlu1 %v4827_v49, %s4598_s25  ;;  %1204 = vrot.lane.b32.xlu0 %v4827_v49, %s4595_s24 }
 0x311   :  { %1323 = vrot.lane.b32.xlu1 %v4827_v49, %s4599_s27  ;;  %1325 = vrot.lane.b32.xlu0 %v4827_v49, %s4597_s26 }
 0x315   :  { %519 = vrot.lane.b32.xlu1 %v4813_v46, %s4600_s18 }
 0x36b   :  { %v567_v50 = vpop.permute.xlu1 %566  ;;  %v447_v51 = vpop.permute.xlu0 %446 }
 0x36c   :  { %v452_v52 = vsel %vm219_vm1, %v447_v51, 0 }
 0x36d   :  { %3786 = vmatpush3.bf16.xpose.msra.mxu1 %v452_v52 }
 0x36e   :  { %3797 = vmatprep.subr.bf16.mxu1 %v4591_v38 }
 0x36f   :  { %v690_v53 = vpop.permute.xlu1 %689  ;;  %v569_v54 = vpop.permute.xlu0 %568 }
 0x370   :  { %v574_v56 = vsel %vm219_vm1, %v569_v54, 0  ;;  %v695_v59 = vsel %vm219_vm1, %v690_v53, 0 }
 0x373   :  { %v811_v55 = vpop.permute.xlu1 %810  ;;  %v688_v61 = vpop.permute.xlu0 %687 }
 0x374   :  { %3788 = vmatmul.mubr.msk.bf16.vlgmr.msra.gmra.mxu1 %vm219_vm1, %v4813_v46  ;;  %v816_v63 = vsel %vm219_vm1, %v811_v55, 0 }
 0x375   :  { %3798 = vmatpush3.bf16.xpose.msra.mxu1 %v574_v56  ;;  %3799 = vmatprep.mubr.msk.bf16.mxu1 %vm4592_vm3, %v4591_v38 }
 0x376   :  { %3809 = vmatprep.subr.bf16.mxu1 %v4591_v38 }
 0x377   :  { %v963_v57 = vpop.permute.xlu1 %962  ;;  %v809_v1 = vpop.permute.xlu0 %808 }
 0x378   :  { %v968_v2 = vsel %vm219_vm1, %v963_v57, 0 }
 0x37b   :  { %v1082_v58 = vpop.permute.xlu1 %1081  ;;  %v1084_v3 = vpop.permute.xlu0 %1083 }
 0x37c   :  { %3800 = vmatmul.mubr.msk.bf16.vlgmr.msra.gmra.mxu1 %vm219_vm1, %v567_v50  ;;  %v1089_v4 = vsel %vm219_vm1, %v1084_v3, 0 }
 0x37d   :  { %3810 = vmatpush3.bf16.xpose.msra.mxu1 %v695_v59  ;;  %3811 = vmatprep.mubr.msk.bf16.mxu1 %vm4592_vm3, %v4591_v38 }
 0x37e   :  { %3821 = vmatprep.subr.bf16.mxu1 %v4591_v38 }
 0x37f   :  { %v1203_v60 = vpop.permute.xlu1 %1202  ;;  %v1205_v5 = vpop.permute.xlu0 %1204 }
 0x380   :  { %v1210_v6 = vsel %vm219_vm1, %v1205_v5, 0 }
 0x383   :  { %v1324_v62 = vpop.permute.xlu1 %1323  ;;  %v1326_v7 = vpop.permute.xlu0 %1325 }
 0x384   :  { %3812 = vmatmul.mubr.msk.bf16.vlgmr.msra.gmra.mxu1 %vm219_vm1, %v688_v61  ;;  %v1331_v8 = vsel %vm219_vm1, %v1326_v7, 0 }
 0x385   :  { %3822 = vmatpush3.bf16.xpose.msra.mxu1 %v816_v63  ;;  %3823 = vmatprep.mubr.msk.bf16.mxu1 %vm4592_vm3, %v4591_v38 }
 0x386   :  { %3833 = vmatprep.subr.bf16.mxu1 %v4591_v38 }
 0x387   :  { %v520_v0 = vpop.permute.xlu1 %519 }
 0x388   :  { %3792 = vmatpush3.bf16.msra.mxu0 %v520_v0 }
 0x389   :  { %3803 = vmatprep.subr.bf16.mxu0 %v4591_v38 }
 0x38c   :  { %3824 = vmatmul.mubr.msk.bf16.vlgmr.msra.gmra.mxu1 %vm219_vm1, %v809_v1 }
 0x38d   :  { %3834 = vmatpush3.bf16.xpose.msra.mxu1 %v968_v2  ;;  %3835 = vmatprep.mubr.msk.bf16.mxu1 %vm4592_vm3, %v4591_v38 }
 0x38e   :  { %3845 = vmatprep.subr.bf16.mxu1 %v4591_v38 }
 0x394   :  { %3836 = vmatmul.mubr.msk.bf16.vlgmr.msra.gmra.mxu1 %vm219_vm1, %v4827_v49 }
 0x395   :  { %3846 = vmatpush3.bf16.xpose.msra.mxu1 %v1089_v4  ;;  %3847 = vmatprep.mubr.msk.bf16.mxu1 %vm4592_vm3, %v4591_v38 }
 0x396   :  { %3857 = vmatprep.subr.bf16.mxu1 %v4591_v38 }
 0x39c   :  { %3848 = vmatmul.mubr.msk.bf16.vlgmr.msra.gmra.mxu1 %vm219_vm1, %v1082_v58 }
 0x39d   :  { %3858 = vmatpush3.bf16.xpose.msra.mxu1 %v1210_v6  ;;  %3859 = vmatprep.mubr.msk.bf16.mxu1 %vm4592_vm3, %v4591_v38 }
 0x39e   :  { %3869 = vmatprep.subr.bf16.mxu1 %v4591_v38 }
 0x3a4   :  { %3860 = vmatmul.mubr.msk.bf16.vlgmr.msra.gmra.mxu1 %vm219_vm1, %v1203_v60 }
 0x3a5   :  { %3870 = vmatpush3.bf16.xpose.msra.mxu1 %v1331_v8  ;;  %3871 = vmatprep.mubr.msk.bf16.mxu1 %vm4592_vm3, %v4591_v38 }
 0x3ac   :  { %3872 = vmatmul.mubr.msk.bf16.vlgmr.msra.gmra.mxu1 %vm219_vm1, %v1324_v62 }
 0x434   :  { %v4887_v9 = vpop.f32.mrf.mxu1 }
 0x435   :  { %v496_v10 = vsel %vm495_vm4, %v4887_v9, -inf }
 0x436   :  { %497 = vmax.xlane.f32.xlu0 %v496_v10  ;;  %v3789_v11 = vpop.f32.mrf.mxu1 }
 0x438   :  { %v4891_v12 = vpop.f32.mrf.mxu1 }
 0x439   :  { %v499_v13 = vsel %vm495_vm4, %v4891_v12, -inf }
 0x43a   :  { %500 = vmax.xlane.f32.xlu1 %v499_v13  ;;  %v3790_v14 = vpop.f32.mrf.mxu1 }
 0x43c   :  { %v4895_v15 = vpop.f32.mrf.mxu1 }
 0x43d   :  { %v617_v16 = vsel %vm495_vm4, %v4895_v15, -inf }
 0x43e   :  { %618 = vmax.xlane.f32.xlu0 %v617_v16  ;;  %v3801_v17 = vpop.f32.mrf.mxu1 }
 0x440   :  { %v4899_v18 = vpop.f32.mrf.mxu1 }
 0x441   :  { %v620_v19 = vsel %vm495_vm4, %v4899_v18, -inf }
 0x442   :  { %621 = vmax.xlane.f32.xlu0 %v620_v19  ;;  %v3802_v20 = vpop.f32.mrf.mxu1 }
 0x444   :  { %v4903_v21 = vpop.f32.mrf.mxu1 }
 0x445   :  { %v738_v22 = vsel %vm495_vm4, %v4903_v21, -inf }
 0x446   :  { %739 = vmax.xlane.f32.xlu1 %v738_v22  ;;  %v3813_v23 = vpop.f32.mrf.mxu1 }
 0x448   :  { %v4907_v24 = vpop.f32.mrf.mxu1 }
 0x449   :  { %v741_v25 = vsel %vm495_vm4, %v4907_v24, -inf }
 0x44a   :  { %742 = vmax.xlane.f32.xlu0 %v741_v25  ;;  %v3814_v26 = vpop.f32.mrf.mxu1 }
 0x44c   :  { %v4911_v27 = vpop.f32.mrf.mxu1 }
 0x44d   :  { %v859_v28 = vsel %vm495_vm4, %v4911_v27, -inf }
 0x44e   :  { %860 = vmax.xlane.f32.xlu1 %v859_v28  ;;  %v3825_v29 = vpop.f32.mrf.mxu1 }
 0x450   :  { %v4915_v30 = vpop.f32.mrf.mxu1 }
 0x451   :  { %v862_v32 = vsel %vm495_vm4, %v4915_v30, -inf }
 0x452   :  { %863 = vmax.xlane.f32.xlu0 %v862_v32  ;;  %v3826_v36 = vpop.f32.mrf.mxu1 }
 0x454   :  { %v4919_v37 = vpop.f32.mrf.mxu1 }
 0x455   :  { %v1011_v39 = vsel %vm495_vm4, %v4919_v37, -inf }
 0x456   :  { %1012 = vmax.xlane.f32.xlu1 %v1011_v39  ;;  %v3837_v40 = vpop.f32.mrf.mxu1 }
 0x458   :  { %v4923_v41 = vpop.f32.mrf.mxu1 }
 0x459   :  { %v1014_v42 = vsel %vm495_vm4, %v4923_v41, -inf }
 0x45a   :  { %1015 = vmax.xlane.f32.xlu0 %v1014_v42  ;;  %v3838_v43 = vpop.f32.mrf.mxu1 }
 0x45c   :  { %v4927_v44 = vpop.f32.mrf.mxu1 }
 0x45d   :  { %v1132_v45 = vsel %vm495_vm4, %v4927_v44, -inf }
 0x45e   :  { %1133 = vmax.xlane.f32.xlu1 %v1132_v45  ;;  %v3849_v47 = vpop.f32.mrf.mxu1 }
 0x460   :  { %v4931_v48 = vpop.f32.mrf.mxu1 }
 0x461   :  { %v1135_v50 = vsel %vm495_vm4, %v4931_v48, -inf }
 0x462   :  { %1136 = vmax.xlane.f32.xlu0 %v1135_v50  ;;  %v3850_v51 = vpop.f32.mrf.mxu1 }
 0x464   :  { %v4935_v52 = vpop.f32.mrf.mxu1 }
 0x465   :  { %v1253_v53 = vsel %vm495_vm4, %v4935_v52, -inf }
 0x466   :  { %1254 = vmax.xlane.f32.xlu1 %v1253_v53  ;;  %v3861_v54 = vpop.f32.mrf.mxu1 }
 0x468   :  { %v4939_v55 = vpop.f32.mrf.mxu1 }
 0x469   :  { %v1256_v56 = vsel %vm495_vm4, %v4939_v55, -inf }
 0x46a   :  { %1257 = vmax.xlane.f32.xlu0 %v1256_v56  ;;  %v3862_v57 = vpop.f32.mrf.mxu1 }
 0x46c   :  { %v4943_v58 = vpop.f32.mrf.mxu1 }
 0x46d   :  { %v1374_v59 = vsel %vm495_vm4, %v4943_v58, -inf }
 0x46e   :  { %1375 = vmax.xlane.f32.xlu1 %v1374_v59  ;;  %v3873_v60 = vpop.f32.mrf.mxu1 }
 0x470   :  { %v4947_v61 = vpop.f32.mrf.mxu1 }
 0x471   :  { %v1377_v62 = vsel %vm495_vm4, %v4947_v61, -inf }
 0x472   :  { %1378 = vmax.xlane.f32.xlu0 %v1377_v62  ;;  %v3874_v63 = vpop.f32.mrf.mxu1 }
 0x47f   :  { %761 = vrot.lane.b32.xlu1 %v4813_v46, %s4601_s28 }
 0x488   :  { %640 = vrot.lane.b32.xlu0 %v4813_v46, %s4602_s10 }
 0x4bf   :  { %v498_v0 = vpop.xlane.xlu0 %497 }
 0x4c0   :  { %v502_v1 = vsub.f32 %v4887_v9, %v498_v0 }
 0x4c2   :  { %v504_v2 = vmul.f32 1.442695, %v502_v1 }
 0x4c3   :  { %v501_v3 = vpop.xlane.xlu1 %500 }
 0x4c4   :  { %4164 = vpow2.f32 %v504_v2  ;;  %v503_v4 = vsub.f32 %v4891_v12, %v501_v3 }
 0x4c6   :  { %v506_v5 = vmul.f32 1.442695, %v503_v4 }
 0x4c7   :  { %v619_v6 = vpop.xlane.xlu0 %618 }
 0x4c8   :  { %4166 = vpow2.f32 %v506_v5  ;;  %v623_v7 = vsub.f32 %v4895_v15, %v619_v6 }
 0x4ca   :  { %v625_v8 = vmul.f32 1.442695, %v623_v7 }
 0x4cb   :  { %v622_v10 = vpop.xlane.xlu0 %621 }
 0x4cc   :  { %4168 = vpow2.f32 %v625_v8  ;;  %v624_v11 = vsub.f32 %v4899_v18, %v622_v10 }
 0x4ce   :  { %v627_v13 = vmul.f32 1.442695, %v624_v11 }
 0x4cf   :  { %v740_v14 = vpop.xlane.xlu1 %739 }
 0x4d0   :  { %4170 = vpow2.f32 %v627_v13  ;;  %v744_v9 = vsub.f32 %v4903_v21, %v740_v14 }
 0x4d1   :  { %v4960_v16 = vpop.eup %4164 }
 0x4d2   :  { %v746_v17 = vmul.f32 1.442695, %v744_v9  ;;  %v508_v12 = vsel %vm495_vm4, %v4960_v16, 0.0 }
 0x4d3   :  { %509 = vadd.xlane.f32.xlu1 %v508_v12  ;;  %v743_v19 = vpop.xlane.xlu0 %742 }
 0x4d4   :  { %4172 = vpow2.f32 %v746_v17  ;;  %v745_v15 = vsub.f32 %v4907_v24, %v743_v19 }
 0x4d5   :  { %v4965_v20 = vpop.eup %4166 }
 0x4d6   :  { %v748_v22 = vmul.f32 1.442695, %v745_v15  ;;  %v511_v18 = vsel %vm495_vm4, %v4965_v20, 0.0 }
 0x4d7   :  { %v861_v23 = vpop.xlane.xlu1 %860  ;;  %512 = vadd.xlane.f32.xlu0 %v511_v18 }
 0x4d8   :  { %4174 = vpow2.f32 %v748_v22  ;;  %v865_v21 = vsub.f32 %v4911_v27, %v861_v23 }
 0x4d9   :  { %v4970_v25 = vpop.eup %4168 }
 0x4da   :  { %v867_v26 = vmul.f32 1.442695, %v865_v21  ;;  %v629_v28 = vsel %vm495_vm4, %v4970_v25, 0.0 }
 0x4db   :  { %630 = vadd.xlane.f32.xlu1 %v629_v28  ;;  %v864_v29 = vpop.xlane.xlu0 %863 }
 0x4dc   :  { %4176 = vpow2.f32 %v867_v26  ;;  %v866_v24 = vsub.f32 %v4915_v30, %v864_v29 }
 0x4dd   :  { %v4975_v32 = vpop.eup %4170 }
 0x4de   :  { %v869_v36 = vmul.f32 1.442695, %v866_v24  ;;  %v632_v39 = vsel %vm495_vm4, %v4975_v32, 0.0 }
 0x4df   :  { %v1013_v40 = vpop.xlane.xlu1 %1012  ;;  %633 = vadd.xlane.f32.xlu0 %v632_v39 }
 0x4e0   :  { %4178 = vpow2.f32 %v869_v36  ;;  %v1017_v27 = vsub.f32 %v4919_v37, %v1013_v40 }
 0x4e1   :  { %v4980_v42 = vpop.eup %4172 }
 0x4e2   :  { %v1019_v43 = vmul.f32 1.442695, %v1017_v27  ;;  %v750_v45 = vsel %vm495_vm4, %v4980_v42, 0.0 }
 0x4e3   :  { %751 = vadd.xlane.f32.xlu1 %v750_v45  ;;  %v1016_v47 = vpop.xlane.xlu0 %1015 }
 0x4e4   :  { %4180 = vpow2.f32 %v1019_v43  ;;  %v1018_v30 = vsub.f32 %v4923_v41, %v1016_v47 }
 0x4e5   :  { %v4985_v50 = vpop.eup %4174 }
 0x4e6   :  { %v1021_v51 = vmul.f32 1.442695, %v1018_v30  ;;  %v753_v53 = vsel %vm495_vm4, %v4985_v50, 0.0 }
 0x4e7   :  { %v1134_v54 = vpop.xlane.xlu1 %1133  ;;  %754 = vadd.xlane.f32.xlu0 %v753_v53 }
 0x4e8   :  { %4182 = vpow2.f32 %v1021_v51  ;;  %v1138_v37 = vsub.f32 %v4927_v44, %v1134_v54 }
 0x4e9   :  { %v4990_v56 = vpop.eup %4176 }
 0x4ea   :  { %v1140_v57 = vmul.f32 1.442695, %v1138_v37  ;;  %v871_v59 = vsel %vm495_vm4, %v4990_v56, 0.0 }
 0x4eb   :  { %872 = vadd.xlane.f32.xlu1 %v871_v59  ;;  %v1137_v60 = vpop.xlane.xlu0 %1136 }
 0x4ec   :  { %4184 = vpow2.f32 %v1140_v57  ;;  %v1139_v41 = vsub.f32 %v4931_v48, %v1137_v60 }
 0x4ed   :  { %v4995_v62 = vpop.eup %4178 }
 0x4ee   :  { %v1142_v63 = vmul.f32 1.442695, %v1139_v41  ;;  %v874_v0 = vsel %vm495_vm4, %v4995_v62, 0.0 }
 0x4ef   :  { %v1255_v1 = vpop.xlane.xlu1 %1254  ;;  %875 = vadd.xlane.f32.xlu0 %v874_v0 }
 0x4f0   :  { %4186 = vpow2.f32 %v1142_v63  ;;  %v1259_v44 = vsub.f32 %v4935_v52, %v1255_v1 }
 0x4f1   :  { %v5000_v2 = vpop.eup %4180 }
 0x4f2   :  { %v1261_v3 = vmul.f32 1.442695, %v1259_v44  ;;  %v1023_v4 = vsel %vm495_vm4, %v5000_v2, 0.0 }
 0x4f3   :  { %1024 = vadd.xlane.f32.xlu0 %v1023_v4  ;;  %v1258_v5 = vpop.xlane.xlu0 %1257 }
 0x4f4   :  { %4188 = vpow2.f32 %v1261_v3  ;;  %v1260_v48 = vsub.f32 %v4939_v55, %v1258_v5 }
 0x4f5   :  { %v5005_v6 = vpop.eup %4182 }
 0x4f6   :  { %v1263_v7 = vmul.f32 1.442695, %v1260_v48  ;;  %v1026_v8 = vsel %vm495_vm4, %v5005_v6, 0.0 }
 0x4f7   :  { %v1376_v10 = vpop.xlane.xlu1 %1375  ;;  %1027 = vadd.xlane.f32.xlu0 %v1026_v8 }
 0x4f8   :  { %4190 = vpow2.f32 %v1263_v7  ;;  %v1380_v52 = vsub.f32 %v4943_v58, %v1376_v10 }
 0x4f9   :  { %v5010_v11 = vpop.eup %4184 }
 0x4fa   :  { %v1382_v13 = vmul.f32 1.442695, %v1380_v52  ;;  %v1144_v14 = vsel %vm495_vm4, %v5010_v11, 0.0 }
 0x4fb   :  { %1145 = vadd.xlane.f32.xlu1 %v1144_v14  ;;  %v1379_v18 = vpop.xlane.xlu0 %1378 }
 0x4fc   :  { %4192 = vpow2.f32 %v1382_v13  ;;  %v1381_v23 = vsub.f32 %v4947_v61, %v1379_v18  ;;  %v762_v61 = vpop.permute.xlu1 %761 }
 0x4fd   :  { %v5014_v55 = vpop.eup %4186 }
 0x4fe   :  { %v1147_v9 = vsel %vm495_vm4, %v5014_v55, 0.0  ;;  %v1384_v21 = vmul.f32 1.442695, %v1381_v23 }
 0x4ff   :  { %1148 = vadd.xlane.f32.xlu0 %v1147_v9  ;;  %v641_v28 = vpop.permute.xlu0 %640 }
 0x500   :  { %4194 = vpow2.f32 %v1384_v21 }
 0x501   :  { %v5018_v17 = vpop.eup %4188 }
 0x502   :  { %v1265_v12 = vsel %vm495_vm4, %v5018_v17, 0.0 }
 0x503   :  { %1266 = vadd.xlane.f32.xlu0 %v1265_v12 }
 0x505   :  { %v5022_v58 = vpop.eup %4190 }
 0x506   :  { %v1268_v19 = vsel %vm495_vm4, %v5022_v58, 0.0 }
 0x507   :  { %1269 = vadd.xlane.f32.xlu0 %v1268_v19 }
 0x509   :  { %v5026_v15 = vpop.eup %4192 }
 0x50a   :  { %v1386_v22 = vsel %vm495_vm4, %v5026_v15, 0.0 }
 0x50b   :  { %1387 = vadd.xlane.f32.xlu0 %v1386_v22 }
 0x50c   :  { %882 = vrot.lane.b32.xlu1 %v4813_v46, %s4603_s29 }
 0x50d   :  { %v5039_v26 = vpop.eup %4194 }
 0x50e   :  { %v1389_v46 = vsel %vm495_vm4, %v5039_v26, 0.0 }
 0x521   :  { %1034 = vrot.lane.b32.xlu0 %v4827_v49, %s4600_s18 }
 0x525   :  { %1155 = vrot.lane.b32.xlu0 %v4827_v49, %s4602_s10 }
 0x529   :  { %1276 = vrot.lane.b32.xlu0 %v4827_v49, %s4601_s28 }
 0x52d   :  { %1397 = vrot.lane.b32.xlu0 %v4827_v49, %s4603_s29 }
 0x530   :  { %1390 = vadd.xlane.f32.xlu1 %v1389_v46 }
 0x55c   :  { %v510_v29 = vpop.xlane.xlu1 %509 }
 0x55d   :  { %4196 = vrcp.f32 %v510_v29 }
 0x560   :  { %v513_v24 = vpop.xlane.xlu0 %512 }
 0x561   :  { %4198 = vrcp.f32 %v513_v24 }
 0x564   :  { %v631_v36 = vpop.xlane.xlu1 %630 }
 0x565   :  { %4200 = vrcp.f32 %v631_v36 }
 0x568   :  { %v634_v39 = vpop.xlane.xlu0 %633 }
 0x569   :  { %4202 = vrcp.f32 %v634_v39 }
 0x56a   :  { %v4197_v40 = vpop.eup %4196 }
 0x56b   :  { %v516_v49 = vmul.f32 %v4197_v40, %v4960_v16 }
 0x56c   :  { %v752_v27 = vpop.xlane.xlu1 %751 }
 0x56d   :  { %4204 = vrcp.f32 %v752_v27 }
 0x56e   :  { %v4199_v43 = vpop.eup %4198 }
 0x56f   :  { %v517_v45 = vmul.f32 %v4199_v43, %v4965_v20 }
 0x570   :  { %v755_v47 = vpop.xlane.xlu0 %754 }
 0x571   :  { %4206 = vrcp.f32 %v755_v47  ;;  %v518_v30 = vpack.c.bf16 %v517_v45, %v516_v49 }
 0x572   :  { %v4201_v51 = vpop.eup %4200 }
 0x573   :  { %3794 = vmatmul.mubr.msk.bf16.vlgmr.msra.gmra.mxu0 %vm495_vm4, %v518_v30  ;;  %v637_v37 = vmul.f32 %v4201_v51, %v4970_v25 }
 0x574   :  { %3804 = vmatpush3.bf16.msra.mxu0 %v641_v28  ;;  %v873_v53 = vpop.xlane.xlu1 %872  ;;  %3805 = vmatprep.mubr.msk.bf16.mxu0 %vm4592_vm3, %v4591_v38 }
 0x575   :  { %3815 = vmatprep.subr.bf16.mxu0 %v4591_v38  ;;  %4208 = vrcp.f32 %v873_v53 }
 0x576   :  { %v4203_v54 = vpop.eup %4202 }
 0x577   :  { %v638_v16 = vmul.f32 %v4203_v54, %v4975_v32 }
 0x578   :  { %v876_v20 = vpop.xlane.xlu0 %875 }
 0x579   :  { %4210 = vrcp.f32 %v876_v20  ;;  %v639_v57 = vpack.c.bf16 %v638_v16, %v637_v37 }
 0x57a   :  { %v4205_v59 = vpop.eup %4204 }
 0x57b   :  { %3806 = vmatmul.mubr.msk.bf16.vlgmr.msra.gmra.mxu0 %vm495_vm4, %v639_v57  ;;  %v758_v63 = vmul.f32 %v4205_v59, %v4980_v42 }
 0x57c   :  { %3816 = vmatpush3.bf16.msra.mxu0 %v762_v61  ;;  %3817 = vmatprep.mubr.msk.bf16.mxu0 %vm4592_vm3, %v4591_v38  ;;  %v1025_v60 = vpop.xlane.xlu0 %1024 }
 0x57d   :  { %3827 = vmatprep.subr.bf16.mxu0 %v4591_v38 }
 0x57e   :  { %v4207_v41 = vpop.eup %4206 }
 0x57f   :  { %v759_v25 = vmul.f32 %v4207_v41, %v4985_v50 }
 0x580   :  { %v1028_v32 = vpop.xlane.xlu0 %1027 }
 0x581   :  { %v760_v0 = vpack.c.bf16 %v759_v25, %v758_v63  ;;  %4212 = vrcp.f32 %v1028_v32 }
 0x582   :  { %v4209_v1 = vpop.eup %4208  ;;  %4214 = vrcp.f32 %v1025_v60 }
 0x583   :  { %3818 = vmatmul.mubr.msk.bf16.vlgmr.msra.gmra.mxu0 %vm495_vm4, %v760_v0  ;;  %v879_v4 = vmul.f32 %v4209_v1, %v4990_v56 }
 0x584   :  { %v1146_v44 = vpop.xlane.xlu1 %1145  ;;  %3829 = vmatprep.mubr.msk.bf16.mxu0 %vm4592_vm3, %v4591_v38 }
 0x586   :  { %v4211_v3 = vpop.eup %4210 }
 0x587   :  { %v880_v5 = vmul.f32 %v4211_v3, %v4995_v62 }
 0x588   :  { %v883_v48 = vpop.permute.xlu1 %882  ;;  %v1149_v42 = vpop.xlane.xlu0 %1148 }
 0x589   :  { %3828 = vmatpush3.bf16.msra.mxu0 %v883_v48  ;;  %v881_v50 = vpack.c.bf16 %v880_v5, %v879_v4  ;;  %4216 = vrcp.f32 %v1149_v42  ;;  %v4144_v4 = vld [vmem:[%s5556_s7 + $0x8] sm:$0xff]  }
 0x58a   :  { %3839 = vmatprep.subr.bf16.mxu0 %v4591_v38  ;;  %4218 = vrcp.f32 %v1146_v44  ;;  %3881 = vmatprep.subr.bf16.mxu1 %v4144_v4 }
 0x58b   :  { %3882 = vmatpush3.bf16.msra.mxu1 %v4144_v4 }
 0x58c   :  { %3830 = vmatmul.mubr.msk.bf16.vlgmr.msra.gmra.mxu0 %vm495_vm4, %v881_v50  ;;  %v1267_v7 = vpop.xlane.xlu0 %1266 }
 0x58d   :  { %3841 = vmatprep.mubr.msk.bf16.mxu0 %vm4592_vm3, %v4591_v38 }
 0x58e   :  { %v4213_v10 = vpop.eup %4212 }
 0x58f   :  { %v4215_v52 = vpop.eup %4214  ;;  %v1032_v62 = vmul.f32 %v4213_v10, %v5005_v6 }
 0x590   :  { %v1270_v8 = vpop.xlane.xlu0 %1269  ;;  %v1031_v14 = vmul.f32 %v4215_v52, %v5000_v2 }
 0x591   :  { %4220 = vrcp.f32 %v1270_v8 }
 0x592   :  { %4222 = vrcp.f32 %v1267_v7  ;;  %v1033_v9 = vpack.c.bf16 %v1032_v62, %v1031_v14 }
 0x594   :  { %v1388_v56 = vpop.xlane.xlu0 %1387 }
 0x595   :  { %4224 = vrcp.f32 %v1388_v56  ;;  %v4145_v56 = vld [vmem:[%s5556_s7] sm:$0xff]  }
 0x596   :  { %v4217_v12 = vpop.eup %4216  ;;  %3883 = vmatprep.subr.bf16.mxu1 %v4145_v56 }
 0x597   :  { %v4219_v22 = vpop.eup %4218  ;;  %v1153_v6 = vmul.f32 %v4217_v12, %v5014_v55  ;;  %3884 = vmatpush3.bf16.msra.mxu1 %v4145_v56 }
 0x598   :  { %v1035_v13 = vpop.permute.xlu0 %1034  ;;  %v1152_v18 = vmul.f32 %v4219_v22, %v5010_v11 }
 0x599   :  { %3840 = vmatpush3.bf16.msra.mxu0 %v1035_v13 }
 0x59a   :  { %3851 = vmatprep.subr.bf16.mxu0 %v4591_v38  ;;  %v1154_v2 = vpack.c.bf16 %v1153_v6, %v1152_v18 }
 0x59c   :  { %3842 = vmatmul.mubr.msk.bf16.vlgmr.msra.gmra.mxu0 %vm495_vm4, %v1033_v9  ;;  %v1156_v19 = vpop.permute.xlu0 %1155 }
 0x59d   :  { %3852 = vmatpush3.bf16.msra.mxu0 %v1156_v19  ;;  %3853 = vmatprep.mubr.msk.bf16.mxu0 %vm4592_vm3, %v4591_v38 }
 0x59e   :  { %3863 = vmatprep.subr.bf16.mxu0 %v4591_v38  ;;  %v4221_v23 = vpop.eup %4220 }
 0x59f   :  { %v4223_v46 = vpop.eup %4222  ;;  %v1274_v61 = vmul.f32 %v4221_v23, %v5022_v58 }
 0x5a0   :  { %v1277_v21 = vpop.permute.xlu0 %1276  ;;  %v1273_v28 = vmul.f32 %v4223_v46, %v5018_v17 }
 0x5a2   :  { %v1275_v29 = vpack.c.bf16 %v1274_v61, %v1273_v28  ;;  %v4225_v24 = vpop.eup %4224 }
 0x5a3   :  { %v1394_v39 = vmul.f32 %v4225_v24, %v5026_v15 }
 0x5a4   :  { %3854 = vmatmul.mubr.msk.bf16.vlgmr.msra.gmra.mxu0 %vm495_vm4, %v1154_v2  ;;  %v1398_v55 = vpop.permute.xlu0 %1397 }
 0x5a5   :  { %3864 = vmatpush3.bf16.msra.mxu0 %v1277_v21  ;;  %3865 = vmatprep.mubr.msk.bf16.mxu0 %vm4592_vm3, %v4591_v38 }
 0x5a6   :  { %3875 = vmatprep.subr.bf16.mxu0 %v4591_v38 }
 0x5ac   :  { %3866 = vmatmul.mubr.msk.bf16.vlgmr.msra.gmra.mxu0 %vm495_vm4, %v1275_v29 }
 0x5ad   :  { %3876 = vmatpush3.bf16.msra.mxu0 %v1398_v55  ;;  %3877 = vmatprep.mubr.msk.bf16.mxu0 %vm4592_vm3, %v4591_v38 }
 0x5b9   :  { %v1391_v11 = vpop.xlane.xlu1 %1390 }
 0x5ba   :  { %4226 = vrcp.f32 %v1391_v11 }
 0x5c7   :  { %v4227_v36 = vpop.eup %4226 }
 0x5c8   :  { %v1395_v40 = vmul.f32 %v4227_v36, %v5039_v26 }
 0x5ca   :  { %v1396_v58 = vpack.c.bf16 %v1395_v40, %v1394_v39 }
 0x5cc   :  { %3878 = vmatmul.mubr.msk.bf16.vlgmr.msra.gmra.mxu0 %vm495_vm4, %v1396_v58 }
 0x633   :  { %v559_v17 = vpop.f32.mrf.mxu0 }
 0x635   :  { %v3795_v27 = vpop.f32.mrf.mxu0 }
 0x637   :  { %v562_v43 = vpop.f32.mrf.mxu0 }
 0x639   :  { %v3796_v49 = vpop.f32.mrf.mxu0 }
 0x63b   :  { %v680_v45 = vpop.f32.mrf.mxu0 }
 0x63d   :  { %v3807_v47 = vpop.f32.mrf.mxu0 }
 0x63f   :  { %v683_v30 = vpop.f32.mrf.mxu0 }
 0x640   :  { %v4080_v51 = vpack.i.bf16 %v683_v30, %v680_v45 }
 0x641   :  { %v3808_v53 = vpop.f32.mrf.mxu0 }
 0x642   :  { %4081 = vrot.lane.b32.xlu0 %v4080_v51, %s4604_s0 }
 0x643   :  { %v801_v54 = vpop.f32.mrf.mxu0 }
 0x645   :  { %v3819_v37 = vpop.f32.mrf.mxu0 }
 0x647   :  { %v804_v15 = vpop.f32.mrf.mxu0 }
 0x648   :  { %v4085_v16 = vpack.i.bf16 %v804_v15, %v801_v54 }
 0x649   :  { %v3820_v26 = vpop.f32.mrf.mxu0 }
 0x64a   :  { %4086 = vrot.lane.b32.xlu1 %v4085_v16, %s4580_s3 }
 0x64c   :  { %v922_v20 = vpop.f32.mrf.mxu0 }
 0x64e   :  { %v3831_v57 = vpop.f32.mrf.mxu0 }
 0x650   :  { %v925_v59 = vpop.f32.mrf.mxu0 }
 0x651   :  { %v4090_v60 = vpack.i.bf16 %v925_v59, %v922_v20  ;;  %v3563_v20 = vld [vmem:[#allocation8] ss:$0 sm:$0xff] }
 0x652   :  { %v3832_v41 = vpop.f32.mrf.mxu0 }
 0x653   :  { %4091 = vrot.lane.b32.xlu0 %v4090_v60, %s4605_s14 }
 0x65c   :  { %v1074_v63 = vpop.f32.mrf.mxu0 }
 0x65e   :  { %v3843_v25 = vpop.f32.mrf.mxu0 }
 0x660   :  { %v1077_v0 = vpop.f32.mrf.mxu0 }
 0x662   :  { %v3844_v32 = vpop.f32.mrf.mxu0 }
 0x664   :  { %v1195_v1 = vpop.f32.mrf.mxu0 }
 0x666   :  { %v3855_v44 = vpop.f32.mrf.mxu0 }
 0x668   :  { %v1198_v3 = vpop.f32.mrf.mxu0 }
 0x669   :  { %v4095_v5 = vpack.i.bf16 %v1198_v3, %v1195_v1 }
 0x66a   :  { %v3856_v48 = vpop.f32.mrf.mxu0 }
 0x66b   :  { %4096 = vrot.lane.b32.xlu0 %v4095_v5, %s4604_s0 }
 0x66c   :  { %v1316_v42 = vpop.f32.mrf.mxu0 }
 0x66e   :  { %v3867_v50 = vpop.f32.mrf.mxu0 }
 0x670   :  { %v1319_v7 = vpop.f32.mrf.mxu0 }
 0x671   :  { %v4100_v8 = vpack.i.bf16 %v1319_v7, %v1316_v42 }
 0x672   :  { %v3868_v10 = vpop.f32.mrf.mxu0 }
 0x673   :  { %4101 = vrot.lane.b32.xlu0 %v4100_v8, %s4580_s3 }
 0x68c   :  { %v1437_v52 = vpop.f32.mrf.mxu0 }
 0x68e   :  { %v3879_v62 = vpop.f32.mrf.mxu0 }
 0x690   :  { %v1440_v13 = vpop.f32.mrf.mxu0 }
 0x691   :  { %v4105_v14 = vpack.i.bf16 %v1440_v13, %v1437_v52 }
 0x692   :  { %v3880_v9 = vpop.f32.mrf.mxu0 }
 0x693   :  { %4106 = vrot.lane.b32.xlu0 %v4105_v14, %s4605_s14 }
 0x6b4   :  { %v4082_v12 = vpop.permute.xlu0 %4081 }
 0x6b5   :  { %v4084_v22 = vunpack.i.h.bf16 %v4082_v12  ;;  %v4083_v6 = vunpack.i.l.bf16 %v4082_v12 }
 0x6b7   :  { %v954_v21 = vsel %vm219_vm1, %v562_v43, %v4084_v22  ;;  %v953_v46 = vsel %vm219_vm1, %v559_v17, %v4083_v6 }
 0x6bc   :  { %v4087_v19 = vpop.permute.xlu1 %4086 }
 0x6bd   :  { %v4089_v18 = vunpack.i.h.bf16 %v4087_v19  ;;  %v4088_v2 = vunpack.i.l.bf16 %v4087_v19 }
 0x6bf   :  { %v955_v29 = vsel %vm495_vm4, %v953_v46, %v4088_v2  ;;  %v956_v55 = vsel %vm495_vm4, %v954_v21, %v4089_v18  ;;  %v4147_v21 = vld [vmem:[%s5560_s11] sm:$0xff]   ;;  %v4148_v46 = vld [vmem:[%s5562_s13 + $0x18] sm:$0xff]  }
 0x6c0   :  { %3897 = vmatprep.subr.bf16.mxu1 %v4148_v46 }
 0x6c5   :  { %v4092_v23 = vpop.permute.xlu0 %4091 }
 0x6c6   :  { %v4094_v61 = vunpack.i.h.bf16 %v4092_v23  ;;  %v4093_v28 = vunpack.i.l.bf16 %v4092_v23  ;;  %v4146_v23 = vld [vmem:[%s5560_s11 + $0x8] sm:$0xff]  }
 0x6c7   :  { %3889 = vmatprep.subr.bf16.mxu0 %v4146_v23 }
 0x6c8   :  { %v958_v11 = vsel %vm957_vm5, %v955_v29, %v4093_v28  ;;  %v959_v24 = vsel %vm957_vm5, %v956_v55, %v4094_v61  ;;  %3890 = vmatpush3.bf16.msra.mxu0 %v4146_v23 }
 0x6c9   :  { %v1478_v36 = vpack.c.bf16 %v959_v24, %v958_v11  ;;  %3891 = vmatprep.subr.bf16.mxu0 %v4147_v21 }
 0x6cb   :  { %3885 = vmatprep.mubr.msk.bf16.mxu1 %vm308_vm2, %v1478_v36 }
 0x6cc   :  { %3892 = vmatpush3.bf16.msra.mxu0 %v4147_v21 }
 0x6dd   :  { %v4097_v39 = vpop.permute.xlu0 %4096 }
 0x6de   :  { %v4099_v58 = vunpack.i.h.bf16 %v4097_v39  ;;  %v4098_v27 = vunpack.i.l.bf16 %v4097_v39 }
 0x6e0   :  { %v1469_v45 = vsel %vm219_vm1, %v1077_v0, %v4099_v58  ;;  %v1468_v47 = vsel %vm219_vm1, %v1074_v63, %v4098_v27 }
 0x6e5   :  { %v4102_v40 = vpop.permute.xlu0 %4101 }
 0x6e6   :  { %v4104_v43 = vunpack.i.h.bf16 %v4102_v40  ;;  %v4103_v49 = vunpack.i.l.bf16 %v4102_v40 }
 0x6e8   :  { %v1470_v53 = vsel %vm495_vm4, %v1468_v47, %v4103_v49  ;;  %v1471_v54 = vsel %vm495_vm4, %v1469_v45, %v4104_v43  ;;  %v3568_v45 = vld [vmem:[#allocation10] ss:$0 sm:$0xff] }
 0x705   :  { %v4107_v17 = vpop.permute.xlu0 %4106 }
 0x706   :  { %v4109_v30 = vunpack.i.h.bf16 %v4107_v17  ;;  %v4108_v51 = vunpack.i.l.bf16 %v4107_v17 }
 0x708   :  { %v1472_v37 = vsel %vm957_vm5, %v1470_v53, %v4108_v51  ;;  %v1473_v15 = vsel %vm957_vm5, %v1471_v54, %v4109_v30  ;;  %v3569_v53 = vld [vmem:[#allocation11] ss:$0 sm:$0xff] }
 0x709   :  { %v1479_v16 = vpack.c.bf16 %v1473_v15, %v1472_v37 }
 0x70b   :  { %3886 = vmatmul.mubr.msk.bf16.vlgmr.msra.gmra.mxu1 %vm308_vm2, %v1479_v16 }
 0x70c   :  { %3898 = vmatpush3.bf16.msra.mxu1 %v4148_v46 }
 0x7cb   :  { %v3887_v26 = vpop.f32.mrf.mxu1 }
 0x7cc   :  { %v1548_v0 = vadd.f32 %v3887_v26, %v3563_v20 }
 0x7cd   :  { %v1539_v57 = vpop.f32.mrf.mxu1 }
 0x7ce   :  { %v1540_v59 = vadd.f32 %v3563_v20, %v1539_v57  ;;  %v1556_v48 = vadd.f32 %v1548_v0, %v4796_v35 }
 0x7cf   :  { %v3888_v60 = vpop.f32.mrf.mxu1 }
 0x7d0   :  { %v1551_v41 = vadd.f32 %v3888_v60, %v3563_v20  ;;  %v1554_v63 = vadd.f32 %v1540_v59, %v4792_v33  ;;  %v1566_v33 = vsel %vm308_vm2, %v1556_v48, 0.0 }
 0x7d1   :  { %v1542_v25 = vpop.f32.mrf.mxu1 }
 0x7d2   :  { %v1543_v32 = vadd.f32 %v3563_v20, %v1542_v25  ;;  %v1560_v1 = vsel %vm308_vm2, %v1554_v63, 0.0  ;;  %v1557_v44 = vadd.f32 %v1551_v41, %v4790_v31 }
 0x7d3   :  { %1561 = vadd.xlane.f32.xlu1 %v1560_v1  ;;  %v4150_v1 = vld [vmem:[%s5562_s13 + $0x8] sm:$0xff]  }
 0x7d4   :  { %v1555_v3 = vadd.f32 %v1543_v32, %v4794_v34  ;;  %v1569_v5 = vsel %vm308_vm2, %v1557_v44, 0.0  ;;  %v4149_v32 = vld [vmem:[%s5562_s13 + $0x10] sm:$0xff]  }
 0x7d5   :  { %3899 = vmatprep.subr.bf16.mxu1 %v4149_v32 }
 0x7d6   :  { %v1563_v4 = vsel %vm308_vm2, %v1555_v3, 0.0  ;;  %3900 = vmatpush3.bf16.msra.mxu1 %v4149_v32 }
 0x7d7   :  { %1564 = vadd.xlane.f32.xlu0 %v1563_v4  ;;  %1570 = vadd.xlane.f32.xlu1 %v1569_v5  ;;  %v3570_v5 = vld [vmem:[#allocation13] ss:$0 sm:$0xff] }
 0x7d8   :  { %3901 = vmatprep.subr.bf16.mxu1 %v4150_v1 }
 0x7da   :  { %3902 = vmatpush3.bf16.msra.mxu1 %v4150_v1 }
 0x7db   :  { %1567 = vadd.xlane.f32.xlu0 %v1566_v33 }
 0x85c   :  { %v1562_v42 = vpop.xlane.xlu1 %1561 }
 0x85d   :  { %v1573_v50 = vmul.f32 0.03125, %v1562_v42 }
 0x85f   :  { %v1577_v7 = vsub.f32 %v1554_v63, %v1573_v50 }
 0x860   :  { %v1565_v8 = vpop.xlane.xlu0 %1564  ;;  %v1571_v10 = vpop.xlane.xlu1 %1570 }
 0x861   :  { %v1574_v31 = vmul.f32 0.03125, %v1565_v8  ;;  %v1576_v56 = vmul.f32 0.03125, %v1571_v10  ;;  %v1581_v52 = vmul.f32 %v1577_v7, %v1577_v7 }
 0x863   :  { %v1578_v34 = vsub.f32 %v1555_v3, %v1574_v31  ;;  %v1580_v62 = vsub.f32 %v1557_v44, %v1576_v56  ;;  %v1585_v13 = vsel %vm308_vm2, %v1581_v52, 0.0  ;;  %v4151_v44 = vld [vmem:[%s5562_s13] sm:$0xff]  }
 0x864   :  { %v1568_v14 = vpop.xlane.xlu0 %1567  ;;  %1586 = vadd.xlane.f32.xlu0 %v1585_v13  ;;  %3903 = vmatprep.subr.bf16.mxu1 %v4151_v44 }
 0x865   :  { %v1575_v35 = vmul.f32 0.03125, %v1568_v14  ;;  %v1582_v9 = vmul.f32 %v1578_v34, %v1578_v34  ;;  %v1584_v22 = vmul.f32 %v1580_v62, %v1580_v62  ;;  %3904 = vmatpush3.bf16.msra.mxu1 %v4151_v44  ;;  %v3575_v14 = vld [vmem:[#allocation14] ss:$0 sm:$0xff] }
 0x866   :  { %3923 = vmatprep.subr.bf16.mxu1 %v4591_v38 }
 0x867   :  { %v1579_v12 = vsub.f32 %v1556_v48, %v1575_v35  ;;  %v1588_v19 = vsel %vm308_vm2, %v1582_v9, 0.0  ;;  %v1594_v2 = vsel %vm308_vm2, %v1584_v22, 0.0 }
 0x868   :  { %1589 = vadd.xlane.f32.xlu1 %v1588_v19 }
 0x869   :  { %v1583_v6 = vmul.f32 %v1579_v12, %v1579_v12 }
 0x86b   :  { %v1591_v18 = vsel %vm308_vm2, %v1583_v6, 0.0 }
 0x86c   :  { %1592 = vadd.xlane.f32.xlu0 %v1591_v18  ;;  %1595 = vadd.xlane.f32.xlu1 %v1594_v2 }
 0x8ed   :  { %v1587_v61 = vpop.xlane.xlu0 %1586 }
 0x8ee   :  { %v1597_v28 = vmul.f32 0.03125, %v1587_v61 }
 0x8f0   :  { %v1601_v29 = vadd.f32 1e-05, %v1597_v28 }
 0x8f1   :  { %v1590_v55 = vpop.xlane.xlu1 %1589 }
 0x8f2   :  { %4228 = vrsqrt.f32 %v1601_v29  ;;  %v1598_v11 = vmul.f32 0.03125, %v1590_v55 }
 0x8f4   :  { %v1602_v24 = vadd.f32 1e-05, %v1598_v11 }
 0x8f5   :  { %v1593_v36 = vpop.xlane.xlu0 %1592  ;;  %v1596_v39 = vpop.xlane.xlu1 %1595 }
 0x8f6   :  { %4230 = vrsqrt.f32 %v1602_v24  ;;  %v1599_v40 = vmul.f32 0.03125, %v1593_v36  ;;  %v1600_v58 = vmul.f32 0.03125, %v1596_v39 }
 0x8f8   :  { %v1603_v27 = vadd.f32 1e-05, %v1599_v40  ;;  %v1604_v43 = vadd.f32 1e-05, %v1600_v58 }
 0x8fa   :  { %4232 = vrsqrt.f32 %v1603_v27 }
 0x8fb   :  { %4234 = vrsqrt.f32 %v1604_v43 }
 0x8ff   :  { %v4229_v49 = vpop.eup %4228 }
 0x900   :  { %v1609_v17 = vmul.f32 %v4229_v49, %v1577_v7 }
 0x902   :  { %v1619_v51 = vmul.f32 %v3568_v45, %v1609_v17 }
 0x903   :  { %v4231_v47 = vpop.eup %4230 }
 0x904   :  { %v1610_v30 = vmul.f32 %v4231_v47, %v1578_v34  ;;  %v1629_v26 = vadd.f32 %v3569_v53, %v1619_v51 }
 0x906   :  { %v1620_v54 = vmul.f32 %v3568_v45, %v1610_v30 }
 0x907   :  { %v4233_v37 = vpop.eup %4232 }
 0x908   :  { %v4235_v15 = vpop.eup %4234  ;;  %v1611_v16 = vmul.f32 %v4233_v37, %v1579_v12  ;;  %v1630_v20 = vadd.f32 %v3569_v53, %v1620_v54 }
 0x909   :  { %v1612_v57 = vmul.f32 %v4235_v15, %v1580_v62 }
 0x90a   :  { %v1637_v59 = vpack.c.bf16 %v1630_v20, %v1629_v26  ;;  %v1621_v60 = vmul.f32 %v3568_v45, %v1611_v16 }
 0x90b   :  { %v1622_v41 = vmul.f32 %v3568_v45, %v1612_v57  ;;  %v4153_v57 = vld [vmem:[%s5554_s5 + $0x10] sm:$0xff]  }
 0x90c   :  { %3893 = vmatprep.mubr.msk.bf16.mxu0 %vm308_vm2, %v1637_v59  ;;  %v1631_v63 = vadd.f32 %v3569_v53, %v1621_v60 }
 0x90d   :  { %v1632_v25 = vadd.f32 %v3569_v53, %v1622_v41 }
 0x90f   :  { %v1638_v0 = vpack.c.bf16 %v1632_v25, %v1631_v63 }
 0x911   :  { %3894 = vmatmul.mubr.msk.bf16.vlgmr.msra.gmra.mxu0 %vm308_vm2, %v1638_v0 }
 0x9d1   :  { %v3895_v3 = vpop.f32.mrf.mxu0 }
 0x9d2   :  { %v1707_v50 = vadd.f32 %v3895_v3, %v3570_v5 }
 0x9d3   :  { %v1698_v4 = vpop.f32.mrf.mxu0 }
 0x9d4   :  { %v1699_v33 = vadd.f32 %v3570_v5, %v1698_v4  ;;  %v1715_v52 = vmax.f32 %v1707_v50, 0.0 }
 0x9d5   :  { %v3896_v48 = vpop.f32.mrf.mxu0 }
 0x9d6   :  { %v1710_v42 = vadd.f32 %v3896_v48, %v3570_v5  ;;  %v1713_v31 = vmax.f32 %v1699_v33, 0.0 }
 0x9d7   :  { %v1701_v7 = vpop.f32.mrf.mxu0 }
 0x9d8   :  { %v1702_v8 = vadd.f32 %v3570_v5, %v1701_v7  ;;  %v1716_v10 = vmax.f32 %v1710_v42, 0.0  ;;  %v3582_v42 = vld [vmem:[#allocation16] ss:$0 sm:$0xff] }
 0x9da   :  { %v1714_v56 = vmax.f32 %v1702_v8, 0.0  ;;  %v1726_v62 = vpack.c.bf16 %v1716_v10, %v1715_v52 }
 0x9dc   :  { %v1725_v34 = vpack.c.bf16 %v1714_v56, %v1713_v31  ;;  %v3583_v56 = vld [vmem:[#allocation17] ss:$0 sm:$0xff] }
 0x9de   :  { %3905 = vmatprep.mubr.msk.bf16.mxu1 %vm1758_vm6, %v1725_v34 }
 0x9df   :  { %3906 = vmatmul.mubr.msk.bf16.vlgmr.msra.gmra.mxu1 %vm1758_vm6, %v1726_v62 }
 0x9e0   :  { %3925 = vmatprep.mubr.msk.bf16.mxu1 %vm4592_vm3, %v4591_v38 }
 0xa9f   :  { %v3907_v13 = vpop.f32.mrf.mxu1 }
 0xaa0   :  { %v1808_v9 = vadd.f32 %v3907_v13, %v3575_v14 }
 0xaa1   :  { %v1799_v35 = vpop.f32.mrf.mxu1 }
 0xaa2   :  { %v1800_v12 = vadd.f32 %v3575_v14, %v1799_v35  ;;  %v1816_v21 = vadd.f32 %v1808_v9, %v1631_v63 }
 0xaa3   :  { %v3908_v19 = vpop.f32.mrf.mxu1 }
 0xaa4   :  { %v1814_v22 = vadd.f32 %v1800_v12, %v1629_v26  ;;  %v1811_v18 = vadd.f32 %v3908_v19, %v3575_v14  ;;  %v1826_v28 = vsel %vm308_vm2, %v1816_v21, 0.0 }
 0xaa5   :  { %v1802_v6 = vpop.f32.mrf.mxu1 }
 0xaa6   :  { %v1803_v2 = vadd.f32 %v3575_v14, %v1802_v6  ;;  %v1820_v23 = vsel %vm308_vm2, %v1814_v22, 0.0  ;;  %v1817_v29 = vadd.f32 %v1811_v18, %v1632_v25 }
 0xaa7   :  { %1821 = vadd.xlane.f32.xlu0 %v1820_v23 }
 0xaa8   :  { %v1815_v46 = vadd.f32 %v1803_v2, %v1630_v20  ;;  %v1829_v55 = vsel %vm308_vm2, %v1817_v29, 0.0  ;;  %v4152_v20 = vld [vmem:[%s5554_s5 + $0x18] sm:$0xff]  }
 0xaa9   :  { %3909 = vmatprep.subr.bf16.mxu0 %v4152_v20 }
 0xaaa   :  { %v1823_v61 = vsel %vm308_vm2, %v1815_v46, 0.0  ;;  %3910 = vmatpush3.bf16.msra.mxu0 %v4152_v20 }
 0xaab   :  { %1824 = vadd.xlane.f32.xlu1 %v1823_v61  ;;  %1827 = vadd.xlane.f32.xlu0 %v1826_v28 }
 0xaac   :  { %3911 = vmatprep.subr.bf16.mxu0 %v4153_v57 }
 0xaae   :  { %3912 = vmatpush3.bf16.msra.mxu0 %v4153_v57 }
 0xaaf   :  { %1830 = vadd.xlane.f32.xlu1 %v1829_v55  ;;  %3917 = vmatprep.subr.bf16.mxu0 %v4591_v38 }
 0xb30   :  { %v1822_v11 = vpop.xlane.xlu0 %1821 }
 0xb31   :  { %v1832_v24 = vmul.f32 0.03125, %v1822_v11 }
 0xb33   :  { %v1836_v36 = vsub.f32 %v1814_v22, %v1832_v24 }
 0xb34   :  { %v1825_v39 = vpop.xlane.xlu1 %1824  ;;  %v1828_v40 = vpop.xlane.xlu0 %1827 }
 0xb35   :  { %v1833_v58 = vmul.f32 0.03125, %v1825_v39  ;;  %v1834_v27 = vmul.f32 0.03125, %v1828_v40  ;;  %v1840_v43 = vmul.f32 %v1836_v36, %v1836_v36 }
 0xb37   :  { %v1837_v49 = vsub.f32 %v1815_v46, %v1833_v58  ;;  %v1838_v17 = vsub.f32 %v1816_v21, %v1834_v27  ;;  %v1844_v45 = vsel %vm308_vm2, %v1840_v43, 0.0  ;;  %v3589_v21 = vld [vmem:[%s5555_s6 + $0x1] ss:$0 sm:$0xff] }
 0xb38   :  { %v1831_v47 = vpop.xlane.xlu1 %1830  ;;  %1845 = vadd.xlane.f32.xlu0 %v1844_v45 }
 0xb39   :  { %v1835_v30 = vmul.f32 0.03125, %v1831_v47  ;;  %v1841_v51 = vmul.f32 %v1837_v49, %v1837_v49  ;;  %v1842_v53 = vmul.f32 %v1838_v17, %v1838_v17 }
 0xb3b   :  { %v1839_v54 = vsub.f32 %v1817_v29, %v1835_v30  ;;  %v1847_v37 = vsel %vm308_vm2, %v1841_v51, 0.0  ;;  %v1850_v15 = vsel %vm308_vm2, %v1842_v53, 0.0 }
 0xb3c   :  { %1848 = vadd.xlane.f32.xlu1 %v1847_v37  ;;  %1851 = vadd.xlane.f32.xlu0 %v1850_v15 }
 0xb3d   :  { %v1843_v16 = vmul.f32 %v1839_v54, %v1839_v54 }
 0xb3f   :  { %v1853_v26 = vsel %vm308_vm2, %v1843_v16, 0.0 }
 0xb40   :  { %1854 = vadd.xlane.f32.xlu1 %v1853_v26 }
 0xbc1   :  { %v1846_v59 = vpop.xlane.xlu0 %1845 }
 0xbc2   :  { %v1856_v60 = vmul.f32 0.03125, %v1846_v59 }
 0xbc4   :  { %v1860_v41 = vadd.f32 1e-05, %v1856_v60 }
 0xbc5   :  { %v1849_v63 = vpop.xlane.xlu1 %1848  ;;  %v1852_v25 = vpop.xlane.xlu0 %1851 }
 0xbc6   :  { %4236 = vrsqrt.f32 %v1860_v41  ;;  %v1857_v0 = vmul.f32 0.03125, %v1849_v63  ;;  %v1858_v32 = vmul.f32 0.03125, %v1852_v25 }
 0xbc8   :  { %v1861_v1 = vadd.f32 1e-05, %v1857_v0  ;;  %v1862_v44 = vadd.f32 1e-05, %v1858_v32 }
 0xbc9   :  { %v1855_v3 = vpop.xlane.xlu1 %1854 }
 0xbca   :  { %4238 = vrsqrt.f32 %v1861_v1  ;;  %v1859_v4 = vmul.f32 0.03125, %v1855_v3 }
 0xbcb   :  { %4240 = vrsqrt.f32 %v1862_v44 }
 0xbcc   :  { %v1863_v5 = vadd.f32 1e-05, %v1859_v4 }
 0xbce   :  { %4242 = vrsqrt.f32 %v1863_v5 }
 0xbd3   :  { %v4237_v48 = vpop.eup %4236 }
 0xbd4   :  { %v1868_v33 = vmul.f32 %v4237_v48, %v1836_v36 }
 0xbd6   :  { %v1878_v10 = vmul.f32 %v3582_v42, %v1868_v33 }
 0xbd7   :  { %v4239_v50 = vpop.eup %4238 }
 0xbd8   :  { %v4241_v7 = vpop.eup %4240  ;;  %v1869_v8 = vmul.f32 %v4239_v50, %v1837_v49  ;;  %v5167_v13 = vadd.f32 %v3583_v56, %v1878_v10 }
 0xbd9   :  { %v1870_v31 = vmul.f32 %v4241_v7, %v1838_v17 }
 0xbda   :  { %v1879_v52 = vmul.f32 %v3582_v42, %v1869_v8 }
 0xbdb   :  { %v4243_v34 = vpop.eup %4242  ;;  %v1880_v35 = vmul.f32 %v3582_v42, %v1870_v31 }
 0xbdc   :  { %v1871_v62 = vmul.f32 %v4243_v34, %v1839_v54  ;;  %v5169_v14 = vadd.f32 %v3583_v56, %v1879_v52 }
 0xbdd   :  { %v5174_v19 = vadd.f32 %v3583_v56, %v1880_v35 }
 0xbde   :  { %v1897_v9 = vpack.c.bf16 %v5169_v14, %v5167_v13  ;;  %v1881_v12 = vmul.f32 %v3582_v42, %v1871_v62 }
 0xbe0   :  { %3913 = vmatprep.mubr.msk.bf16.mxu0 %vm308_vm2, %v1897_v9  ;;  %v5176_v22 = vadd.f32 %v3583_v56, %v1881_v12 }
 0xbe2   :  { %v1898_v6 = vpack.c.bf16 %v5176_v22, %v5174_v19 }
 0xbe4   :  { %3914 = vmatmul.mubr.msk.bf16.vlgmr.msra.gmra.mxu0 %vm308_vm2, %v1898_v6 }
 0xbe5   :  { %3919 = vmatprep.mubr.msk.bf16.mxu0 %vm4592_vm3, %v4591_v38 }
 0xca4   :  { %v3915_v18 = vpop.f32.mrf.mxu0 }
 0xca5   :  { %v1968_v11 = vadd.f32 %v3915_v18, %v3589_v21 }
 0xca6   :  { %v1959_v2 = vpop.f32.mrf.mxu0 }
 0xca7   :  { %v1960_v61 = vadd.f32 %v3589_v21, %v1959_v2 }
 0xca8   :  { %v3916_v23 = vpop.f32.mrf.mxu0 }
 0xca9   :  { %v1971_v55 = vadd.f32 %v3916_v23, %v3589_v21 }
 0xcaa   :  { %v1962_v46 = vpop.f32.mrf.mxu0 }
 0xcab   :  { %v1963_v28 = vadd.f32 %v3589_v21, %v1962_v46  ;;  %v5200_v24 = vpack.c.bf16 %v1971_v55, %v1968_v11 }
 0xcad   :  { %v5186_v29 = vpack.c.bf16 %v1963_v28, %v1960_v61 }
 0xcaf   :  { %2097 = vrot.lane.b32.xlu1 %v5186_v29, %s4596_s15  ;;  %1976 = vrot.lane.b32.xlu0 %v5186_v29, %s4594_s16 }
 0xcb3   :  { %2095 = vrot.lane.b32.xlu1 %v5186_v29, %s4593_s12  ;;  %2218 = vrot.lane.b32.xlu0 %v5186_v29, %s4595_s24 }
 0xcb7   :  { %2216 = vrot.lane.b32.xlu1 %v5186_v29, %s4598_s25  ;;  %2339 = vrot.lane.b32.xlu0 %v5186_v29, %s4597_s26 }
 0xcbb   :  { %2337 = vrot.lane.b32.xlu1 %v5186_v29, %s4599_s27  ;;  %2490 = vrot.lane.b32.xlu0 %v5200_v24, %s4594_s16 }
 0xcbf   :  { %2611 = vrot.lane.b32.xlu1 %v5200_v24, %s4596_s15  ;;  %2609 = vrot.lane.b32.xlu0 %v5200_v24, %s4593_s12 }
 0xcc3   :  { %2732 = vrot.lane.b32.xlu1 %v5200_v24, %s4595_s24  ;;  %2730 = vrot.lane.b32.xlu0 %v5200_v24, %s4598_s25 }
 0xcc7   :  { %2853 = vrot.lane.b32.xlu1 %v5200_v24, %s4597_s26  ;;  %2851 = vrot.lane.b32.xlu0 %v5200_v24, %s4599_s27 }
 0xccb   :  { %2048 = vrot.lane.b32.xlu0 %v5186_v29, %s4600_s18 }
 0xd21   :  { %v1977_v36 = vpop.permute.xlu0 %1976  ;;  %v2098_v58 = vpop.permute.xlu1 %2097 }
 0xd22   :  { %v1982_v39 = vsel %vm219_vm1, %v1977_v36, 0  ;;  %v2103_v43 = vsel %vm219_vm1, %v2098_v58, 0 }
 0xd23   :  { %3918 = vmatpush3.bf16.xpose.msra.mxu0 %v1982_v39 }
 0xd24   :  { %3929 = vmatprep.subr.bf16.mxu0 %v4591_v38 }
 0xd25   :  { %v2219_v40 = vpop.permute.xlu0 %2218  ;;  %v2096_v17 = vpop.permute.xlu1 %2095 }
 0xd26   :  { %v2224_v47 = vsel %vm219_vm1, %v2219_v40, 0 }
 0xd29   :  { %v2340_v27 = vpop.permute.xlu0 %2339  ;;  %v2217_v51 = vpop.permute.xlu1 %2216 }
 0xd2a   :  { %3920 = vmatmul.mubr.msk.bf16.vlgmr.msra.gmra.mxu0 %vm219_vm1, %v5186_v29  ;;  %v2345_v54 = vsel %vm219_vm1, %v2340_v27, 0 }
 0xd2b   :  { %3930 = vmatpush3.bf16.xpose.msra.mxu0 %v2103_v43  ;;  %3931 = vmatprep.mubr.msk.bf16.mxu0 %vm4592_vm3, %v4591_v38 }
 0xd2c   :  { %3941 = vmatprep.subr.bf16.mxu0 %v4591_v38 }
 0xd2d   :  { %v2491_v49 = vpop.permute.xlu0 %2490  ;;  %v2338_v15 = vpop.permute.xlu1 %2337 }
 0xd2e   :  { %v2496_v16 = vsel %vm219_vm1, %v2491_v49, 0 }
 0xd31   :  { %v2610_v45 = vpop.permute.xlu0 %2609  ;;  %v2612_v26 = vpop.permute.xlu1 %2611 }
 0xd32   :  { %3932 = vmatmul.mubr.msk.bf16.vlgmr.msra.gmra.mxu0 %vm219_vm1, %v2096_v17  ;;  %v2617_v20 = vsel %vm219_vm1, %v2612_v26, 0 }
 0xd33   :  { %3942 = vmatpush3.bf16.xpose.msra.mxu0 %v2224_v47  ;;  %3943 = vmatprep.mubr.msk.bf16.mxu0 %vm4592_vm3, %v4591_v38 }
 0xd34   :  { %3953 = vmatprep.subr.bf16.mxu0 %v4591_v38 }
 0xd35   :  { %v2731_v30 = vpop.permute.xlu0 %2730  ;;  %v2733_v57 = vpop.permute.xlu1 %2732 }
 0xd36   :  { %v2738_v59 = vsel %vm219_vm1, %v2733_v57, 0 }
 0xd39   :  { %v2852_v53 = vpop.permute.xlu0 %2851  ;;  %v2854_v60 = vpop.permute.xlu1 %2853 }
 0xd3a   :  { %3944 = vmatmul.mubr.msk.bf16.vlgmr.msra.gmra.mxu0 %vm219_vm1, %v2217_v51  ;;  %v2859_v41 = vsel %vm219_vm1, %v2854_v60, 0 }
 0xd3b   :  { %3954 = vmatpush3.bf16.xpose.msra.mxu0 %v2345_v54  ;;  %3955 = vmatprep.mubr.msk.bf16.mxu0 %vm4592_vm3, %v4591_v38 }
 0xd3c   :  { %3965 = vmatprep.subr.bf16.mxu0 %v4591_v38 }
 0xd3d   :  { %v2049_v37 = vpop.permute.xlu0 %2048 }
 0xd3e   :  { %3924 = vmatpush3.bf16.msra.mxu1 %v2049_v37 }
 0xd3f   :  { %3935 = vmatprep.subr.bf16.mxu1 %v4591_v38 }
 0xd42   :  { %3956 = vmatmul.mubr.msk.bf16.vlgmr.msra.gmra.mxu0 %vm219_vm1, %v2338_v15 }
 0xd43   :  { %3966 = vmatpush3.bf16.xpose.msra.mxu0 %v2496_v16  ;;  %3967 = vmatprep.mubr.msk.bf16.mxu0 %vm4592_vm3, %v4591_v38 }
 0xd44   :  { %3977 = vmatprep.subr.bf16.mxu0 %v4591_v38 }
 0xd4a   :  { %3968 = vmatmul.mubr.msk.bf16.vlgmr.msra.gmra.mxu0 %vm219_vm1, %v5200_v24 }
 0xd4b   :  { %3978 = vmatpush3.bf16.xpose.msra.mxu0 %v2617_v20  ;;  %3979 = vmatprep.mubr.msk.bf16.mxu0 %vm4592_vm3, %v4591_v38 }
 0xd4c   :  { %3989 = vmatprep.subr.bf16.mxu0 %v4591_v38 }
 0xd52   :  { %3980 = vmatmul.mubr.msk.bf16.vlgmr.msra.gmra.mxu0 %vm219_vm1, %v2610_v45 }
 0xd53   :  { %3990 = vmatpush3.bf16.xpose.msra.mxu0 %v2738_v59  ;;  %3991 = vmatprep.mubr.msk.bf16.mxu0 %vm4592_vm3, %v4591_v38 }
 0xd54   :  { %4001 = vmatprep.subr.bf16.mxu0 %v4591_v38 }
 0xd5a   :  { %3992 = vmatmul.mubr.msk.bf16.vlgmr.msra.gmra.mxu0 %vm219_vm1, %v2731_v30 }
 0xd5b   :  { %4002 = vmatpush3.bf16.xpose.msra.mxu0 %v2859_v41  ;;  %4003 = vmatprep.mubr.msk.bf16.mxu0 %vm4592_vm3, %v4591_v38 }
 0xd62   :  { %4004 = vmatmul.mubr.msk.bf16.vlgmr.msra.gmra.mxu0 %vm219_vm1, %v2852_v53 }
 0xdea   :  { %v5260_v63 = vpop.f32.mrf.mxu0 }
 0xdeb   :  { %v2025_v25 = vsel %vm495_vm4, %v5260_v63, -inf }
 0xdec   :  { %2026 = vmax.xlane.f32.xlu1 %v2025_v25  ;;  %v3921_v0 = vpop.f32.mrf.mxu0 }
 0xdee   :  { %v5264_v32 = vpop.f32.mrf.mxu0 }
 0xdef   :  { %v2028_v1 = vsel %vm495_vm4, %v5264_v32, -inf }
 0xdf0   :  { %2029 = vmax.xlane.f32.xlu0 %v2028_v1  ;;  %v3922_v44 = vpop.f32.mrf.mxu0 }
 0xdf2   :  { %v5268_v3 = vpop.f32.mrf.mxu0 }
 0xdf3   :  { %v2146_v4 = vsel %vm495_vm4, %v5268_v3, -inf }
 0xdf4   :  { %2147 = vmax.xlane.f32.xlu0 %v2146_v4  ;;  %v3933_v5 = vpop.f32.mrf.mxu0 }
 0xdf6   :  { %v5272_v48 = vpop.f32.mrf.mxu0 }
 0xdf7   :  { %v2149_v40 = vsel %vm495_vm4, %v5272_v48, -inf }
 0xdf8   :  { %v3934_v33 = vpop.f32.mrf.mxu0 }
 0xdfa   :  { %v5274_v42 = vpop.f32.mrf.mxu0 }
 0xdfb   :  { %v2267_v50 = vsel %vm495_vm4, %v5274_v42, -inf }
 0xdfc   :  { %2268 = vmax.xlane.f32.xlu0 %v2267_v50  ;;  %v3945_v7 = vpop.f32.mrf.mxu0 }
 0xdfd   :  { %2169 = vrot.lane.b32.xlu1 %v5186_v29, %s4602_s10 }
 0xdfe   :  { %v5280_v8 = vpop.f32.mrf.mxu0 }
 0xdff   :  { %v2270_v49 = vsel %vm495_vm4, %v5280_v8, -inf }
 0xe00   :  { %v3946_v10 = vpop.f32.mrf.mxu0 }
 0xe02   :  { %v5282_v31 = vpop.f32.mrf.mxu0 }
 0xe03   :  { %v2388_v56 = vsel %vm495_vm4, %v5282_v31, -inf }
 0xe04   :  { %2389 = vmax.xlane.f32.xlu0 %v2388_v56  ;;  %v3957_v52 = vpop.f32.mrf.mxu0 }
 0xe06   :  { %v5286_v34 = vpop.f32.mrf.mxu0 }
 0xe07   :  { %v2391_v47 = vsel %vm495_vm4, %v5286_v34, -inf }
 0xe08   :  { %v3958_v62 = vpop.f32.mrf.mxu0 }
 0xe0a   :  { %v5288_v35 = vpop.f32.mrf.mxu0 }
 0xe0b   :  { %v2539_v9 = vsel %vm495_vm4, %v5288_v35, -inf }
 0xe0c   :  { %2540 = vmax.xlane.f32.xlu0 %v2539_v9  ;;  %v3969_v12 = vpop.f32.mrf.mxu0 }
 0xe0e   :  { %v5292_v6 = vpop.f32.mrf.mxu0 }
 0xe0f   :  { %v2542_v30 = vsel %vm495_vm4, %v5292_v6, -inf }
 0xe10   :  { %v3970_v18 = vpop.f32.mrf.mxu0 }
 0xe12   :  { %v5294_v2 = vpop.f32.mrf.mxu0 }
 0xe13   :  { %v2660_v23 = vsel %vm495_vm4, %v5294_v2, -inf }
 0xe14   :  { %2661 = vmax.xlane.f32.xlu0 %v2660_v23  ;;  %v3981_v21 = vpop.f32.mrf.mxu0 }
 0xe16   :  { %v5298_v46 = vpop.f32.mrf.mxu0 }
 0xe17   :  { %v2663_v51 = vsel %vm495_vm4, %v5298_v46, -inf }
 0xe18   :  { %v3982_v61 = vpop.f32.mrf.mxu0 }
 0xe1a   :  { %v5300_v28 = vpop.f32.mrf.mxu0 }
 0xe1b   :  { %v2781_v55 = vsel %vm495_vm4, %v5300_v28, -inf }
 0xe1c   :  { %2782 = vmax.xlane.f32.xlu0 %v2781_v55  ;;  %v3993_v11 = vpop.f32.mrf.mxu0 }
 0xe1e   :  { %v5304_v36 = vpop.f32.mrf.mxu0 }
 0xe1f   :  { %v2784_v53 = vsel %vm495_vm4, %v5304_v36, -inf }
 0xe20   :  { %v3994_v39 = vpop.f32.mrf.mxu0 }
 0xe21   :  { %2150 = vmax.xlane.f32.xlu1 %v2149_v40 }
 0xe22   :  { %v5308_v58 = vpop.f32.mrf.mxu0 }
 0xe23   :  { %v2902_v27 = vsel %vm495_vm4, %v5308_v58, -inf }
 0xe24   :  { %2903 = vmax.xlane.f32.xlu0 %v2902_v27  ;;  %v4005_v43 = vpop.f32.mrf.mxu0 }
 0xe25   :  { %2271 = vmax.xlane.f32.xlu1 %v2270_v49 }
 0xe26   :  { %v5314_v17 = vpop.f32.mrf.mxu0 }
 0xe27   :  { %v2905_v54 = vsel %vm495_vm4, %v5314_v17, -inf }
 0xe28   :  { %v4006_v45 = vpop.f32.mrf.mxu0 }
 0xe29   :  { %2392 = vmax.xlane.f32.xlu1 %v2391_v47 }
 0xe2d   :  { %2543 = vmax.xlane.f32.xlu1 %v2542_v30 }
 0xe31   :  { %2664 = vmax.xlane.f32.xlu1 %v2663_v51 }
 0xe35   :  { %2785 = vmax.xlane.f32.xlu1 %v2784_v53 }
 0xe39   :  { %2906 = vmax.xlane.f32.xlu1 %v2905_v54 }
 0xe3a   :  { %2290 = vrot.lane.b32.xlu0 %v5186_v29, %s4601_s28 }
 0xe4a   :  { %2411 = vrot.lane.b32.xlu1 %v5186_v29, %s4603_s29 }
 0xe75   :  { %v2027_v37 = vpop.xlane.xlu1 %2026 }
 0xe76   :  { %v2031_v15 = vsub.f32 %v5260_v63, %v2027_v37 }
 0xe78   :  { %v2033_v16 = vmul.f32 1.442695, %v2031_v15 }
 0xe79   :  { %v2030_v26 = vpop.xlane.xlu0 %2029 }
 0xe7a   :  { %4244 = vpow2.f32 %v2033_v16  ;;  %v2032_v20 = vsub.f32 %v5264_v32, %v2030_v26 }
 0xe7c   :  { %v2035_v57 = vmul.f32 1.442695, %v2032_v20 }
 0xe7d   :  { %v2148_v59 = vpop.xlane.xlu0 %2147 }
 0xe7e   :  { %4246 = vpow2.f32 %v2035_v57  ;;  %v2152_v60 = vsub.f32 %v5268_v3, %v2148_v59 }
 0xe80   :  { %v2154_v41 = vmul.f32 1.442695, %v2152_v60 }
 0xe82   :  { %4248 = vpow2.f32 %v2154_v41 }
 0xe85   :  { %v2269_v25 = vpop.xlane.xlu0 %2268 }
 0xe86   :  { %v2273_v0 = vsub.f32 %v5274_v42, %v2269_v25 }
 0xe87   :  { %v5334_v1 = vpop.eup %4244 }
 0xe88   :  { %v2275_v29 = vmul.f32 1.442695, %v2273_v0  ;;  %v2037_v63 = vsel %vm495_vm4, %v5334_v1, 0.0 }
 0xe89   :  { %2038 = vadd.xlane.f32.xlu0 %v2037_v63 }
 0xe8a   :  { %4250 = vpow2.f32 %v2275_v29 }
 0xe8b   :  { %v5338_v44 = vpop.eup %4246 }
 0xe8c   :  { %v2040_v32 = vsel %vm495_vm4, %v5338_v44, 0.0 }
 0xe8d   :  { %2041 = vadd.xlane.f32.xlu1 %v2040_v32  ;;  %v2390_v3 = vpop.xlane.xlu0 %2389 }
 0xe8e   :  { %v2394_v4 = vsub.f32 %v5282_v31, %v2390_v3  ;;  %v5355_v31 = vpop.permute.xlu1 %2169 }
 0xe8f   :  { %v5343_v5 = vpop.eup %4248 }
 0xe90   :  { %v2396_v33 = vmul.f32 1.442695, %v2394_v4  ;;  %v2158_v42 = vsel %vm495_vm4, %v5343_v5, 0.0 }
 0xe91   :  { %2159 = vadd.xlane.f32.xlu0 %v2158_v42 }
 0xe92   :  { %4252 = vpow2.f32 %v2396_v33 }
 0xe95   :  { %v2541_v12 = vpop.xlane.xlu0 %2540 }
 0xe96   :  { %v2545_v21 = vsub.f32 %v5288_v35, %v2541_v12 }
 0xe97   :  { %v5347_v50 = vpop.eup %4250 }
 0xe98   :  { %v2279_v7 = vsel %vm495_vm4, %v5347_v50, 0.0  ;;  %v2547_v39 = vmul.f32 1.442695, %v2545_v21 }
 0xe99   :  { %2280 = vadd.xlane.f32.xlu0 %v2279_v7 }
 0xe9d   :  { %v2662_v40 = vpop.xlane.xlu0 %2661 }
 0xe9f   :  { %v5351_v10 = vpop.eup %4252 }
 0xea0   :  { %v2400_v56 = vsel %vm495_vm4, %v5351_v10, 0.0 }
 0xea1   :  { %2401 = vadd.xlane.f32.xlu0 %v2400_v56 }
 0xea5   :  { %v2783_v49 = vpop.xlane.xlu0 %2782 }
 0xea6   :  { %v2787_v30 = vsub.f32 %v5300_v28, %v2783_v49 }
 0xeaa   :  { %v2151_v52 = vpop.xlane.xlu1 %2150 }
 0xeab   :  { %v2153_v62 = vsub.f32 %v5272_v48, %v2151_v52 }
 0xead   :  { %v2156_v9 = vmul.f32 1.442695, %v2153_v62  ;;  %v2904_v51 = vpop.xlane.xlu0 %2903 }
 0xeae   :  { %v2272_v18 = vpop.xlane.xlu1 %2271  ;;  %v2908_v16 = vsub.f32 %v5308_v58, %v2904_v51 }
 0xeaf   :  { %4254 = vpow2.f32 %v2156_v9  ;;  %v2274_v23 = vsub.f32 %v5280_v8, %v2272_v18 }
 0xeb0   :  { %v2910_v57 = vmul.f32 1.442695, %v2908_v16 }
 0xeb1   :  { %v2277_v61 = vmul.f32 1.442695, %v2274_v23  ;;  %v2291_v12 = vpop.permute.xlu0 %2290 }
 0xeb2   :  { %v2393_v55 = vpop.xlane.xlu1 %2392 }
 0xeb3   :  { %4256 = vpow2.f32 %v2277_v61  ;;  %v2395_v11 = vsub.f32 %v5286_v34, %v2393_v55  ;;  %v2666_v34 = vsub.f32 %v5294_v2, %v2662_v40 }
 0xeb5   :  { %v2398_v27 = vmul.f32 1.442695, %v2395_v11  ;;  %v2668_v15 = vmul.f32 1.442695, %v2666_v34 }
 0xeb6   :  { %v2544_v43 = vpop.xlane.xlu1 %2543 }
 0xeb7   :  { %4258 = vpow2.f32 %v2398_v27  ;;  %v2546_v48 = vsub.f32 %v5292_v6, %v2544_v43  ;;  %2562 = vrot.lane.b32.xlu0 %v5200_v24, %s4600_s18 }
 0xeb8   :  { %4260 = vpow2.f32 %v2547_v39 }
 0xeb9   :  { %v2549_v8 = vmul.f32 1.442695, %v2546_v48 }
 0xeba   :  { %v2665_v45 = vpop.xlane.xlu1 %2664 }
 0xebb   :  { %v2667_v35 = vsub.f32 %v5298_v46, %v2665_v45  ;;  %4262 = vpow2.f32 %v2549_v8  ;;  %v2789_v46 = vmul.f32 1.442695, %v2787_v30 }
 0xebc   :  { %v5365_v47 = vpop.eup %4254 }
 0xebd   :  { %v2670_v53 = vmul.f32 1.442695, %v2667_v35  ;;  %v2161_v6 = vsel %vm495_vm4, %v5365_v47, 0.0 }
 0xebe   :  { %v2786_v54 = vpop.xlane.xlu1 %2785  ;;  %2162 = vadd.xlane.f32.xlu1 %v2161_v6 }
 0xebf   :  { %4264 = vpow2.f32 %v2670_v53  ;;  %v2788_v26 = vsub.f32 %v5304_v36, %v2786_v54 }
 0xec0   :  { %v5371_v37 = vpop.eup %4256  ;;  %4266 = vpow2.f32 %v2668_v15 }
 0xec1   :  { %v2282_v2 = vsel %vm495_vm4, %v5371_v37, 0.0  ;;  %4268 = vpow2.f32 %v2789_v46  ;;  %v2791_v59 = vmul.f32 1.442695, %v2788_v26 }
 0xec2   :  { %v2907_v28 = vpop.xlane.xlu1 %2906  ;;  %2283 = vadd.xlane.f32.xlu1 %v2282_v2  ;;  %4270 = vpow2.f32 %v2910_v57 }
 0xec3   :  { %v2909_v60 = vsub.f32 %v5314_v17, %v2907_v28  ;;  %4272 = vpow2.f32 %v2791_v59 }
 0xec4   :  { %v5377_v20 = vpop.eup %4258 }
 0xec5   :  { %v2403_v58 = vsel %vm495_vm4, %v5377_v20, 0.0  ;;  %v5382_v41 = vpop.eup %4260  ;;  %v2912_v36 = vmul.f32 1.442695, %v2909_v60 }
 0xec6   :  { %2404 = vadd.xlane.f32.xlu1 %v2403_v58  ;;  %v2551_v25 = vsel %vm495_vm4, %v5382_v41, 0.0  ;;  %v2412_v18 = vpop.permute.xlu1 %2411 }
 0xec7   :  { %4274 = vpow2.f32 %v2912_v36 }
 0xec8   :  { %v5386_v0 = vpop.eup %4262 }
 0xec9   :  { %v2554_v29 = vsel %vm495_vm4, %v5386_v0, 0.0 }
 0xeca   :  { %2552 = vadd.xlane.f32.xlu1 %v2551_v25 }
 0xecc   :  { %v5390_v17 = vpop.eup %4264 }
 0xecd   :  { %v5392_v63 = vpop.eup %4266  ;;  %v2675_v32 = vsel %vm495_vm4, %v5390_v17, 0.0 }
 0xece   :  { %2555 = vadd.xlane.f32.xlu1 %v2554_v29  ;;  %v5396_v3 = vpop.eup %4268  ;;  %v2672_v33 = vsel %vm495_vm4, %v5392_v63, 0.0 }
 0xecf   :  { %v5398_v4 = vpop.eup %4270  ;;  %v2793_v42 = vsel %vm495_vm4, %v5396_v3, 0.0 }
 0xed0   :  { %v5404_v7 = vpop.eup %4272  ;;  %v2914_v52 = vsel %vm495_vm4, %v5398_v4, 0.0 }
 0xed1   :  { %v2796_v56 = vsel %vm495_vm4, %v5404_v7, 0.0 }
 0xed2   :  { %2676 = vadd.xlane.f32.xlu1 %v2675_v32 }
 0xed4   :  { %v5410_v62 = vpop.eup %4274 }
 0xed5   :  { %v2917_v9 = vsel %vm495_vm4, %v5410_v62, 0.0 }
 0xed6   :  { %2673 = vadd.xlane.f32.xlu0 %v2672_v33  ;;  %2794 = vadd.xlane.f32.xlu1 %v2793_v42 }
 0xeda   :  { %2797 = vadd.xlane.f32.xlu1 %v2796_v56  ;;  %2915 = vadd.xlane.f32.xlu0 %v2914_v52 }
 0xede   :  { %2918 = vadd.xlane.f32.xlu1 %v2917_v9 }
 0xeef   :  { %2683 = vrot.lane.b32.xlu1 %v5200_v24, %s4602_s10 }
 0xef0   :  { %2804 = vrot.lane.b32.xlu0 %v5200_v24, %s4601_s28 }
 0xef4   :  { %2925 = vrot.lane.b32.xlu0 %v5200_v24, %s4603_s29 }
 0xf12   :  { %v2039_v23 = vpop.xlane.xlu0 %2038 }
 0xf13   :  { %4276 = vrcp.f32 %v2039_v23 }
 0xf16   :  { %v2042_v21 = vpop.xlane.xlu1 %2041 }
 0xf17   :  { %4278 = vrcp.f32 %v2042_v21 }
 0xf1a   :  { %v2160_v24 = vpop.xlane.xlu0 %2159 }
 0xf1b   :  { %4280 = vrcp.f32 %v2160_v24 }
 0xf20   :  { %v4277_v61 = vpop.eup %4276 }
 0xf21   :  { %v2045_v11 = vmul.f32 %v4277_v61, %v5334_v1 }
 0xf22   :  { %v2281_v43 = vpop.xlane.xlu0 %2280 }
 0xf24   :  { %v4279_v55 = vpop.eup %4278 }
 0xf25   :  { %v2046_v39 = vmul.f32 %v4279_v55, %v5338_v44 }
 0xf27   :  { %v2047_v40 = vpack.c.bf16 %v2046_v39, %v2045_v11 }
 0xf28   :  { %v4281_v44 = vpop.eup %4280 }
 0xf29   :  { %3926 = vmatmul.mubr.msk.bf16.vlgmr.msra.gmra.mxu1 %vm495_vm4, %v2047_v40 }
 0xf2a   :  { %3936 = vmatpush3.bf16.msra.mxu1 %v5355_v31  ;;  %3937 = vmatprep.mubr.msk.bf16.mxu1 %vm4592_vm3, %v4591_v38  ;;  %v2402_v49 = vpop.xlane.xlu0 %2401  ;;  %v2166_v31 = vmul.f32 %v4281_v44, %v5343_v5 }
 0xf2b   :  { %3947 = vmatprep.subr.bf16.mxu1 %v4591_v38 }
 0xf2e   :  { %v2563_v15 = vpop.permute.xlu0 %2562 }
 0xf47   :  { %v2163_v27 = vpop.xlane.xlu1 %2162 }
 0xf48   :  { %4282 = vrcp.f32 %v2163_v27 }
 0xf4b   :  { %v2284_v48 = vpop.xlane.xlu1 %2283 }
 0xf4c   :  { %4284 = vrcp.f32 %v2284_v48 }
 0xf4d   :  { %4286 = vrcp.f32 %v2281_v43 }
 0xf4f   :  { %v2405_v1 = vpop.xlane.xlu1 %2404 }
 0xf50   :  { %4288 = vrcp.f32 %v2405_v1 }
 0xf51   :  { %4290 = vrcp.f32 %v2402_v49 }
 0xf53   :  { %v2553_v8 = vpop.xlane.xlu1 %2552 }
 0xf55   :  { %v4283_v45 = vpop.eup %4282 }
 0xf56   :  { %v2167_v35 = vmul.f32 %v4283_v45, %v5365_v47 }
 0xf57   :  { %v2556_v34 = vpop.xlane.xlu1 %2555 }
 0xf58   :  { %v2168_v30 = vpack.c.bf16 %v2167_v35, %v2166_v31  ;;  %4292 = vrcp.f32 %v2556_v34 }
 0xf59   :  { %v4285_v51 = vpop.eup %4284  ;;  %4294 = vrcp.f32 %v2553_v8 }
 0xf5a   :  { %3938 = vmatmul.mubr.msk.bf16.vlgmr.msra.gmra.mxu1 %vm495_vm4, %v2168_v30  ;;  %v4287_v53 = vpop.eup %4286  ;;  %v2288_v54 = vmul.f32 %v4285_v51, %v5371_v37 }
 0xf5b   :  { %3948 = vmatpush3.bf16.msra.mxu1 %v2291_v12  ;;  %v2677_v6 = vpop.xlane.xlu1 %2676  ;;  %3949 = vmatprep.mubr.msk.bf16.mxu1 %vm4592_vm3, %v4591_v38  ;;  %v2287_v5 = vmul.f32 %v4287_v53, %v5347_v50 }
 0xf5c   :  { %3959 = vmatprep.subr.bf16.mxu1 %v4591_v38 }
 0xf5d   :  { %v2289_v16 = vpack.c.bf16 %v2288_v54, %v2287_v5  ;;  %v4289_v46 = vpop.eup %4288 }
 0xf5e   :  { %v4291_v2 = vpop.eup %4290  ;;  %v2409_v37 = vmul.f32 %v4289_v46, %v5377_v20 }
 0xf5f   :  { %v2795_v47 = vpop.xlane.xlu1 %2794  ;;  %v2674_v26 = vpop.xlane.xlu0 %2673  ;;  %v2408_v50 = vmul.f32 %v4291_v2, %v5351_v10 }
 0xf60   :  { %4296 = vrcp.f32 %v2674_v26 }
 0xf61   :  { %4298 = vrcp.f32 %v2677_v6  ;;  %v2410_v57 = vpack.c.bf16 %v2409_v37, %v2408_v50  ;;  %v4155_v37 = vld [vmem:[%s5556_s7 + $0x10] sm:$0xff]  }
 0xf62   :  { %3950 = vmatmul.mubr.msk.bf16.vlgmr.msra.gmra.mxu1 %vm495_vm4, %v2289_v16 }
 0xf63   :  { %3960 = vmatpush3.bf16.msra.mxu1 %v2412_v18  ;;  %3961 = vmatprep.mubr.msk.bf16.mxu1 %vm4592_vm3, %v4591_v38  ;;  %v2798_v28 = vpop.xlane.xlu1 %2797  ;;  %v2916_v33 = vpop.xlane.xlu0 %2915 }
 0xf64   :  { %3971 = vmatprep.subr.bf16.mxu1 %v4591_v38  ;;  %4300 = vrcp.f32 %v2798_v28 }
 0xf65   :  { %v4293_v59 = vpop.eup %4292  ;;  %4302 = vrcp.f32 %v2795_v47  ;;  %v4154_v47 = vld [vmem:[%s5556_s7 + $0x18] sm:$0xff]  }
 0xf66   :  { %v4295_v60 = vpop.eup %4294  ;;  %v2560_v36 = vmul.f32 %v4293_v59, %v5386_v0  ;;  %4013 = vmatprep.subr.bf16.mxu0 %v4154_v47 }
 0xf67   :  { %v2919_v58 = vpop.xlane.xlu1 %2918  ;;  %v2559_v20 = vmul.f32 %v4295_v60, %v5382_v41  ;;  %v2805_v52 = vpop.permute.xlu0 %2804  ;;  %4014 = vmatpush3.bf16.msra.mxu0 %v4154_v47 }
 0xf68   :  { %4304 = vrcp.f32 %v2919_v58  ;;  %4015 = vmatprep.subr.bf16.mxu0 %v4155_v37 }
 0xf69   :  { %v2561_v25 = vpack.c.bf16 %v2560_v36, %v2559_v20  ;;  %4306 = vrcp.f32 %v2916_v33 }
 0xf6a   :  { %3962 = vmatmul.mubr.msk.bf16.vlgmr.msra.gmra.mxu1 %vm495_vm4, %v2410_v57 }
 0xf6b   :  { %3972 = vmatpush3.bf16.msra.mxu1 %v2563_v15  ;;  %3973 = vmatprep.mubr.msk.bf16.mxu1 %vm4592_vm3, %v4591_v38  ;;  %v2684_v29 = vpop.permute.xlu1 %2683  ;;  %v2926_v21 = vpop.permute.xlu0 %2925 }
 0xf6c   :  { %3983 = vmatprep.subr.bf16.mxu1 %v4591_v38  ;;  %4016 = vmatpush3.bf16.msra.mxu0 %v4155_v37 }
 0xf6d   :  { %v4297_v10 = vpop.eup %4296 }
 0xf6e   :  { %v4299_v32 = vpop.eup %4298  ;;  %v2680_v42 = vmul.f32 %v4297_v10, %v5392_v63 }
 0xf6f   :  { %v2681_v0 = vmul.f32 %v4299_v32, %v5390_v17 }
 0xf71   :  { %v2682_v41 = vpack.c.bf16 %v2681_v0, %v2680_v42  ;;  %v4301_v56 = vpop.eup %4300 }
 0xf72   :  { %3974 = vmatmul.mubr.msk.bf16.vlgmr.msra.gmra.mxu1 %vm495_vm4, %v2561_v25  ;;  %v4303_v9 = vpop.eup %4302  ;;  %v2802_v12 = vmul.f32 %v4301_v56, %v5404_v7 }
 0xf73   :  { %3984 = vmatpush3.bf16.msra.mxu1 %v2684_v29  ;;  %3985 = vmatprep.mubr.msk.bf16.mxu1 %vm4592_vm3, %v4591_v38  ;;  %v2801_v18 = vmul.f32 %v4303_v9, %v5396_v3 }
 0xf74   :  { %3995 = vmatprep.subr.bf16.mxu1 %v4591_v38 }
 0xf75   :  { %v2803_v63 = vpack.c.bf16 %v2802_v12, %v2801_v18  ;;  %v4305_v23 = vpop.eup %4304 }
 0xf76   :  { %v4307_v17 = vpop.eup %4306  ;;  %v2923_v61 = vmul.f32 %v4305_v23, %v5410_v62 }
 0xf77   :  { %v2922_v55 = vmul.f32 %v4307_v17, %v5398_v4 }
 0xf79   :  { %v2924_v11 = vpack.c.bf16 %v2923_v61, %v2922_v55 }
 0xf7a   :  { %3986 = vmatmul.mubr.msk.bf16.vlgmr.msra.gmra.mxu1 %vm495_vm4, %v2682_v41 }
 0xf7b   :  { %3996 = vmatpush3.bf16.msra.mxu1 %v2805_v52  ;;  %3997 = vmatprep.mubr.msk.bf16.mxu1 %vm4592_vm3, %v4591_v38 }
 0xf7c   :  { %4007 = vmatprep.subr.bf16.mxu1 %v4591_v38 }
 0xf82   :  { %3998 = vmatmul.mubr.msk.bf16.vlgmr.msra.gmra.mxu1 %vm495_vm4, %v2803_v63 }
 0xf83   :  { %4008 = vmatpush3.bf16.msra.mxu1 %v2926_v21  ;;  %4009 = vmatprep.mubr.msk.bf16.mxu1 %vm4592_vm3, %v4591_v38 }
 0xf8a   :  { %4010 = vmatmul.mubr.msk.bf16.vlgmr.msra.gmra.mxu1 %vm495_vm4, %v2924_v11 }
 0xfe9   :  { %v2088_v7 = vpop.f32.mrf.mxu1 }
 0xfeb   :  { %v3927_v39 = vpop.f32.mrf.mxu1 }
 0xfed   :  { %v2091_v3 = vpop.f32.mrf.mxu1 }
 0xfef   :  { %v3928_v40 = vpop.f32.mrf.mxu1 }
0x101a   :  { %v2209_v24 = vpop.f32.mrf.mxu1 }
0x101c   :  { %v3939_v27 = vpop.f32.mrf.mxu1 }
0x101e   :  { %v2212_v43 = vpop.f32.mrf.mxu1 }
0x101f   :  { %v4110_v48 = vpack.i.bf16 %v2212_v43, %v2209_v24 }
0x1020   :  { %v3940_v1 = vpop.f32.mrf.mxu1 }
0x1021   :  { %4111 = vrot.lane.b32.xlu0 %v4110_v48, %s4604_s0 }
0x1022   :  { %v2330_v44 = vpop.f32.mrf.mxu1 }
0x1024   :  { %v3951_v38 = vpop.f32.mrf.mxu1 }
0x1026   :  { %v2333_v49 = vpop.f32.mrf.mxu1 }
0x1027   :  { %v4115_v62 = vpack.i.bf16 %v2333_v49, %v2330_v44 }
0x1028   :  { %v3952_v8 = vpop.f32.mrf.mxu1 }
0x1029   :  { %4116 = vrot.lane.b32.xlu0 %v4115_v62, %s4580_s3  ;;  %v3614_v8 = vld [vmem:[#allocation8 + $0x1] ss:$0 sm:$0xff] }
0x102a   :  { %v2451_v4 = vpop.f32.mrf.mxu1 }
0x102c   :  { %v3963_v45 = vpop.f32.mrf.mxu1 }
0x102e   :  { %v2454_v31 = vpop.f32.mrf.mxu1 }
0x102f   :  { %v4120_v35 = vpack.i.bf16 %v2454_v31, %v2451_v4 }
0x1030   :  { %v3964_v34 = vpop.f32.mrf.mxu1 }
0x1031   :  { %4121 = vrot.lane.b32.xlu0 %v4120_v35, %s4605_s14 }
0x1032   :  { %v2602_v30 = vpop.f32.mrf.mxu1 }
0x1034   :  { %v3975_v51 = vpop.f32.mrf.mxu1 }
0x1036   :  { %v2605_v53 = vpop.f32.mrf.mxu1 }
0x1038   :  { %v3976_v6 = vpop.f32.mrf.mxu1 }
0x103a   :  { %v2723_v54 = vpop.f32.mrf.mxu1 }
0x103c   :  { %v3987_v15 = vpop.f32.mrf.mxu1 }
0x103e   :  { %v2726_v5 = vpop.f32.mrf.mxu1 }
0x103f   :  { %v4125_v16 = vpack.i.bf16 %v2726_v5, %v2723_v54 }
0x1040   :  { %v3988_v46 = vpop.f32.mrf.mxu1 }
0x1041   :  { %4126 = vrot.lane.b32.xlu1 %v4125_v16, %s4604_s0 }
0x1042   :  { %v2844_v26 = vpop.f32.mrf.mxu1 }
0x1044   :  { %v3999_v2 = vpop.f32.mrf.mxu1 }
0x1046   :  { %v2847_v28 = vpop.f32.mrf.mxu1 }
0x1047   :  { %v4130_v50 = vpack.i.bf16 %v2847_v28, %v2844_v26 }
0x1048   :  { %v4000_v57 = vpop.f32.mrf.mxu1 }
0x1049   :  { %4131 = vrot.lane.b32.xlu1 %v4130_v50, %s4580_s3 }
0x104a   :  { %v2965_v59 = vpop.f32.mrf.mxu1 }
0x104c   :  { %v4011_v60 = vpop.f32.mrf.mxu1 }
0x104e   :  { %v2968_v58 = vpop.f32.mrf.mxu1 }
0x104f   :  { %v4135_v36 = vpack.i.bf16 %v2968_v58, %v2965_v59 }
0x1050   :  { %v4012_v20 = vpop.f32.mrf.mxu1 }
0x1051   :  { %4136 = vrot.lane.b32.xlu0 %v4135_v36, %s4605_s14 }
0x1093   :  { %v4112_v25 = vpop.permute.xlu0 %4111 }
0x1094   :  { %v4114_v29 = vunpack.i.h.bf16 %v4112_v25  ;;  %v4113_v32 = vunpack.i.l.bf16 %v4112_v25 }
0x1096   :  { %v2483_v41 = vsel %vm219_vm1, %v2091_v3, %v4114_v29  ;;  %v2482_v56 = vsel %vm219_vm1, %v2088_v7, %v4113_v32 }
0x109b   :  { %v4117_v10 = vpop.permute.xlu0 %4116 }
0x109c   :  { %v4119_v33 = vunpack.i.h.bf16 %v4117_v10  ;;  %v4118_v42 = vunpack.i.l.bf16 %v4117_v10 }
0x109e   :  { %v2484_v12 = vsel %vm495_vm4, %v2482_v56, %v4118_v42  ;;  %v2485_v18 = vsel %vm495_vm4, %v2483_v41, %v4119_v33  ;;  %v4156_v42 = vld [vmem:[%s5560_s11 + $0x18] sm:$0xff]  }
0x109f   :  { %4021 = vmatprep.subr.bf16.mxu1 %v4156_v42  ;;  %v4158_v41 = vld [vmem:[%s5562_s13 + $0x38] sm:$0xff]  }
0x10a0   :  { %4022 = vmatpush3.bf16.msra.mxu1 %v4156_v42  ;;  %4029 = vmatprep.subr.bf16.mxu0 %v4158_v41 }
0x10a3   :  { %v4122_v0 = vpop.permute.xlu0 %4121 }
0x10a4   :  { %v4124_v52 = vunpack.i.h.bf16 %v4122_v0  ;;  %v4123_v9 = vunpack.i.l.bf16 %v4122_v0  ;;  %v4157_v0 = vld [vmem:[%s5560_s11 + $0x10] sm:$0xff]  }
0x10a5   :  { %4023 = vmatprep.subr.bf16.mxu1 %v4157_v0 }
0x10a6   :  { %v2486_v63 = vsel %vm957_vm5, %v2484_v12, %v4123_v9  ;;  %v2487_v23 = vsel %vm957_vm5, %v2485_v18, %v4124_v52  ;;  %4024 = vmatpush3.bf16.msra.mxu1 %v4157_v0 }
0x10a7   :  { %v3007_v21 = vpack.c.bf16 %v2487_v23, %v2486_v63 }
0x10a9   :  { %4017 = vmatprep.mubr.msk.bf16.mxu0 %vm308_vm2, %v3007_v21 }
0x10b3   :  { %v4127_v17 = vpop.permute.xlu1 %4126 }
0x10b4   :  { %v4129_v55 = vunpack.i.h.bf16 %v4127_v17  ;;  %v4128_v11 = vunpack.i.l.bf16 %v4127_v17 }
0x10b6   :  { %v2997_v40 = vsel %vm219_vm1, %v2605_v53, %v4129_v55  ;;  %v2996_v24 = vsel %vm219_vm1, %v2602_v30, %v4128_v11 }
0x10bb   :  { %v4132_v61 = vpop.permute.xlu1 %4131 }
0x10bc   :  { %v4134_v39 = vunpack.i.h.bf16 %v4132_v61  ;;  %v4133_v3 = vunpack.i.l.bf16 %v4132_v61 }
0x10be   :  { %v2999_v48 = vsel %vm495_vm4, %v2997_v40, %v4134_v39  ;;  %v2998_v1 = vsel %vm495_vm4, %v2996_v24, %v4133_v3 }
0x10c3   :  { %v4137_v7 = vpop.permute.xlu0 %4136 }
0x10c4   :  { %v4139_v27 = vunpack.i.h.bf16 %v4137_v7  ;;  %v4138_v43 = vunpack.i.l.bf16 %v4137_v7  ;;  %v3619_v7 = vld [vmem:[#allocation10 + $0x1] ss:$0 sm:$0xff] }
0x10c6   :  { %v3001_v44 = vsel %vm957_vm5, %v2999_v48, %v4139_v27  ;;  %v3000_v38 = vsel %vm957_vm5, %v2998_v1, %v4138_v43  ;;  %v3620_v43 = vld [vmem:[#allocation11 + $0x1] ss:$0 sm:$0xff] }
0x10c7   :  { %v3008_v49 = vpack.c.bf16 %v3001_v44, %v3000_v38 }
0x10c9   :  { %4018 = vmatmul.mubr.msk.bf16.vlgmr.msra.gmra.mxu0 %vm308_vm2, %v3008_v49 }
0x10ca   :  { %4030 = vmatpush3.bf16.msra.mxu0 %v4158_v41 }
0x1189   :  { %v4019_v62 = vpop.f32.mrf.mxu0 }
0x118a   :  { %v3078_v51 = vadd.f32 %v4019_v62, %v3614_v8 }
0x118b   :  { %v3069_v4 = vpop.f32.mrf.mxu0 }
0x118c   :  { %v3070_v45 = vadd.f32 %v3614_v8, %v3069_v4  ;;  %v3086_v5 = vadd.f32 %v3078_v51, %v5174_v19  ;;  %v4159_v51 = vld [vmem:[%s5562_s13 + $0x30] sm:$0xff]  }
0x118d   :  { %v4020_v31 = vpop.f32.mrf.mxu0  ;;  %4031 = vmatprep.subr.bf16.mxu0 %v4159_v51 }
0x118e   :  { %v3084_v35 = vadd.f32 %v3070_v45, %v5167_v13  ;;  %v3081_v34 = vadd.f32 %v4020_v31, %v3614_v8  ;;  %v3098_v13 = vsel %vm308_vm2, %v3086_v5, 0.0  ;;  %4032 = vmatpush3.bf16.msra.mxu0 %v4159_v51 }
0x118f   :  { %v3072_v30 = vpop.f32.mrf.mxu0 }
0x1190   :  { %v3087_v53 = vadd.f32 %v3081_v34, %v5176_v22  ;;  %v3073_v6 = vadd.f32 %v3614_v8, %v3072_v30  ;;  %v3092_v54 = vsel %vm308_vm2, %v3084_v35, 0.0 }
0x1191   :  { %3093 = vadd.xlane.f32.xlu1 %v3092_v54 }
0x1192   :  { %v3085_v15 = vadd.f32 %v3073_v6, %v5169_v14  ;;  %v3101_v16 = vsel %vm308_vm2, %v3087_v53, 0.0  ;;  %v4161_v6 = vld [vmem:[%s5562_s13 + $0x20] sm:$0xff]  }
0x1194   :  { %v3095_v47 = vsel %vm308_vm2, %v3085_v15, 0.0 }
0x1195   :  { %3096 = vadd.xlane.f32.xlu0 %v3095_v47  ;;  %3102 = vadd.xlane.f32.xlu1 %v3101_v16 }
0x1199   :  { %3099 = vadd.xlane.f32.xlu0 %v3098_v13 }
0x121a   :  { %v3094_v46 = vpop.xlane.xlu1 %3093 }
0x121b   :  { %v3104_v26 = vmul.f32 0.03125, %v3094_v46 }
0x121d   :  { %v3108_v22 = vsub.f32 %v3084_v35, %v3104_v26 }
0x121e   :  { %v3097_v2 = vpop.xlane.xlu0 %3096  ;;  %v3103_v37 = vpop.xlane.xlu1 %3102 }
0x121f   :  { %v3105_v28 = vmul.f32 0.03125, %v3097_v2  ;;  %v3107_v50 = vmul.f32 0.03125, %v3103_v37  ;;  %v3112_v57 = vmul.f32 %v3108_v22, %v3108_v22 }
0x1221   :  { %v3109_v14 = vsub.f32 %v3085_v15, %v3105_v28  ;;  %v3111_v59 = vsub.f32 %v3087_v53, %v3107_v50  ;;  %v3116_v19 = vsel %vm308_vm2, %v3112_v57, 0.0  ;;  %v4160_v53 = vld [vmem:[%s5562_s13 + $0x28] sm:$0xff]  }
0x1222   :  { %v3100_v60 = vpop.xlane.xlu0 %3099  ;;  %3117 = vadd.xlane.f32.xlu0 %v3116_v19  ;;  %4033 = vmatprep.subr.bf16.mxu0 %v4160_v53  ;;  %v3638_v19 = vld [vmem:[#allocation14 + $0x1] ss:$0 sm:$0xff] }
0x1223   :  { %v3106_v58 = vmul.f32 0.03125, %v3100_v60  ;;  %v3113_v36 = vmul.f32 %v3109_v14, %v3109_v14  ;;  %v3115_v10 = vmul.f32 %v3111_v59, %v3111_v59  ;;  %4034 = vmatpush3.bf16.msra.mxu0 %v4160_v53 }
0x1224   :  { %4035 = vmatprep.subr.bf16.mxu0 %v4161_v6 }
0x1225   :  { %v3110_v20 = vsub.f32 %v3086_v5, %v3106_v58  ;;  %v3119_v25 = vsel %vm308_vm2, %v3113_v36, 0.0  ;;  %v3125_v33 = vsel %vm308_vm2, %v3115_v10, 0.0  ;;  %v3625_v5 = vld [vmem:[#allocation13 + $0x1] ss:$0 sm:$0xff] }
0x1226   :  { %3120 = vadd.xlane.f32.xlu1 %v3119_v25 }
0x1227   :  { %v3114_v29 = vmul.f32 %v3110_v20, %v3110_v20  ;;  %4036 = vmatpush3.bf16.msra.mxu0 %v4161_v6 }
0x1229   :  { %v3122_v32 = vsel %vm308_vm2, %v3114_v29, 0.0 }
0x122a   :  { %3123 = vadd.xlane.f32.xlu0 %v3122_v32  ;;  %3126 = vadd.xlane.f32.xlu1 %v3125_v33 }
0x12ab   :  { %v3118_v56 = vpop.xlane.xlu0 %3117 }
0x12ac   :  { %v3128_v52 = vmul.f32 0.03125, %v3118_v56 }
0x12ae   :  { %v3132_v9 = vadd.f32 1e-05, %v3128_v52 }
0x12af   :  { %v3121_v12 = vpop.xlane.xlu1 %3120 }
0x12b0   :  { %4308 = vrsqrt.f32 %v3132_v9  ;;  %v3129_v18 = vmul.f32 0.03125, %v3121_v12 }
0x12b2   :  { %v3133_v63 = vadd.f32 1e-05, %v3129_v18 }
0x12b3   :  { %v3124_v23 = vpop.xlane.xlu0 %3123  ;;  %v3127_v21 = vpop.xlane.xlu1 %3126 }
0x12b4   :  { %4310 = vrsqrt.f32 %v3133_v63  ;;  %v3130_v17 = vmul.f32 0.03125, %v3124_v23  ;;  %v3131_v61 = vmul.f32 0.03125, %v3127_v21 }
0x12b6   :  { %v3134_v55 = vadd.f32 1e-05, %v3130_v17  ;;  %v3135_v11 = vadd.f32 1e-05, %v3131_v61 }
0x12b8   :  { %4312 = vrsqrt.f32 %v3134_v55 }
0x12b9   :  { %4314 = vrsqrt.f32 %v3135_v11 }
0x12bd   :  { %v4309_v39 = vpop.eup %4308 }
0x12be   :  { %v3140_v3 = vmul.f32 %v4309_v39, %v3108_v22 }
0x12c0   :  { %v3150_v27 = vmul.f32 %v3619_v7, %v3140_v3 }
0x12c1   :  { %v4311_v40 = vpop.eup %4310 }
0x12c2   :  { %v3141_v24 = vmul.f32 %v4311_v40, %v3109_v14  ;;  %v3160_v49 = vadd.f32 %v3620_v43, %v3150_v27 }
0x12c4   :  { %v3151_v48 = vmul.f32 %v3619_v7, %v3141_v24 }
0x12c5   :  { %v4313_v1 = vpop.eup %4312 }
0x12c6   :  { %v4315_v44 = vpop.eup %4314  ;;  %v3142_v38 = vmul.f32 %v4313_v1, %v3110_v20  ;;  %v3161_v62 = vadd.f32 %v3620_v43, %v3151_v48 }
0x12c7   :  { %v3143_v8 = vmul.f32 %v4315_v44, %v3111_v59 }
0x12c8   :  { %v3169_v4 = vpack.c.bf16 %v3161_v62, %v3160_v49  ;;  %v3152_v45 = vmul.f32 %v3619_v7, %v3142_v38 }
0x12c9   :  { %v3153_v31 = vmul.f32 %v3619_v7, %v3143_v8 }
0x12ca   :  { %4025 = vmatprep.mubr.msk.bf16.mxu1 %vm308_vm2, %v3169_v4  ;;  %v3162_v35 = vadd.f32 %v3620_v43, %v3152_v45 }
0x12cb   :  { %v3163_v34 = vadd.f32 %v3620_v43, %v3153_v31 }
0x12cd   :  { %v3170_v30 = vpack.c.bf16 %v3163_v34, %v3162_v35 }
0x12cf   :  { %4026 = vmatmul.mubr.msk.bf16.vlgmr.msra.gmra.mxu1 %vm308_vm2, %v3170_v30 }
0x138f   :  { %v4027_v54 = vpop.f32.mrf.mxu1 }
0x1390   :  { %v3240_v46 = vadd.f32 %v4027_v54, %v3625_v5 }
0x1391   :  { %v3231_v15 = vpop.f32.mrf.mxu1 }
0x1392   :  { %v3232_v16 = vadd.f32 %v3625_v5, %v3231_v15  ;;  %v3248_v50 = vmax.f32 %v3240_v46, 0.0 }
0x1393   :  { %v4028_v47 = vpop.f32.mrf.mxu1 }
0x1394   :  { %v3243_v13 = vadd.f32 %v4028_v47, %v3625_v5  ;;  %v3246_v37 = vmax.f32 %v3232_v16, 0.0  ;;  %v3645_v16 = vld [vmem:[#allocation16 + $0x1] ss:$0 sm:$0xff] }
0x1395   :  { %v3234_v26 = vpop.f32.mrf.mxu1 }
0x1396   :  { %v3235_v22 = vadd.f32 %v3625_v5, %v3234_v26  ;;  %v3249_v2 = vmax.f32 %v3243_v13, 0.0 }
0x1398   :  { %v3247_v28 = vmax.f32 %v3235_v22, 0.0  ;;  %v3260_v14 = vpack.c.bf16 %v3249_v2, %v3248_v50 }
0x139a   :  { %v3259_v57 = vpack.c.bf16 %v3247_v28, %v3246_v37  ;;  %v3646_v37 = vld [vmem:[#allocation17 + $0x1] ss:$0 sm:$0xff] }
0x139c   :  { %4037 = vmatprep.mubr.msk.bf16.mxu0 %vm1758_vm6, %v3259_v57 }
0x139d   :  { %4038 = vmatmul.mubr.msk.bf16.vlgmr.msra.gmra.mxu0 %vm1758_vm6, %v3260_v14 }
0x145d   :  { %v4039_v59 = vpop.f32.mrf.mxu0 }
0x145e   :  { %v3342_v58 = vadd.f32 %v4039_v59, %v3638_v19 }
0x145f   :  { %v3333_v60 = vpop.f32.mrf.mxu0 }
0x1460   :  { %v3334_v36 = vadd.f32 %v3638_v19, %v3333_v60  ;;  %v3350_v29 = vadd.f32 %v3342_v58, %v3162_v35 }
0x1461   :  { %v4040_v20 = vpop.f32.mrf.mxu0 }
0x1462   :  { %v3348_v25 = vadd.f32 %v3334_v36, %v3160_v49  ;;  %v3345_v32 = vadd.f32 %v4040_v20, %v3638_v19  ;;  %v3362_v52 = vsel %vm308_vm2, %v3350_v29, 0.0  ;;  %v4162_v49 = vld [vmem:[%s5566_s17 + $0x8] sm:$0xff]  }
0x1463   :  { %v3336_v10 = vpop.f32.mrf.mxu0  ;;  %4041 = vmatprep.subr.bf16.mxu1 %v4162_v49 }
0x1464   :  { %v3337_v33 = vadd.f32 %v3638_v19, %v3336_v10  ;;  %v3356_v42 = vsel %vm308_vm2, %v3348_v25, 0.0  ;;  %v3351_v41 = vadd.f32 %v3345_v32, %v3163_v34  ;;  %4042 = vmatpush3.bf16.msra.mxu1 %v4162_v49  ;;  %v3647_v10 = vld [vmem:[#allocation19] ss:$0 sm:$0xff] }
0x1465   :  { %3357 = vadd.xlane.f32.xlu0 %v3356_v42 }
0x1466   :  { %v3349_v0 = vadd.f32 %v3337_v33, %v3161_v62  ;;  %v3365_v9 = vsel %vm308_vm2, %v3351_v41, 0.0  ;;  %v4163_v62 = vld [vmem:[%s5566_s17] sm:$0xff]   ;;  %s4606_s17 = smov [#allocation20]  }
0x1467   :  { %4043 = vmatprep.subr.bf16.mxu1 %v4163_v62  ;;  %s3517_s9 = sshll.u32 %s4606_s17, 4  ;;  %s3518_s9 = int_to_ptr.vmem [resolvable:$true] %s3517_s9 }
0x1468   :  { %v3359_v56 = vsel %vm308_vm2, %v3349_v0, 0.0  ;;  %4044 = vmatpush3.bf16.msra.mxu1 %v4163_v62  ;;  %s4544_s22 = scalar_lea.vmem %s3518_s9, 512  ;;  %p4549_p0 = scmp.lt.s32.totalorder %s3518_s9, %s3518_s9 }
0x1469   :  { %3360 = vadd.xlane.f32.xlu1 %v3359_v56  ;;  %3363 = vadd.xlane.f32.xlu0 %v3362_v52  ;;  %p4545_p13 = scmp.ne.s32.totalorder %s3518_s9, %s4544_s22  ;;  %p4550_p1 = scmp.lt.s32.totalorder %s4544_s22, %s4544_s22 }
0x146b   :  { %p4551_p2 = por %p4550_p1, %p4549_p0 }
0x146d   :  { %3366 = vadd.xlane.f32.xlu1 %v3365_v9  ;;  %p4552_p3 = pnand %p4551_p2, %p4545_p13 }
0x14ee   :  { %v3358_v12 = vpop.xlane.xlu0 %3357 }
0x14ef   :  { %v3368_v18 = vmul.f32 0.03125, %v3358_v12 }
0x14f1   :  { %v3372_v63 = vsub.f32 %v3348_v25, %v3368_v18 }
0x14f2   :  { %v3361_v23 = vpop.xlane.xlu1 %3360  ;;  %v3364_v21 = vpop.xlane.xlu0 %3363 }
0x14f3   :  { %v3369_v17 = vmul.f32 0.03125, %v3361_v23  ;;  %v3370_v61 = vmul.f32 0.03125, %v3364_v21  ;;  %v3376_v55 = vmul.f32 %v3372_v63, %v3372_v63 }
0x14f5   :  { %v3373_v11 = vsub.f32 %v3349_v0, %v3369_v17  ;;  %v3374_v39 = vsub.f32 %v3350_v29, %v3370_v61  ;;  %v3380_v3 = vsel %vm308_vm2, %v3376_v55, 0.0 }
0x14f6   :  { %v3367_v7 = vpop.xlane.xlu1 %3366  ;;  %3381 = vadd.xlane.f32.xlu0 %v3380_v3 }
0x14f7   :  { %v3371_v40 = vmul.f32 0.03125, %v3367_v7  ;;  %v3377_v24 = vmul.f32 %v3373_v11, %v3373_v11  ;;  %v3378_v27 = vmul.f32 %v3374_v39, %v3374_v39 }
0x14f9   :  { %v3375_v43 = vsub.f32 %v3351_v41, %v3371_v40  ;;  %v3383_v48 = vsel %vm308_vm2, %v3377_v24, 0.0  ;;  %v3386_v1 = vsel %vm308_vm2, %v3378_v27, 0.0 }
0x14fa   :  { %3384 = vadd.xlane.f32.xlu1 %v3383_v48  ;;  %3387 = vadd.xlane.f32.xlu0 %v3386_v1 }
0x14fb   :  { %v3379_v44 = vmul.f32 %v3375_v43, %v3375_v43 }
0x14fd   :  { %v3389_v38 = vsel %vm308_vm2, %v3379_v44, 0.0 }
0x14fe   :  { %3390 = vadd.xlane.f32.xlu1 %v3389_v38 }
0x157f   :  { %v3382_v8 = vpop.xlane.xlu0 %3381 }
0x1580   :  { %v3392_v4 = vmul.f32 0.03125, %v3382_v8 }
0x1582   :  { %v3396_v45 = vadd.f32 1e-05, %v3392_v4 }
0x1583   :  { %v3385_v31 = vpop.xlane.xlu1 %3384  ;;  %v3388_v35 = vpop.xlane.xlu0 %3387 }
0x1584   :  { %4316 = vrsqrt.f32 %v3396_v45  ;;  %v3393_v34 = vmul.f32 0.03125, %v3385_v31  ;;  %v3394_v30 = vmul.f32 0.03125, %v3388_v35 }
0x1586   :  { %v3397_v51 = vadd.f32 1e-05, %v3393_v34  ;;  %v3398_v53 = vadd.f32 1e-05, %v3394_v30 }
0x1587   :  { %v3391_v6 = vpop.xlane.xlu1 %3390 }
0x1588   :  { %4318 = vrsqrt.f32 %v3397_v51  ;;  %v3395_v54 = vmul.f32 0.03125, %v3391_v6 }
0x1589   :  { %4320 = vrsqrt.f32 %v3398_v53 }
0x158a   :  { %v3399_v15 = vadd.f32 1e-05, %v3395_v54 }
0x158c   :  { %4322 = vrsqrt.f32 %v3399_v15 }
0x1591   :  { %v4317_v5 = vpop.eup %4316 }
0x1592   :  { %v3404_v47 = vmul.f32 %v4317_v5, %v3372_v63 }
0x1594   :  { %v3414_v22 = vmul.f32 %v3645_v16, %v3404_v47 }
0x1595   :  { %v4319_v13 = vpop.eup %4318 }
0x1596   :  { %v4321_v46 = vpop.eup %4320  ;;  %v3405_v26 = vmul.f32 %v4319_v13, %v3373_v11  ;;  %v3424_v14 = vadd.f32 %v3646_v37, %v3414_v22 }
0x1597   :  { %v3406_v2 = vmul.f32 %v4321_v46, %v3374_v39 }
0x1598   :  { %v3415_v28 = vmul.f32 %v3645_v16, %v3405_v26 }
0x1599   :  { %v4323_v50 = vpop.eup %4322  ;;  %v3416_v19 = vmul.f32 %v3645_v16, %v3406_v2 }
0x159a   :  { %v3407_v57 = vmul.f32 %v4323_v50, %v3375_v43  ;;  %v3425_v59 = vadd.f32 %v3646_v37, %v3415_v28 }
0x159b   :  { %v3426_v36 = vadd.f32 %v3646_v37, %v3416_v19 }
0x159c   :  { %v3432_v60 = vpack.c.bf16 %v3425_v59, %v3424_v14  ;;  %v3417_v58 = vmul.f32 %v3645_v16, %v3407_v57 }
0x159e   :  { %4045 = vmatprep.mubr.msk.bf16.mxu1 %vm308_vm2, %v3432_v60  ;;  %v3427_v20 = vadd.f32 %v3646_v37, %v3417_v58 }
0x15a0   :  { %v3433_v25 = vpack.c.bf16 %v3427_v20, %v3426_v36 }
0x15a2   :  { %4046 = vmatmul.mubr.msk.bf16.vlgmr.msra.gmra.mxu1 %vm308_vm2, %v3433_v25 }
0x1662   :  { %v4047_v29 = vpop.f32.mrf.mxu1 }
0x1663   :  { %v3502_v32 = vadd.f32 %v4047_v29, %v3647_v10 }
0x1664   :  { %v3493_v33 = vpop.f32.mrf.mxu1 }
0x1665   :  { %3510 = vst.msk [vmem:[#allocation20 + $0x10] sm:$0xff] %vm308_vm2, %v3502_v32  ;;  %v3494_v42 = vadd.f32 %v3647_v10, %v3493_v33 }
0x1666   :  { %v4048_v0 = vpop.f32.mrf.mxu1 }
0x1667   :  { %3508 = vst.msk [vmem:[#allocation20] sm:$0xff] %vm308_vm2, %v3494_v42  ;;  %v3505_v41 = vadd.f32 %v4048_v0, %v3647_v10 }
0x1668   :  { %v3496_v56 = vpop.f32.mrf.mxu1 }
0x1669   :  { %3511 = vst.msk [vmem:[#allocation20 + $0x18] sm:$0xff] %vm308_vm2, %v3505_v41  ;;  %v3497_v52 = vadd.f32 %v3647_v10, %v3496_v56 }
0x166b   :  { %3509 = vst.msk [vmem:[#allocation20 + $0x8] sm:$0xff] %vm308_vm2, %v3497_v52 }
0x166c   :  { %4555 = shalt.err (!%p4552_p3)
}
0x166d   :  { %s4607_s2 = smov 128  }
0x166e   :  { %3523 = dma.vmem_to_hbm [thread:$0]  %s3518_s9, 512, %s5568_s19, [#allocation4], %s4607_s2, %s4607_s2, %s4604_s0  }
0x166f   :  { %4576 = dma.done.wait [#allocation4], 512  }
0x1670   :  { %4577 = vsyncadd [#allocation4], 4294966784 }
0x1671   :  { %3527 = vsyncpa [#allocation3], 1 }
0x1672   :  { %3528 = vsyncpa [#allocation6], 1 }
0x1673   :  { %3529 = vsyncpa [#allocation9], 1 }
0x1674   :  { %3530 = vsyncpa [#allocation12], 1 }
0x1675   :  { %3531 = vsyncpa [#allocation15], 1 }
0x1676   :  { %3532 = vsyncpa [#allocation18], 1 }
0x1677   :  { %3533 = vsyncpa [#allocation4], 1 }

</bundles_post_ra>
